<compile_context>
chip_gen: v6e
topology: v6e:2x2x1
jax: 0.10.0
libtpu: 0.0.40
codegen_flags: <defaults>
</compile_context>

<pallas_src>
import functools

import jax
import jax.numpy as jnp
from jax.experimental import pallas as pl
from jax.experimental.pallas import tpu as pltpu


# --------------------------------------------------------------------------
# Small helpers
# --------------------------------------------------------------------------
def _round_up(x, m):
    return (x + m - 1) // m * m


def _pick_tiles():
    """(row tile tm, contraction tile tk) for the adj @ x pipeline.

    v7x has half the VMEM (64 MiB) of v5e/v6e -> smaller contraction tile.
    tk is always a multiple of tm so one padded node count divides both.
    """
    kind = ""
    try:
        kind = jax.devices()[0].device_kind.lower()
    except Exception:
        pass
    if "v7" in kind or "7x" in kind:
        return 256, 256
    return 256, 512


def _full_spec(a):
    # Whole-array VMEM block with a constant index map -> DMA'd once per call.
    return pl.BlockSpec(a.shape, lambda *_: (0,) * a.ndim)


def _vmem_limit_bytes(tm, tk, hp, ead, fuse_moe, num_experts):
    work = 2 * (tm * tk * 2        # adj tile (bf16), double buffered
                + tk * hp * 2      # x source tile (bf16)
                + tm * hp * 4      # x hidden-state tile (f32)
                + tm * ead * 4     # edge-aggregate tile (f32)
                + tm * hp * 4      # f32 output tile
                + tm * hp * 2)     # bf16 output tile (conv1 dual output)
    work += tm * hp * 4                                        # accumulator scratch
    work += ead * hp * 4 + 2 * (hp * 3 * hp) * 2 + 2 * 3 * hp * 4   # GRU weights
    if fuse_moe:
        work += hp * 128 * 2 + 128 * 4
        work += hp * num_experts * hp * 2 + num_experts * hp * 4
    # generous headroom for compiler scratch; stays under v7x physical VMEM (64 MiB)
    return int(min(max(3 * work, 32 * 1024 * 1024), 48 * 1024 * 1024))


def _ggnn_cost(n_pad, hp, ead, tm, fuse_moe, num_experts):
    flops = 2 * n_pad * n_pad * hp                   # adj @ x (dominant term)
    flops += 2 * n_pad * ead * hp                    # edge-feature contraction
    flops += 2 * n_pad * hp * 3 * hp * 2             # GRU input / hidden matmuls
    trans = 3 * n_pad * hp                           # 2x sigmoid + tanh
    if fuse_moe:
        flops += 2 * n_pad * hp * (128 + num_experts * hp)
        trans += n_pad * 128                         # softmax exp
    bytes_accessed = (n_pad * n_pad * 2              # adj (bf16)
                      + (n_pad // tm) * n_pad * hp * 2   # x_src re-streamed per row tile
                      + 2 * n_pad * hp * 4           # x hidden in + h out
                      + n_pad * hp * 2               # bf16 copy out (conv1)
                      + n_pad * ead * 4)
    return pl.CostEstimate(flops=int(flops), transcendentals=int(trans),
                           bytes_accessed=int(bytes_accessed))


# --------------------------------------------------------------------------
# GGNN layer kernels: tiled adj @ x accumulation + GRUCell + ReLU
# (conv2 variant additionally fuses the MoE in its epilogue).
# --------------------------------------------------------------------------
def _gru_relu(m, x, wih_ref, whh_ref, bih_ref, bhh_ref, hp):
    # bf16 MXU operands, f32 accumulation; gate math stays in f32 (VPU/EUP).
    gi = jnp.dot(m.astype(jnp.bfloat16), wih_ref[...],
                 preferred_element_type=jnp.float32) + bih_ref[...]
    gh = jnp.dot(x.astype(jnp.bfloat16), whh_ref[...],
                 preferred_element_type=jnp.float32) + bhh_ref[...]
    i_r, i_z, i_n = gi[:, :hp], gi[:, hp:2 * hp], gi[:, 2 * hp:]
    h_r, h_z, h_n = gh[:, :hp], gh[:, hp:2 * hp], gh[:, 2 * hp:]
    r = jax.nn.sigmoid(i_r + h_r)
    z = jax.nn.sigmoid(i_z + h_z)
    n = jnp.tanh(i_n + r * h_n)
    h_new = (1.0 - z) * n + z * x
    return jnp.maximum(h_new, 0.0)                   # ReLU (dropout = identity)


def _ggnn_kernel(adj_ref, xsrc_ref, xhid_ref, eagg_ref,
                 ew_ref, wih_ref, whh_ref, bih_ref, bhh_ref,
                 out_ref, out_bf16_ref, acc_ref):
    k = pl.program_id(1)

    @pl.when(k == 0)
    def _():
        acc_ref[...] = jnp.zeros_like(acc_ref)

    acc_ref[...] += jnp.dot(adj_ref[...], xsrc_ref[...],
                            preferred_element_type=jnp.float32)

    @pl.when(k == pl.num_programs(1) - 1)
    def _():
        hp = out_ref.shape[-1]
        x = xhid_ref[...]
        m = acc_ref[...] + jnp.dot(eagg_ref[...], ew_ref[...],
                                   preferred_element_type=jnp.float32)
        h = _gru_relu(m, x, wih_ref, whh_ref, bih_ref, bhh_ref, hp)
        out_ref[...] = h.astype(out_ref.dtype)
        out_bf16_ref[...] = h.astype(out_bf16_ref.dtype)


def _ggnn_moe_kernel(adj_ref, xsrc_ref, xhid_ref, eagg_ref,
                     ew_ref, wih_ref, whh_ref, bih_ref, bhh_ref,
                     gw_ref, gb_ref, wall_ref, ball_ref,
                     out_ref, acc_ref, *, num_experts):
    k = pl.program_id(1)

    @pl.when(k == 0)
    def _():
        acc_ref[...] = jnp.zeros_like(acc_ref)

    acc_ref[...] += jnp.dot(adj_ref[...], xsrc_ref[...],
                            preferred_element_type=jnp.float32)

    @pl.when(k == pl.num_programs(1) - 1)
    def _():
        hp = out_ref.shape[-1]
        x = xhid_ref[...]
        m = acc_ref[...] + jnp.dot(eagg_ref[...], ew_ref[...],
                                   preferred_element_type=jnp.float32)
        h = _gru_relu(m, x, wih_ref, whh_ref, bih_ref, bhh_ref, hp)
        hb = h.astype(jnp.bfloat16)

        # softmax gate in f32; padded expert lanes carry a -1e30 bias -> weight 0
        logits = jnp.dot(hb, gw_ref[...],
                         preferred_element_type=jnp.float32) + gb_ref[...]
        logits = logits - jnp.max(logits, axis=-1, keepdims=True)
        pe = jnp.exp(logits)
        gate = pe * pl.reciprocal(jnp.sum(pe, axis=-1, keepdims=True), approx=True)

        # all experts in a single lane-dense matmul: [tm, H] x [H, E*H]
        h_all = jnp.maximum(
            jnp.dot(hb, wall_ref[...],
                    preferred_element_type=jnp.float32) + ball_ref[...],
            0.0)
        out = jnp.zeros(h.shape, jnp.float32)
        for e in range(num_experts):                 # E is tiny -> static unroll
            out = out + gate[:, e:e + 1] * h_all[:, e * hp:(e + 1) * hp]
        out_ref[...] = out.astype(out_ref.dtype)


def _ggnn_pallas(x_hid, x_src, adj, eagg, conv, tm, tk, moe=None, num_experts=0):
    n_pad, hp = x_hid.shape
    ead = eagg.shape[1]
    grid = (n_pad // tm, n_pad // tk)

    in_specs = [
        pl.BlockSpec((tm, tk), lambda i, k: (i, k)),    # adj tile (bf16)
        pl.BlockSpec((tk, hp), lambda i, k: (k, 0)),    # source rows (bf16)
        pl.BlockSpec((tm, hp), lambda i, k: (i, 0)),    # hidden state rows (f32)
        pl.BlockSpec((tm, ead), lambda i, k: (i, 0)),   # [sum(edge_attr) | in-degree]
        _full_spec(conv["ew_aug"]), _full_spec(conv["wih"]), _full_spec(conv["whh"]),
        _full_spec(conv["bih"]), _full_spec(conv["bhh"]),
    ]
    args = [adj, x_src, x_hid, eagg,
            conv["ew_aug"], conv["wih"], conv["whh"], conv["bih"], conv["bhh"]]

    row_spec = pl.BlockSpec((tm, hp), lambda i, k: (i, 0))
    if moe is None:
        kernel = _ggnn_kernel
        out_shape = (jax.ShapeDtypeStruct((n_pad, hp), jnp.float32),
                     jax.ShapeDtypeStruct((n_pad, hp), jnp.bfloat16))
        out_specs = (row_spec, row_spec)
    else:
        kernel = functools.partial(_ggnn_moe_kernel, num_experts=num_experts)
        in_specs += [_full_spec(moe["gw"]), _full_spec(moe["gb"]),
                     _full_spec(moe["w_all"]), _full_spec(moe["b_all"])]
        args += [moe["gw"], moe["gb"], moe["w_all"], moe["b_all"]]
        out_shape = jax.ShapeDtypeStruct((n_pad, hp), jnp.float32)
        out_specs = row_spec

    return pl.pallas_call(
        kernel,
        out_shape=out_shape,
        grid_spec=pltpu.PrefetchScalarGridSpec(
            num_scalar_prefetch=0,
            grid=grid,
            in_specs=in_specs,
            out_specs=out_specs,
            scratch_shapes=[pltpu.VMEM((tm, hp), jnp.float32)],
        ),
        compiler_params=pltpu.CompilerParams(
            dimension_semantics=("parallel", "arbitrary"),
            vmem_limit_bytes=_vmem_limit_bytes(tm, tk, hp, ead, moe is not None,
                                               max(num_experts, 1)),
        ),
        cost_estimate=_ggnn_cost(n_pad, hp, ead, tm, moe is not None, num_experts),
    )(*args)


# --------------------------------------------------------------------------
# Head kernel: global_mean_pool (tiled over nodes) + proj(ldxb) + fc(cat(...)).
# fc weight is pre-split so the concat becomes a sum of two matmuls.
# --------------------------------------------------------------------------
def _head_kernel(pool_ref, h_ref, ldxb_ref, pw_ref, pb_ref,
                 fwp_ref, fwe_ref, fcb_ref,
                 emb_ref, logits_ref, acc_ref):
    k = pl.program_id(0)

    @pl.when(k == 0)
    def _():
        acc_ref[...] = jnp.zeros_like(acc_ref)

    acc_ref[...] += jnp.dot(pool_ref[...], h_ref[...],
                            preferred_element_type=jnp.float32)

    @pl.when(k == pl.num_programs(0) - 1)
    def _():
        emb = acc_ref[...]                                        # [B, H]
        proj = ldxb_ref[...] * pw_ref[...] + pb_ref[...]          # Linear(1, 100)
        logits = (jnp.dot(proj, fwp_ref[...], preferred_element_type=jnp.float32)
                  + jnp.dot(emb, fwe_ref[...], preferred_element_type=jnp.float32)
                  + fcb_ref[...])
        emb_ref[...] = emb.astype(emb_ref.dtype)
        logits_ref[...] = logits.astype(logits_ref.dtype)


def _head_pallas(pool, h, ldxb, head, tk):
    b_pad, n_pad = pool.shape
    hp = h.shape[1]
    c_pad = head["fcb"].shape[1]
    grid = (n_pad // tk,)
    return pl.pallas_call(
        _head_kernel,
        out_shape=(jax.ShapeDtypeStruct((b_pad, hp), jnp.float32),
                   jax.ShapeDtypeStruct((b_pad, c_pad), jnp.float32)),
        grid_spec=pltpu.PrefetchScalarGridSpec(
            num_scalar_prefetch=0,
            grid=grid,
            in_specs=[
                pl.BlockSpec((b_pad, tk), lambda k: (0, k)),      # pool tile
                pl.BlockSpec((tk, hp), lambda k: (k, 0)),         # node features
                _full_spec(ldxb), _full_spec(head["pw"]), _full_spec(head["pb"]),
                _full_spec(head["fw_pref"]), _full_spec(head["fw_emb"]),
                _full_spec(head["fcb"]),
            ],
            out_specs=(pl.BlockSpec((b_pad, hp), lambda k: (0, 0)),
                       pl.BlockSpec((b_pad, c_pad), lambda k: (0, 0))),
            scratch_shapes=[pltpu.VMEM((b_pad, hp), jnp.float32)],
        ),
        compiler_params=pltpu.CompilerParams(
            dimension_semantics=("arbitrary",),
            vmem_limit_bytes=32 * 1024 * 1024,
        ),
    )(pool, h, ldxb, head["pw"], head["pb"],
      head["fw_pref"], head["fw_emb"], head["fcb"])


# --------------------------------------------------------------------------
# Parameter init (deterministic, synthetic) — padded / packed for the kernels.
# --------------------------------------------------------------------------
def _pack_ggnn(key, h, hp, edge_dim, ead):
    ks = iter(jax.random.split(key, 6))
    rnd = lambda shape: 0.1 * jax.random.normal(next(ks), shape, jnp.float32)
    ew = rnd((edge_dim, h))          # edge_mlp.weight.T
    eb = rnd((h,))                   # edge_mlp.bias
    wih = rnd((h, 3 * h))            # gru.weight_ih.T   (gate order r, z, n)
    whh = rnd((h, 3 * h))            # gru.weight_hh.T
    bih = rnd((3 * h,))
    bhh = rnd((3 * h,))

    # Edge path is reassociated: scat @ (eattr@W + b) == (scat@eattr)@W + deg*b,
    # so stack b under W and feed [sum_in(edge_attr) | in_degree] from the wrapper.
    ew_aug = (jnp.zeros((ead, hp), jnp.float32)
              .at[:edge_dim, :h].set(ew)
              .at[edge_dim, :h].set(eb))

    def pack_gates(w):               # [H, 3H] -> [hp, 3*hp] with 128-wide gate slabs
        out = jnp.zeros((hp, 3 * hp), jnp.float32)
        for g in range(3):
            out = out.at[:h, g * hp:g * hp + h].set(w[:, g * h:(g + 1) * h])
        return out

    def pack_bias(b):
        out = jnp.zeros((1, 3 * hp), jnp.float32)
        for g in range(3):
            out = out.at[0, g * hp:g * hp + h].set(b[g * h:(g + 1) * h])
        return out

    return {"ew_aug": ew_aug,                                     # f32 (tiny K matmul)
            "wih": pack_gates(wih).astype(jnp.bfloat16),
            "whh": pack_gates(whh).astype(jnp.bfloat16),
            "bih": pack_bias(bih), "bhh": pack_bias(bhh)}


def _pack_moe(key, h, hp, num_experts, ne_pad=128):
    ks = iter(jax.random.split(key, 2 + 2 * num_experts))
    rnd = lambda shape: 0.1 * jax.random.normal(next(ks), shape, jnp.float32)
    gw = rnd((h, num_experts))
    gb = rnd((num_experts,))
    gw_p = jnp.zeros((hp, ne_pad), jnp.float32).at[:h, :num_experts].set(gw)
    # padded expert lanes get -1e30 bias -> softmax weight exactly 0
    gb_p = jnp.full((1, ne_pad), -1e30, jnp.float32).at[0, :num_experts].set(gb)
    w_all = jnp.zeros((hp, num_experts * hp), jnp.float32)
    b_all = jnp.zeros((1, num_experts * hp), jnp.float32)
    for e in range(num_experts):
        we = rnd((h, h))             # expert Linear.weight.T
        be = rnd((h,))
        w_all = w_all.at[:h, e * hp:e * hp + h].set(we)
        b_all = b_all.at[0, e * hp:e * hp + h].set(be)
    return {"gw": gw_p.astype(jnp.bfloat16), "gb": gb_p,
            "w_all": w_all.astype(jnp.bfloat16), "b_all": b_all}


def _pack_head(key, h, hp, num_classes, c_pad, proj_dim=100, p_pad=128):
    ks = iter(jax.random.split(key, 4))
    rnd = lambda shape: 0.1 * jax.random.normal(next(ks), shape, jnp.float32)
    pw = rnd((1, proj_dim))                      # proj.weight.T  (Linear(1, 100))
    pb = rnd((proj_dim,))
    fc_w = rnd((num_classes, proj_dim + h))      # fc.weight
    fc_b = rnd((num_classes,))
    return {
        "pw": jnp.zeros((1, p_pad), jnp.float32).at[:, :proj_dim].set(pw),
        "pb": jnp.zeros((1, p_pad), jnp.float32).at[0, :proj_dim].set(pb),
        "fw_pref": (jnp.zeros((p_pad, c_pad), jnp.float32)
                    .at[:proj_dim, :num_classes].set(fc_w[:, :proj_dim].T)),
        "fw_emb": (jnp.zeros((hp, c_pad), jnp.float32)
                   .at[:h, :num_classes].set(fc_w[:, proj_dim:].T)),
        "fcb": jnp.zeros((1, c_pad), jnp.float32).at[0, :num_classes].set(fc_b),
    }


def init_params(key, feat, hidden, num_classes, num_experts, edge_dim=4):
    assert feat == hidden, ("GGNNLayer uses GRUCell(m, x): num_node_features must "
                            "equal hidden_dim (same constraint as the PyTorch module).")
    hp = _round_up(hidden, 128)
    ead = _round_up(edge_dim + 1, 8)             # edge features + in-degree column
    c_pad = _round_up(num_classes, 128)
    k1, k2, k3, k4 = jax.random.split(key, 4)
    return {
        "dims": {"hidden": hidden, "num_classes": num_classes,
                 "edge_dim": edge_dim, "hp": hp, "ead": ead},
        "conv1": _pack_ggnn(k1, hidden, hp, edge_dim, ead),
        "conv2": _pack_ggnn(k2, hidden, hp, edge_dim, ead),
        "moe": _pack_moe(k3, hidden, hp, num_experts),
        "head": _pack_head(k4, hidden, hp, num_classes, c_pad),
        # attention_fc, prefix_generator, prob_dist unused by forward() -> omitted.
    }


# --------------------------------------------------------------------------
# Graph bookkeeping (plain-JAX glue) + full forward.
# --------------------------------------------------------------------------
def build_graph_operators(x, edge_index, edge_attr, batch, n_pad, b_pad,
                          edge_dim, ead):
    n = x.shape[0]
    src, dst = edge_index[0], edge_index[1]
    loops = jnp.arange(n, dtype=src.dtype)                 # add_self_loops
    src_f = jnp.concatenate([src, loops])
    dst_f = jnp.concatenate([dst, loops])

    adj = (jnp.zeros((n_pad, n_pad), jnp.float32)
           .at[dst_f, src_f].add(1.0)                      # aggr='add'
           .astype(jnp.bfloat16))

    # per-destination [sum of edge_attr | in-degree | 0]; self-loops have zero attrs
    eattr_full = jnp.concatenate(
        [edge_attr, jnp.zeros((n, edge_dim), edge_attr.dtype)], axis=0)
    vals = jnp.concatenate(
        [eattr_full,
         jnp.ones((eattr_full.shape[0], 1), jnp.float32),
         jnp.zeros((eattr_full.shape[0], ead - edge_dim - 1), jnp.float32)], axis=1)
    eagg = jnp.zeros((n_pad, ead), jnp.float32).at[dst_f].add(vals)

    pool = jnp.zeros((b_pad, n_pad), jnp.float32).at[batch, jnp.arange(n)].set(1.0)
    counts = jnp.sum(pool, axis=1, keepdims=True)
    pool = pool / jnp.maximum(counts, 1.0)                 # global_mean_pool, NaN-safe
    return adj, eagg, pool


def gnn_with_moe_forward(params, x, edge_index, edge_attr, batch,
                         ldxb_flag, num_graphs, num_experts):
    dims = params["dims"]
    hidden, hp, ead = dims["hidden"], dims["hp"], dims["ead"]
    n, feat = x.shape
    assert feat == hidden

    tm, tk = _pick_tiles()
    n_min = _round_up(n, tm)
    if n_min < tk:                                 # small graph: shrink contraction
        tk = n_min                                 # tile to avoid padding waste
    n_pad = _round_up(n, tk)                       # tk is a multiple of tm
    b_pad = _round_up(max(num_graphs, 1), 8)

    adj, eagg, pool = build_graph_operators(
        x, edge_index, edge_attr, batch, n_pad, b_pad, dims["edge_dim"], ead)

    x_pad = jnp.zeros((n_pad, hp), jnp.float32).at[:n, :feat].set(x)
    x_src = x_pad.astype(jnp.bfloat16)             # bf16 stream for the MXU path

    # conv1 + ReLU (dropout = identity at inference); emits f32 + bf16 copies so
    # conv2 needs no extra HBM cast pass.
    h_f32, h_bf16 = _ggnn_pallas(x_pad, x_src, adj, eagg, params["conv1"], tm, tk)
    # conv2 + ReLU with the MoE fused into the kernel epilogue
    h = _ggnn_pallas(h_f32, h_bf16, adj, eagg, params["conv2"], tm, tk,
                     moe=params["moe"], num_experts=num_experts)

    ldxb = jnp.zeros((b_pad, 1), jnp.float32).at[:num_graphs, 0].set(ldxb_flag)
    emb_p, logits_p = _head_pallas(pool, h, ldxb, params["head"], tk)

    graph_emb = emb_p[:num_graphs, :hidden]
    logits = logits_p[:num_graphs, :dims["num_classes"]]
    return graph_emb, graph_emb, logits, None


if __name__ == "__main__":
    # Small, model-consistent shapes:
    #   num_node_features == hidden_dim (GRUCell(m, x) constraint in GGNNLayer)
    NUM_NODES, NUM_EDGES, NUM_GRAPHS = 16, 24, 2
    FEAT = HIDDEN = 32
    NUM_CLASSES, NUM_EXPERTS, EDGE_DIM = 8, 4, 4

    key = jax.random.PRNGKey(0)
    k_x, k_src, k_dst, k_ea, k_flag, k_par = jax.random.split(key, 6)

    x = jax.random.normal(k_x, (NUM_NODES, FEAT), jnp.float32)
    edge_index = jnp.stack([
        jax.random.randint(k_src, (NUM_EDGES,), 0, NUM_NODES),
        jax.random.randint(k_dst, (NUM_EDGES,), 0, NUM_NODES),
    ]).astype(jnp.int32)
    edge_attr = jax.random.normal(k_ea, (NUM_EDGES, EDGE_DIM), jnp.float32)
    batch = jnp.concatenate([
        jnp.zeros(NUM_NODES // 2, jnp.int32),
        jnp.ones(NUM_NODES - NUM_NODES // 2, jnp.int32)])
    ldxb_flag = jax.random.normal(k_flag, (NUM_GRAPHS,), jnp.float32)

    params = init_params(k_par, FEAT, HIDDEN, NUM_CLASSES, NUM_EXPERTS, EDGE_DIM)

    graph_emb, graph_emb2, logits, extra = gnn_with_moe_forward(
        params, x, edge_index, edge_attr, batch, ldxb_flag,
        NUM_GRAPHS, NUM_EXPERTS)

    jax.block_until_ready((graph_emb, logits))
    assert graph_emb.shape == (NUM_GRAPHS, HIDDEN)
    assert graph_emb2.shape == (NUM_GRAPHS, HIDDEN)
    assert logits.shape == (NUM_GRAPHS, NUM_CLASSES)
    assert bool(jnp.all(jnp.isfinite(graph_emb))) and bool(jnp.all(jnp.isfinite(logits)))
    assert extra is None
    print("KERNEL_OK")
</pallas_src>

<mosaic_0001>
module attributes {stable_mosaic.version = 11 : i64} {
  func.func @_ggnn_kernel(%arg0: i32, %arg1: i32, %arg2: memref<256x256xbf16, #tpu.memory_space<vmem>>, %arg3: memref<256x128xbf16, #tpu.memory_space<vmem>>, %arg4: memref<256x128xf32, #tpu.memory_space<vmem>>, %arg5: memref<256x8xf32, #tpu.memory_space<vmem>>, %arg6: memref<8x128xf32, #tpu.memory_space<vmem>>, %arg7: memref<128x384xbf16, #tpu.memory_space<vmem>>, %arg8: memref<128x384xbf16, #tpu.memory_space<vmem>>, %arg9: memref<1x384xf32, #tpu.memory_space<vmem>>, %arg10: memref<1x384xf32, #tpu.memory_space<vmem>>, %arg11: memref<256x128xf32, #tpu.memory_space<vmem>>, %arg12: memref<256x128xbf16, #tpu.memory_space<vmem>>, %arg13: memref<256x128xf32, #tpu.memory_space<vmem>>) attributes {dimension_semantics = [#tpu.dimension_semantics<parallel>, #tpu.dimension_semantics<arbitrary>], iteration_bounds = array<i64: 1, 1>, scalar_prefetch = 0 : i64, scratch_operands = 1 : i64, tpu.core_type = #tpu.core_type<tc>, window_params = [{transform_indices = @transform_0, window_bounds = array<i64: 256, 256>}, {transform_indices = @transform_1, window_bounds = array<i64: 256, 128>}, {transform_indices = @transform_2, window_bounds = array<i64: 256, 128>}, {transform_indices = @transform_3, window_bounds = array<i64: 256, 8>}, {pipeline_mode = #tpu.pipeline_mode<synchronous>, transform_indices = @transform_4, window_bounds = array<i64: 8, 128>}, {pipeline_mode = #tpu.pipeline_mode<synchronous>, transform_indices = @transform_5, window_bounds = array<i64: 128, 384>}, {pipeline_mode = #tpu.pipeline_mode<synchronous>, transform_indices = @transform_6, window_bounds = array<i64: 128, 384>}, {pipeline_mode = #tpu.pipeline_mode<synchronous>, transform_indices = @transform_7, window_bounds = array<i64: 1, 384>}, {pipeline_mode = #tpu.pipeline_mode<synchronous>, transform_indices = @transform_8, window_bounds = array<i64: 1, 384>}, {transform_indices = @transform_9, window_bounds = array<i64: 256, 128>}, {transform_indices = @transform_10, window_bounds = array<i64: 256, 128>}]} {
    %c0_i32 = arith.constant 0 : i32
    %0 = arith.cmpi eq, %arg1, %c0_i32 : i32
    %1 = arith.extui %0 : i1 to i32
    %c0_i32_0 = arith.constant 0 : i32
    %2 = arith.cmpi ne, %1, %c0_i32_0 : i32
    scf.if %2 {
      %cst_10 = arith.constant 0.000000e+00 : f32
      %12 = vector.broadcast %cst_10 : f32 to vector<256x128xf32>
      %c0_11 = arith.constant 0 : index
      %c0_12 = arith.constant 0 : index
      %13 = vector.load %arg13[%c0_11, %c0_12] : memref<256x128xf32, #tpu.memory_space<vmem>>, vector<256x128xf32>
      tpu.vector_store %arg13[%c0_11, %c0_12], %12 {strides = array<i32>} : memref<256x128xf32, #tpu.memory_space<vmem>>, vector<256x128xf32>,
    } else {
    }
    %c0 = arith.constant 0 : index
    %c0_1 = arith.constant 0 : index
    %3 = vector.load %arg13[%c0, %c0_1] : memref<256x128xf32, #tpu.memory_space<vmem>>, vector<256x128xf32>
    %c0_2 = arith.constant 0 : index
    %c0_3 = arith.constant 0 : index
    %4 = vector.load %arg2[%c0_2, %c0_3] : memref<256x256xbf16, #tpu.memory_space<vmem>>, vector<256x256xbf16>
    %c0_4 = arith.constant 0 : index
    %c0_5 = arith.constant 0 : index
    %5 = vector.load %arg3[%c0_4, %c0_5] : memref<256x128xbf16, #tpu.memory_space<vmem>>, vector<256x128xbf16>
    %cst = arith.constant dense<0.000000e+00> : vector<256x128xf32>
    %6 = tpu.matmul %4, %5, %cst {dimension_numbers = #tpu.dot_dimension_numbers<[1], [0], [0], [1], [0, 0, 1, 1], [], []>} : vector<256x256xbf16>, vector<256x128xbf16>, vector<256x128xf32> -> vector<256x128xf32>
    %7 = arith.addf %3, %6 : vector<256x128xf32>
    %c0_6 = arith.constant 0 : index
    %c0_7 = arith.constant 0 : index
    %8 = vector.load %arg13[%c0_6, %c0_7] : memref<256x128xf32, #tpu.memory_space<vmem>>, vector<256x128xf32>
    tpu.vector_store %arg13[%c0_6, %c0_7], %7 {strides = array<i32>} : memref<256x128xf32, #tpu.memory_space<vmem>>, vector<256x128xf32>,
    %c0_i32_8 = arith.constant 0 : i32
    %9 = arith.cmpi eq, %arg1, %c0_i32_8 : i32
    %10 = arith.extui %9 : i1 to i32
    %c0_i32_9 = arith.constant 0 : i32
    %11 = arith.cmpi ne, %10, %c0_i32_9 : i32
    scf.if %11 {
      %c0_10 = arith.constant 0 : index
      %c0_11 = arith.constant 0 : index
      %12 = vector.load %arg4[%c0_10, %c0_11] : memref<256x128xf32, #tpu.memory_space<vmem>>, vector<256x128xf32>
      %c0_12 = arith.constant 0 : index
      %c0_13 = arith.constant 0 : index
      %13 = vector.load %arg13[%c0_12, %c0_13] : memref<256x128xf32, #tpu.memory_space<vmem>>, vector<256x128xf32>
      %c0_14 = arith.constant 0 : index
      %c0_15 = arith.constant 0 : index
      %14 = vector.load %arg5[%c0_14, %c0_15] : memref<256x8xf32, #tpu.memory_space<vmem>>, vector<256x8xf32>
      %c0_16 = arith.constant 0 : index
      %c0_17 = arith.constant 0 : index
      %15 = vector.load %arg6[%c0_16, %c0_17] : memref<8x128xf32, #tpu.memory_space<vmem>>, vector<8x128xf32>
      %cst_18 = arith.constant dense<0.000000e+00> : vector<256x128xf32>
      %16 = tpu.matmul %14, %15, %cst_18 {dimension_numbers = #tpu.dot_dimension_numbers<[1], [0], [0], [1], [0, 0, 1, 1], [], []>} : vector<256x8xf32>, vector<8x128xf32>, vector<256x128xf32> -> vector<256x128xf32>
      %17 = arith.addf %13, %16 : vector<256x128xf32>
      %18 = arith.truncf %17 : vector<256x128xf32> to vector<256x128xbf16>
      %c0_19 = arith.constant 0 : index
      %c0_20 = arith.constant 0 : index
      %19 = vector.load %arg7[%c0_19, %c0_20] : memref<128x384xbf16, #tpu.memory_space<vmem>>, vector<128x384xbf16>
      %cst_21 = arith.constant dense<0.000000e+00> : vector<256x384xf32>
      %20 = tpu.matmul %18, %19, %cst_21 {dimension_numbers = #tpu.dot_dimension_numbers<[1], [0], [0], [1], [0, 0, 1, 1], [], []>} : vector<256x128xbf16>, vector<128x384xbf16>, vector<256x384xf32> -> vector<256x384xf32>
      %c0_22 = arith.constant 0 : index
      %c0_23 = arith.constant 0 : index
      %21 = vector.load %arg9[%c0_22, %c0_23] : memref<1x384xf32, #tpu.memory_space<vmem>>, vector<1x384xf32>
      %22 = vector.broadcast %21 : vector<1x384xf32> to vector<256x384xf32>
      %23 = arith.addf %20, %22 : vector<256x384xf32>
      %24 = arith.truncf %12 : vector<256x128xf32> to vector<256x128xbf16>
      %c0_24 = arith.constant 0 : index
      %c0_25 = arith.constant 0 : index
      %25 = vector.load %arg8[%c0_24, %c0_25] : memref<128x384xbf16, #tpu.memory_space<vmem>>, vector<128x384xbf16>
      %cst_26 = arith.constant dense<0.000000e+00> : vector<256x384xf32>
      %26 = tpu.matmul %24, %25, %cst_26 {dimension_numbers = #tpu.dot_dimension_numbers<[1], [0], [0], [1], [0, 0, 1, 1], [], []>} : vector<256x128xbf16>, vector<128x384xbf16>, vector<256x384xf32> -> vector<256x384xf32>
      %c0_27 = arith.constant 0 : index
      %c0_28 = arith.constant 0 : index
      %27 = vector.load %arg10[%c0_27, %c0_28] : memref<1x384xf32, #tpu.memory_space<vmem>>, vector<1x384xf32>
      %28 = vector.broadcast %27 : vector<1x384xf32> to vector<256x384xf32>
      %29 = arith.addf %26, %28 : vector<256x384xf32>
      %30 = vector.extract_strided_slice %23 {offsets = [0, 0], sizes = [256, 128], strides = [1, 1]} : vector<256x384xf32> to vector<256x128xf32>
      %31 = vector.extract_strided_slice %23 {offsets = [0, 128], sizes = [256, 128], strides = [1, 1]} : vector<256x384xf32> to vector<256x128xf32>
      %32 = vector.extract_strided_slice %23 {offsets = [0, 256], sizes = [256, 128], strides = [1, 1]} : vector<256x384xf32> to vector<256x128xf32>
      %33 = vector.extract_strided_slice %29 {offsets = [0, 0], sizes = [256, 128], strides = [1, 1]} : vector<256x384xf32> to vector<256x128xf32>
      %34 = vector.extract_strided_slice %29 {offsets = [0, 128], sizes = [256, 128], strides = [1, 1]} : vector<256x384xf32> to vector<256x128xf32>
      %35 = vector.extract_strided_slice %29 {offsets = [0, 256], sizes = [256, 128], strides = [1, 1]} : vector<256x384xf32> to vector<256x128xf32>
      %36 = arith.addf %30, %33 : vector<256x128xf32>
      %37 = arith.negf %36 : vector<256x128xf32>
      %38 = math.exp %37 : vector<256x128xf32>
      %cst_29 = arith.constant 1.000000e+00 : f32
      %39 = vector.broadcast %cst_29 : f32 to vector<256x128xf32>
      %40 = arith.addf %39, %38 : vector<256x128xf32>
      %41 = arith.divf %39, %40 : vector<256x128xf32>
      %42 = arith.addf %31, %34 : vector<256x128xf32>
      %43 = arith.negf %42 : vector<256x128xf32>
      %44 = math.exp %43 : vector<256x128xf32>
      %cst_30 = arith.constant 1.000000e+00 : f32
      %45 = vector.broadcast %cst_30 : f32 to vector<256x128xf32>
      %46 = arith.addf %45, %44 : vector<256x128xf32>
      %47 = arith.divf %45, %46 : vector<256x128xf32>
      %48 = arith.mulf %41, %35 : vector<256x128xf32>
      %49 = arith.addf %32, %48 : vector<256x128xf32>
      %50 = math.tanh %49 : vector<256x128xf32>
      %cst_31 = arith.constant 1.000000e+00 : f32
      %51 = vector.broadcast %cst_31 : f32 to vector<256x128xf32>
      %52 = arith.subf %51, %47 : vector<256x128xf32>
      %53 = arith.mulf %52, %50 : vector<256x128xf32>
      %54 = arith.mulf %47, %12 : vector<256x128xf32>
      %55 = arith.addf %53, %54 : vector<256x128xf32>
      %cst_32 = arith.constant 0.000000e+00 : f32
      %56 = vector.broadcast %cst_32 : f32 to vector<256x128xf32>
      %57 = arith.maximumf %55, %56 : vector<256x128xf32>
      %c0_33 = arith.constant 0 : index
      %c0_34 = arith.constant 0 : index
      %58 = vector.load %arg11[%c0_33, %c0_34] : memref<256x128xf32, #tpu.memory_space<vmem>>, vector<256x128xf32>
      tpu.vector_store %arg11[%c0_33, %c0_34], %57 {strides = array<i32>} : memref<256x128xf32, #tpu.memory_space<vmem>>, vector<256x128xf32>,
      %59 = arith.truncf %57 : vector<256x128xf32> to vector<256x128xbf16>
      %c0_35 = arith.constant 0 : index
      %c0_36 = arith.constant 0 : index
      %60 = vector.load %arg12[%c0_35, %c0_36] : memref<256x128xbf16, #tpu.memory_space<vmem>>, vector<256x128xbf16>
      tpu.vector_store %arg12[%c0_35, %c0_36], %59 {strides = array<i32>} : memref<256x128xbf16, #tpu.memory_space<vmem>>, vector<256x128xbf16>,
    } else {
    }
    return
  }
  func.func @transform_0(%arg0: i32, %arg1: i32) -> (i32, i32) {
    %c0_i32 = arith.constant 0 : i32
    return %arg0, %arg1 : i32, i32
  }
  func.func @transform_1(%arg0: i32, %arg1: i32) -> (i32, i32) {
    %c0_i32 = arith.constant 0 : i32
    %c0_i32_0 = arith.constant 0 : i32
    return %arg1, %c0_i32 : i32, i32
  }
  func.func @transform_2(%arg0: i32, %arg1: i32) -> (i32, i32) {
    %c0_i32 = arith.constant 0 : i32
    %c0_i32_0 = arith.constant 0 : i32
    return %arg0, %c0_i32 : i32, i32
  }
  func.func @transform_3(%arg0: i32, %arg1: i32) -> (i32, i32) {
    %c0_i32 = arith.constant 0 : i32
    %c0_i32_0 = arith.constant 0 : i32
    return %arg0, %c0_i32 : i32, i32
  }
  func.func @transform_4(%arg0: i32, %arg1: i32) -> (i32, i32) {
    %c0_i32 = arith.constant 0 : i32
    %c0_i32_0 = arith.constant 0 : i32
    %c0_i32_1 = arith.constant 0 : i32
    return %c0_i32, %c0_i32_0 : i32, i32
  }
  func.func @transform_5(%arg0: i32, %arg1: i32) -> (i32, i32) {
    %c0_i32 = arith.constant 0 : i32
    %c0_i32_0 = arith.constant 0 : i32
    %c0_i32_1 = arith.constant 0 : i32
    return %c0_i32, %c0_i32_0 : i32, i32
  }
  func.func @transform_6(%arg0: i32, %arg1: i32) -> (i32, i32) {
    %c0_i32 = arith.constant 0 : i32
    %c0_i32_0 = arith.constant 0 : i32
    %c0_i32_1 = arith.constant 0 : i32
    return %c0_i32, %c0_i32_0 : i32, i32
  }
  func.func @transform_7(%arg0: i32, %arg1: i32) -> (i32, i32) {
    %c0_i32 = arith.constant 0 : i32
    %c0_i32_0 = arith.constant 0 : i32
    %c0_i32_1 = arith.constant 0 : i32
    return %c0_i32, %c0_i32_0 : i32, i32
  }
  func.func @transform_8(%arg0: i32, %arg1: i32) -> (i32, i32) {
    %c0_i32 = arith.constant 0 : i32
    %c0_i32_0 = arith.constant 0 : i32
    %c0_i32_1 = arith.constant 0 : i32
    return %c0_i32, %c0_i32_0 : i32, i32
  }
  func.func @transform_9(%arg0: i32, %arg1: i32) -> (i32, i32) {
    %c0_i32 = arith.constant 0 : i32
    %c0_i32_0 = arith.constant 0 : i32
    return %arg0, %c0_i32 : i32, i32
  }
  func.func @transform_10(%arg0: i32, %arg1: i32) -> (i32, i32) {
    %c0_i32 = arith.constant 0 : i32
    %c0_i32_0 = arith.constant 0 : i32
    return %arg0, %c0_i32 : i32, i32
  }
}

</mosaic_0001>

<bundles_post_ra>
// kernel: tpu_custom_call.1
= control target key start
LH: loop header
LB: loop body
LE: loop exit
PB: predicated region body
PF: predicated region fallthrough
CT: control target
= control target key end

     0   :  { %16 = vsyncpa [#allocation4], 0  ;;  %s6139_s0 = inlined_call_operand.vmem [shape: bf16[256,256], index: 0, kind: input, shape index: {}]   ;;  %s6140_s1 = inlined_call_operand.hbm [shape: bf16[256,128], index: 1, kind: input, shape index: {}]   ;;  %s6141_s2 = inlined_call_operand.hbm [shape: f32[256,128], index: 2, kind: input, shape index: {}]   ;;  %s6142_s3 = inlined_call_operand.vmem [shape: f32[256,8], index: 3, kind: input, shape index: {}]   ;;  %s6143_s4 = inlined_call_operand.vmem [shape: f32[8,128], index: 4, kind: input, shape index: {}]   ;;  %s6144_s5 = inlined_call_operand.hbm [shape: bf16[128,384], index: 5, kind: input, shape index: {}]   ;;  %s6145_s6 = inlined_call_operand.hbm [shape: bf16[128,384], index: 6, kind: input, shape index: {}]   ;;  %s6146_s7 = inlined_call_operand.vmem [shape: f32[1,384], index: 7, kind: input, shape index: {}]   ;;  %s6147_s8 = inlined_call_operand.vmem [shape: f32[1,384], index: 8, kind: input, shape index: {}]   ;;  %s6148_s9 = inlined_call_operand.hbm [shape: f32[256,128], index: 9, kind: output, shape index: {0}]   ;;  %s6149_s10 = inlined_call_operand.hbm [shape: bf16[256,128], index: 10, kind: output, shape index: {1}]  }
   0x1   :  { %17 = vsyncpa [#allocation7], 0 }
   0x2   :  { %18 = vsyncpa [#allocation10], 0 }
   0x3   :  { %19 = vsyncpa [#allocation5], 0 }
   0x4   :  { %20 = vsyncpa [#allocation13], 0  ;;  %s4515_s13 = smov [#allocation6]  }
   0x5   :  { %s40_s14 = sshll.u32 %s4515_s13, 4  ;;  %s41_s14 = int_to_ptr.vmem [resolvable:$true] %s40_s14 }
   0x6   :  { %s4393_s15 = scalar_lea.vmem %s41_s14, 4096  ;;  %p4398_p1 = scmp.lt.s32.totalorder %s41_s14, %s41_s14 }
   0x7   :  { %p4394_p0 = scmp.ne.s32.totalorder %s41_s14, %s4393_s15  ;;  %p4399_p2 = scmp.lt.s32.totalorder %s4393_s15, %s4393_s15 }
   0x9   :  { %p4400_p3 = por %p4399_p2, %p4398_p1 }
   0xb   :  { %p4401_p4 = pnand %p4400_p3, %p4394_p0 }
   0xd   :  { %4404 = shalt.err (!%p4401_p4)
}
   0xe   :  { %s4516_s16 = smov 128   ;;  %s4517_s17 = smov 8  }
   0xf   :  { %46 = dma.hbm_to_vmem [thread:$0]  %s6141_s2, 4096, %s41_s14, [#allocation7], %s4516_s16, %s4516_s16, %s4517_s17  }
  0x10   :  { %s4518_s20 = smov [#allocation3]  }
  0x11   :  { %s28_s21 = sshll.u32 %s4518_s20, 4  ;;  %s29_s21 = int_to_ptr.vmem [resolvable:$true] %s28_s21 }
  0x12   :  { %s4413_s22 = scalar_lea.vmem %s29_s21, 2048  ;;  %p4418_p6 = scmp.lt.s32.totalorder %s29_s21, %s29_s21 }
  0x13   :  { %p4414_p5 = scmp.ne.s32.totalorder %s29_s21, %s4413_s22  ;;  %p4419_p7 = scmp.lt.s32.totalorder %s4413_s22, %s4413_s22 }
  0x15   :  { %p4420_p8 = por %p4419_p7, %p4418_p6 }
  0x17   :  { %p4421_p9 = pnand %p4420_p8, %p4414_p5 }
  0x19   :  { %4424 = shalt.err (!%p4421_p9)
}
  0x1a   :  { %s4519_s23 = smov 64   ;;  %s4520_s24 = smov 4  }
  0x1b   :  { %34 = dma.hbm_to_vmem [thread:$0]  %s6140_s1, 2048, %s29_s21, [#allocation4], %s4519_s23, %s4519_s23, %s4520_s24  }
  0x1c   :  { %s4521_s2 = smov [#allocation8]  }
  0x1d   :  { %s56_s27 = sshll.u32 %s4521_s2, 4  ;;  %s57_s27 = int_to_ptr.vmem [resolvable:$true] %s56_s27 }
  0x1e   :  { %s4433_s28 = scalar_lea.vmem %s57_s27, 3072  ;;  %p4438_p11 = scmp.lt.s32.totalorder %s57_s27, %s57_s27 }
  0x1f   :  { %p4434_p10 = scmp.ne.s32.totalorder %s57_s27, %s4433_s28  ;;  %p4439_p12 = scmp.lt.s32.totalorder %s4433_s28, %s4433_s28 }
  0x21   :  { %p4440_p13 = por %p4439_p12, %p4438_p11 }
  0x23   :  { %p4441_p0 = pnand %p4440_p13, %p4434_p10 }
  0x25   :  { %4444 = shalt.err (!%p4441_p0)
}
  0x26   :  { %s4522_s29 = smov 192   ;;  %s4523_s30 = smov 12  }
  0x27   :  { %62 = dma.hbm_to_vmem [thread:$0]  %s6144_s5, 3072, %s57_s27, [#allocation7], %s4522_s29, %s4522_s29, %s4523_s30  }
  0x28   :  { %s4524_s13 = smov [#allocation9]  }
  0x29   :  { %s68_s14 = sshll.u32 %s4524_s13, 4  ;;  %s69_s14 = int_to_ptr.vmem [resolvable:$true] %s68_s14 }
  0x2a   :  { %s4453_s1 = scalar_lea.vmem %s69_s14, 3072  ;;  %p4458_p2 = scmp.lt.s32.totalorder %s69_s14, %s69_s14 }
  0x2b   :  { %p4454_p1 = scmp.ne.s32.totalorder %s69_s14, %s4453_s1  ;;  %p4459_p3 = scmp.lt.s32.totalorder %s4453_s1, %s4453_s1 }
  0x2d   :  { %p4460_p4 = por %p4459_p3, %p4458_p2 }
  0x2f   :  { %p4461_p5 = pnand %p4460_p4, %p4454_p1 }
  0x31   :  { %4464 = shalt.err (!%p4461_p5)
}
  0x32   :  { %74 = dma.hbm_to_vmem [thread:$0]  %s6145_s6, 3072, %s69_s14, [#allocation10], %s4522_s29, %s4522_s29, %s4523_s30  }
  0x33   :  { %4505 = dma.done.wait [#allocation4], 2048  }
  0x34   :  { %4506 = vsyncadd [#allocation4], 4294965248 }
  0x35   :  { %4507 = dma.done.wait [#allocation7], 7168  }
  0x36   :  { %4508 = vsyncadd [#allocation7], 4294960128 }
  0x37   :  { %4509 = dma.done.wait [#allocation10], 3072  }
  0x38   :  { %4510 = vsyncadd [#allocation10], 4294964224  ;;  %v3905_v0 = vld [vmem:[#allocation3 + $0x78] sm:$0xff]   ;;  %v3907_v2 = vld [vmem:[#allocation3 + $0x70] sm:$0xff]   ;;  %vm805_vm0 = vcmask 64512   ;;  %s4527_s22 = smov [#allocation12]  }
  0x39   :  { %v3906_v1 = vld [vmem:[#allocation3 + $0x38] sm:$0xff]   ;;  %3535 = vmatprep.subr.bf16.mxu0 %v3905_v0  ;;  %v3908_v3 = vld [vmem:[#allocation3 + $0x30] sm:$0xff]   ;;  %v3909_v4 = vld [vmem:[#allocation3 + $0x68] sm:$0xff]  }
  0x3a   :  { %3536 = vmatpush3.bf16.msra.mxu0 %v3906_v1  ;;  %v3910_v5 = vld [vmem:[#allocation3 + $0x28] sm:$0xff]   ;;  %v3911_v6 = vld [vmem:[#allocation3 + $0x60] sm:$0xff]   ;;  %v3913_v8 = vld [vmem:[#allocation3 + $0x58] sm:$0xff]  }
  0x3b   :  { %3537 = vmatprep.subr.bf16.mxu0 %v3907_v2  ;;  %v3912_v7 = vld [vmem:[#allocation3 + $0x20] sm:$0xff]   ;;  %v3914_v9 = vld [vmem:[#allocation3 + $0x18] sm:$0xff]   ;;  %v3915_v10 = vld [vmem:[#allocation3 + $0x50] sm:$0xff]  }
  0x3c   :  { %v3923_v11 = vld [vmem:[%s6139_s0 + $0x4] ss:$8 sps:$4 sm:$0xff]   ;;  %v3916_v13 = vld [vmem:[#allocation3 + $0x10] sm:$0xff]   ;;  %v3921_v20 = vld [vmem:[%s6139_s0] ss:$8 sps:$4 sm:$0xff]  }
  0x3d   :  { %v804_v12 = vld [vmem:[%s6143_s4] sm:$0xff]  ;;  %512 = vmatprep.mubr.bf16.mxu0 %v3923_v11  ;;  %v3917_v14 = vld [vmem:[#allocation3 + $0x48] sm:$0xff]   ;;  %v3924_v21 = vld [vmem:[%s6139_s0 + $0x14] ss:$8 sps:$4 sm:$0xff]   ;;  %s3166_s4 = sshll.u32 %s4527_s22, 4  ;;  %s3167_s4 = int_to_ptr.vmem [resolvable:$true] %s3166_s4 }
  0x3e   :  { %3538 = vmatpush3.bf16.msra.mxu0 %v3908_v3  ;;  %3874 = vmatprep.subr.mxu1 %v804_v12  ;;  %v3918_v15 = vld [vmem:[#allocation3 + $0x8] sm:$0xff]   ;;  %v3919_v16 = vld [vmem:[#allocation3 + $0x40] sm:$0xff]   ;;  %v790_v22 = vld [vmem:[%s6142_s3 + $0x90] sm:$0xff] }
  0x3f   :  { %3539 = vmatprep.subr.bf16.mxu0 %v3909_v4  ;;  %3875 = vmatpush3.msra.mxu1 %v804_v12  ;;  %v3920_v17 = vld [vmem:[#allocation3] sm:$0xff]   ;;  %v789_v19 = vld [vmem:[%s6142_s3 + $0x88] sm:$0xff]  ;;  %v791_v23 = vld [vmem:[%s6142_s3 + $0x98] sm:$0xff] }
  0x40   :  { %v788_v18 = vld [vmem:[%s6142_s3 + $0x80] sm:$0xff]  ;;  %v793_v25 = vld [vmem:[%s6142_s3 + $0xa8] sm:$0xff]  ;;  %v794_v26 = vld [vmem:[%s6142_s3 + $0xb0] sm:$0xff] }
  0x41   :  { %3754 = vmatprep.mubr.msk.f32.mxu1 %vm805_vm0, %v788_v18  ;;  %v792_v24 = vld [vmem:[%s6142_s3 + $0xa0] sm:$0xff]  ;;  %v3926_v27 = vld [vmem:[%s6139_s0 + $0x10] ss:$8 sps:$4 sm:$0xff]   ;;  %v797_v31 = vld [vmem:[%s6142_s3 + $0xc8] sm:$0xff] }
  0x42   :  { %3540 = vmatpush3.bf16.msra.mxu0 %v3910_v5  ;;  %3755 = vmatmul.mubr.msk.f32.vlgmr.msra.gmra.mxu1 %vm805_vm0, %v789_v19  ;;  %v3927_v28 = vld [vmem:[%s6139_s0 + $0x24] ss:$8 sps:$4 sm:$0xff]   ;;  %v795_v29 = vld [vmem:[%s6142_s3 + $0xb8] sm:$0xff]  ;;  %v798_v32 = vld [vmem:[%s6142_s3 + $0xd0] sm:$0xff] }
  0x43   :  { %3541 = vmatprep.subr.bf16.mxu0 %v3911_v6  ;;  %3757 = vmatprep.mubr.msk.f32.mxu1 %vm805_vm0, %v790_v22  ;;  %v796_v30 = vld [vmem:[%s6142_s3 + $0xc0] sm:$0xff]  ;;  %v3930_v34 = vld [vmem:[%s6139_s0 + $0x34] ss:$8 sps:$4 sm:$0xff]   ;;  %v801_v37 = vld [vmem:[%s6142_s3 + $0xe8] sm:$0xff] }
  0x44   :  { %v3929_v33 = vld [vmem:[%s6139_s0 + $0x20] ss:$8 sps:$4 sm:$0xff]   ;;  %v799_v35 = vld [vmem:[%s6142_s3 + $0xd8] sm:$0xff]  ;;  %v802_v38 = vld [vmem:[%s6142_s3 + $0xf0] sm:$0xff] }
  0x45   :  { %v800_v36 = vld [vmem:[%s6142_s3 + $0xe0] sm:$0xff]  ;;  %v3932_v39 = vld [vmem:[%s6139_s0 + $0x30] ss:$8 sps:$4 sm:$0xff]   ;;  %v3936_v43 = vld [vmem:[%s6139_s0 + $0x54] ss:$8 sps:$4 sm:$0xff]  }
  0x46   :  { %3542 = vmatpush3.bf16.msra.mxu0 %v3912_v7  ;;  %3758 = vmatmul.mubr.msk.f32.gmra.mxu1 %vm805_vm0, %v791_v23  ;;  %v3933_v40 = vld [vmem:[%s6139_s0 + $0x44] ss:$8 sps:$4 sm:$0xff]   ;;  %v803_v41 = vld [vmem:[%s6142_s3 + $0xf8] sm:$0xff]  ;;  %v3935_v42 = vld [vmem:[%s6139_s0 + $0x40] ss:$8 sps:$4 sm:$0xff]  }
  0x47   :  { %3543 = vmatprep.subr.bf16.mxu0 %v3913_v8  ;;  %3760 = vmatprep.mubr.msk.f32.mxu1 %vm805_vm0, %v792_v24  ;;  %v3938_v44 = vld [vmem:[%s6139_s0 + $0x50] ss:$8 sps:$4 sm:$0xff]   ;;  %v3939_v45 = vld [vmem:[%s6139_s0 + $0x64] ss:$8 sps:$4 sm:$0xff]   ;;  %v3941_v46 = vld [vmem:[%s6139_s0 + $0x60] ss:$8 sps:$4 sm:$0xff]  }
  0x48   :  { %v3942_v47 = vld [vmem:[%s6139_s0 + $0x74] ss:$8 sps:$4 sm:$0xff]   ;;  %v3944_v48 = vld [vmem:[%s6139_s0 + $0x70] ss:$8 sps:$4 sm:$0xff]   ;;  %v3945_v49 = vld [vmem:[%s6139_s0 + $0x84] ss:$8 sps:$4 sm:$0xff]  }
  0x49   :  { %v3947_v50 = vld [vmem:[%s6139_s0 + $0x80] ss:$8 sps:$4 sm:$0xff]   ;;  %v3948_v51 = vld [vmem:[%s6139_s0 + $0x94] ss:$8 sps:$4 sm:$0xff]   ;;  %v3950_v52 = vld [vmem:[%s6139_s0 + $0x90] ss:$8 sps:$4 sm:$0xff]  }
  0x4a   :  { %3544 = vmatpush3.bf16.msra.mxu0 %v3914_v9  ;;  %3761 = vmatmul.mubr.msk.f32.gmra.mxu1 %vm805_vm0, %v793_v25  ;;  %v3951_v53 = vld [vmem:[%s6139_s0 + $0xa4] ss:$8 sps:$4 sm:$0xff]   ;;  %v3953_v54 = vld [vmem:[%s6139_s0 + $0xa0] ss:$8 sps:$4 sm:$0xff]   ;;  %v3954_v55 = vld [vmem:[%s6139_s0 + $0xb4] ss:$8 sps:$4 sm:$0xff]  }
  0x4b   :  { %3545 = vmatprep.subr.bf16.mxu0 %v3915_v10  ;;  %3763 = vmatprep.mubr.msk.f32.mxu1 %vm805_vm0, %v794_v26  ;;  %v3956_v56 = vld [vmem:[%s6139_s0 + $0xb0] ss:$8 sps:$4 sm:$0xff]   ;;  %v3957_v57 = vld [vmem:[%s6139_s0 + $0xc4] ss:$8 sps:$4 sm:$0xff]   ;;  %v3959_v58 = vld [vmem:[%s6139_s0 + $0xc0] ss:$8 sps:$4 sm:$0xff]  }
  0x4c   :  { %v3960_v59 = vld [vmem:[%s6139_s0 + $0xd4] ss:$8 sps:$4 sm:$0xff]   ;;  %v3962_v60 = vld [vmem:[%s6139_s0 + $0xd0] ss:$8 sps:$4 sm:$0xff]   ;;  %v3963_v61 = vld [vmem:[%s6139_s0 + $0xe4] ss:$8 sps:$4 sm:$0xff]  }
  0x4d   :  { %v3965_v62 = vld [vmem:[%s6139_s0 + $0xe0] ss:$8 sps:$4 sm:$0xff]   ;;  %v3966_v63 = vld [vmem:[%s6139_s0 + $0xf4] ss:$8 sps:$4 sm:$0xff]   ;;  %v3968_v0 = vld [vmem:[%s6139_s0 + $0xf0] ss:$8 sps:$4 sm:$0xff]  }
  0x4e   :  { %3546 = vmatpush3.bf16.msra.mxu0 %v3916_v13  ;;  %3764 = vmatmul.mubr.msk.f32.gmra.mxu1 %vm805_vm0, %v795_v29  ;;  %v772_v1 = vld [vmem:[%s6142_s3] sm:$0xff]  ;;  %v773_v2 = vld [vmem:[%s6142_s3 + $0x8] sm:$0xff]  ;;  %v774_v3 = vld [vmem:[%s6142_s3 + $0x10] sm:$0xff] }
  0x4f   :  { %3547 = vmatprep.subr.bf16.mxu0 %v3917_v14  ;;  %3766 = vmatprep.mubr.msk.f32.mxu1 %vm805_vm0, %v796_v30  ;;  %v775_v4 = vld [vmem:[%s6142_s3 + $0x18] sm:$0xff]  ;;  %v776_v5 = vld [vmem:[%s6142_s3 + $0x20] sm:$0xff]  ;;  %v777_v6 = vld [vmem:[%s6142_s3 + $0x28] sm:$0xff] }
  0x50   :  { %v778_v7 = vld [vmem:[%s6142_s3 + $0x30] sm:$0xff]  ;;  %v779_v8 = vld [vmem:[%s6142_s3 + $0x38] sm:$0xff]  ;;  %v780_v9 = vld [vmem:[%s6142_s3 + $0x40] sm:$0xff] }
  0x51   :  { %v781_v10 = vld [vmem:[%s6142_s3 + $0x48] sm:$0xff]  ;;  %v782_v11 = vld [vmem:[%s6142_s3 + $0x50] sm:$0xff]  ;;  %v784_v13 = vld [vmem:[%s6142_s3 + $0x60] sm:$0xff] }
  0x52   :  { %3548 = vmatpush3.bf16.msra.mxu0 %v3918_v15  ;;  %3767 = vmatmul.mubr.msk.f32.gmra.mxu1 %vm805_vm0, %v797_v31  ;;  %v785_v14 = vld [vmem:[%s6142_s3 + $0x68] sm:$0xff]  ;;  %v786_v15 = vld [vmem:[%s6142_s3 + $0x70] sm:$0xff]  ;;  %v3979_v23 = vld [vmem:[#allocation8 + $0x98] ss:$12 sps:$4 sm:$0xff]  }
  0x53   :  { %3549 = vmatprep.subr.bf16.mxu0 %v3919_v16  ;;  %3769 = vmatprep.mubr.msk.f32.mxu1 %vm805_vm0, %v798_v32  ;;  %v787_v16 = vld [vmem:[%s6142_s3 + $0x78] sm:$0xff]  ;;  %v3969_v18 = vld [vmem:[#allocation8 + $0xa8] ss:$12 sps:$4 sm:$0xff]   ;;  %v3982_v25 = vld [vmem:[#allocation8 + $0x64] ss:$12 sps:$4 sm:$0xff]  }
  0x54   :  { %v3974_v19 = vld [vmem:[#allocation8 + $0x94] ss:$12 sps:$4 sm:$0xff]   ;;  %v3978_v22 = vld [vmem:[#allocation8 + $0x7c] ss:$12 sps:$4 sm:$0xff]   ;;  %v3976_v24 = vld [vmem:[#allocation8 + $0x78] ss:$12 sps:$4 sm:$0xff]  }
  0x55   :  { %v3983_v26 = vld [vmem:[#allocation8 + $0x80] ss:$12 sps:$4 sm:$0xff]   ;;  %v3987_v29 = vld [vmem:[#allocation8 + $0x68] ss:$12 sps:$4 sm:$0xff]   ;;  %v3991_v32 = vld [vmem:[#allocation8 + $0x50] ss:$12 sps:$4 sm:$0xff]  }
  0x56   :  { %3550 = vmatpush3.bf16.msra.mxu0 %v3920_v17  ;;  %3770 = vmatmul.mubr.msk.f32.gmra.mxu1 %vm805_vm0, %v799_v35  ;;  %v3971_v17 = vld [vmem:[#allocation8 + $0xac] ss:$12 sps:$4 sm:$0xff]   ;;  %v3984_v30 = vld [vmem:[#allocation8 + $0x48] ss:$12 sps:$4 sm:$0xff]  }
  0x57   :  { %3728 = vmatprep.subr.mxu0 %v804_v12  ;;  %3772 = vmatprep.mubr.msk.f32.mxu1 %vm805_vm0, %v800_v36  ;;  %v3990_v31 = vld [vmem:[#allocation8 + $0x34] ss:$12 sps:$4 sm:$0xff]   ;;  %v3995_v35 = vld [vmem:[#allocation8 + $0x38] ss:$12 sps:$4 sm:$0xff]  }
  0x58   :  { %1352 = vmatprep.subr.bf16.mxu1 %v3971_v17  ;;  %v3992_v36 = vld [vmem:[#allocation8 + $0x18] ss:$12 sps:$4 sm:$0xff]  }
  0x59   :  { %513 = vmatmul.mubr.bf16.vlgmr.msra.gmra.mxu0 %v3921_v20  ;;  %1353 = vmatpush1.bf16.msra.mxu1 %v3969_v18  ;;  %v3975_v20 = vld [vmem:[#allocation8 + $0xb0] ss:$12 sps:$4 sm:$0xff]  }
  0x5a   :  { %3729 = vmatpush3.msra.mxu0 %v804_v12  ;;  %520 = vmatprep.mubr.bf16.mxu0 %v3924_v21  ;;  %v783_v12 = vld [vmem:[%s6142_s3 + $0x58] sm:$0xff] }
  0x5b   :  { %3773 = vmatmul.mubr.msk.f32.gmra.mxu1 %vm805_vm0, %v801_v37  ;;  %v3972_v21 = vld [vmem:[#allocation8 + $0x90] ss:$12 sps:$4 sm:$0xff]   ;;  %1354 = vmatprep.subr.bf16.mxu1 %v3974_v19 }
  0x5c   :  { %3775 = vmatprep.mubr.msk.f32.mxu1 %vm805_vm0, %v802_v38  ;;  %3778 = vmatprep.subr.bf16.mxu0 %v3975_v20  ;;  %v3998_v38 = vld [vmem:[#allocation8 + $0x4] ss:$12 sps:$4 sm:$0xff]  }
  0x5d   :  { %1355 = vmatpush1.bf16.msra.mxu1 %v3972_v21 }
  0x5e   :  { %1356 = vmatprep.subr.bf16.mxu1 %v3978_v22 }
  0x5f   :  { %3776 = vmatmul.mubr.msk.f32.gmra.mxu1 %vm805_vm0, %v803_v41  ;;  %v3996_v41 = vld [vmem:[#allocation8] ss:$12 sps:$4 sm:$0xff]  }
  0x61   :  { %521 = vmatmul.mubr.bf16.gmra.mxu0 %v3926_v27  ;;  %1357 = vmatpush1.bf16.msra.mxu1 %v3976_v24  ;;  %v3980_v27 = vld [vmem:[#allocation8 + $0x60] ss:$12 sps:$4 sm:$0xff]  }
  0x62   :  { %528 = vmatprep.mubr.bf16.mxu0 %v3927_v28  ;;  %1358 = vmatprep.subr.bf16.mxu1 %v3982_v25  ;;  %v3986_v28 = vld [vmem:[#allocation8 + $0x4c] ss:$12 sps:$4 sm:$0xff]  }
  0x65   :  { %1359 = vmatpush1.bf16.msra.mxu1 %v3980_v27 }
  0x66   :  { %1360 = vmatprep.subr.bf16.mxu1 %v3986_v28 }
  0x69   :  { %529 = vmatmul.mubr.bf16.gmra.mxu0 %v3929_v33  ;;  %1361 = vmatpush1.bf16.msra.mxu1 %v3984_v30  ;;  %v3988_v33 = vld [vmem:[#allocation8 + $0x30] ss:$12 sps:$4 sm:$0xff]  }
  0x6a   :  { %536 = vmatprep.mubr.bf16.mxu0 %v3930_v34  ;;  %1362 = vmatprep.subr.bf16.mxu1 %v3990_v31  ;;  %v3994_v34 = vld [vmem:[#allocation8 + $0x1c] ss:$12 sps:$4 sm:$0xff]  }
  0x6d   :  { %1363 = vmatpush1.bf16.msra.mxu1 %v3988_v33 }
  0x6e   :  { %1364 = vmatprep.subr.bf16.mxu1 %v3994_v34 }
  0x71   :  { %537 = vmatmul.mubr.bf16.gmra.mxu0 %v3932_v39  ;;  %1365 = vmatpush1.bf16.msra.mxu1 %v3992_v36  ;;  %v3999_v39 = vld [vmem:[#allocation8 + $0x20] ss:$12 sps:$4 sm:$0xff]  }
  0x72   :  { %544 = vmatprep.mubr.bf16.mxu0 %v3933_v40  ;;  %1366 = vmatprep.subr.bf16.mxu1 %v3998_v38 }
  0x75   :  { %1367 = vmatpush1.bf16.msra.mxu1 %v3996_v41 }
  0x79   :  { %545 = vmatmul.mubr.bf16.gmra.mxu0 %v3935_v42 }
  0x7a   :  { %552 = vmatprep.mubr.bf16.mxu0 %v3936_v43 }
  0x81   :  { %553 = vmatmul.mubr.bf16.gmra.mxu0 %v3938_v44  ;;  %v4000_v44 = vld [vmem:[#allocation8 + $0x8] ss:$12 sps:$4 sm:$0xff]  }
  0x82   :  { %560 = vmatprep.mubr.bf16.mxu0 %v3939_v45 }
  0x89   :  { %561 = vmatmul.mubr.bf16.gmra.mxu0 %v3941_v46  ;;  %v4525_v46 = vmov 0  }
  0x8a   :  { %568 = vmatprep.mubr.bf16.mxu0 %v3942_v47  ;;  %1384 = vmatprep.mubr.bf16.mxu1 %v4525_v46 }
  0x91   :  { %569 = vmatmul.mubr.bf16.gmra.mxu0 %v3944_v48  ;;  %v4003_v48 = vld [vmem:[#allocation9 + $0xac] ss:$12 sps:$4 sm:$0xff]  }
  0x92   :  { %576 = vmatprep.mubr.bf16.mxu0 %v3945_v49  ;;  %1899 = vmatprep.subr.bf16.mxu1 %v4003_v48 }
  0x99   :  { %577 = vmatmul.mubr.bf16.gmra.mxu0 %v3947_v50 }
  0x9a   :  { %584 = vmatprep.mubr.bf16.mxu0 %v3948_v51 }
  0xa1   :  { %585 = vmatmul.mubr.bf16.gmra.mxu0 %v3950_v52 }
  0xa2   :  { %592 = vmatprep.mubr.bf16.mxu0 %v3951_v53 }
  0xa9   :  { %593 = vmatmul.mubr.bf16.gmra.mxu0 %v3953_v54 }
  0xaa   :  { %600 = vmatprep.mubr.bf16.mxu0 %v3954_v55 }
  0xb1   :  { %601 = vmatmul.mubr.bf16.gmra.mxu0 %v3956_v56 }
  0xb2   :  { %608 = vmatprep.mubr.bf16.mxu0 %v3957_v57 }
  0xb9   :  { %609 = vmatmul.mubr.bf16.gmra.mxu0 %v3959_v58 }
  0xba   :  { %616 = vmatprep.mubr.bf16.mxu0 %v3960_v59 }
  0xc1   :  { %617 = vmatmul.mubr.bf16.gmra.mxu0 %v3962_v60 }
  0xc2   :  { %624 = vmatprep.mubr.bf16.mxu0 %v3963_v61 }
  0xc9   :  { %625 = vmatmul.mubr.bf16.gmra.mxu0 %v3965_v62 }
  0xca   :  { %632 = vmatprep.mubr.bf16.mxu0 %v3966_v63 }
  0xd1   :  { %633 = vmatmul.mubr.bf16.gmra.mxu0 %v3968_v0 }
  0xd2   :  { %3730 = vmatprep.mubr.msk.f32.mxu0 %vm805_vm0, %v772_v1 }
  0xd9   :  { %3731 = vmatmul.mubr.msk.f32.vlgmr.msra.gmra.mxu0 %vm805_vm0, %v773_v2 }
  0xda   :  { %3733 = vmatprep.mubr.msk.f32.mxu0 %vm805_vm0, %v774_v3  ;;  %3779 = vmatpush3.bf16.msra.mxu0 %v3975_v20 }
  0xdb   :  { %3780 = vmatprep.subr.bf16.mxu0 %v3979_v23 }
  0xdd   :  { %3734 = vmatmul.mubr.msk.f32.gmra.mxu0 %vm805_vm0, %v775_v4 }
  0xde   :  { %3736 = vmatprep.mubr.msk.f32.mxu0 %vm805_vm0, %v776_v5  ;;  %3781 = vmatpush3.bf16.msra.mxu0 %v3979_v23 }
  0xdf   :  { %3782 = vmatprep.subr.bf16.mxu0 %v3983_v26 }
  0xe1   :  { %3737 = vmatmul.mubr.msk.f32.gmra.mxu0 %vm805_vm0, %v777_v6 }
  0xe2   :  { %3739 = vmatprep.mubr.msk.f32.mxu0 %vm805_vm0, %v778_v7  ;;  %3783 = vmatpush3.bf16.msra.mxu0 %v3983_v26 }
  0xe3   :  { %3784 = vmatprep.subr.bf16.mxu0 %v3987_v29 }
  0xe5   :  { %3740 = vmatmul.mubr.msk.f32.gmra.mxu0 %vm805_vm0, %v779_v8 }
  0xe6   :  { %3742 = vmatprep.mubr.msk.f32.mxu0 %vm805_vm0, %v780_v9  ;;  %3785 = vmatpush3.bf16.msra.mxu0 %v3987_v29 }
  0xe7   :  { %3786 = vmatprep.subr.bf16.mxu0 %v3991_v32 }
  0xe9   :  { %3743 = vmatmul.mubr.msk.f32.gmra.mxu0 %vm805_vm0, %v781_v10 }
  0xea   :  { %3745 = vmatprep.mubr.msk.f32.mxu0 %vm805_vm0, %v782_v11  ;;  %3787 = vmatpush3.bf16.msra.mxu0 %v3991_v32 }
  0xeb   :  { %3788 = vmatprep.subr.bf16.mxu0 %v3995_v35 }
  0xed   :  { %3746 = vmatmul.mubr.msk.f32.gmra.mxu0 %vm805_vm0, %v783_v12 }
  0xee   :  { %3748 = vmatprep.mubr.msk.f32.mxu0 %vm805_vm0, %v784_v13  ;;  %3789 = vmatpush3.bf16.msra.mxu0 %v3995_v35 }
  0xef   :  { %3790 = vmatprep.subr.bf16.mxu0 %v3999_v39 }
  0xf1   :  { %3749 = vmatmul.mubr.msk.f32.gmra.mxu0 %vm805_vm0, %v785_v14 }
  0xf2   :  { %3751 = vmatprep.mubr.msk.f32.mxu0 %vm805_vm0, %v786_v15  ;;  %3791 = vmatpush3.bf16.msra.mxu0 %v3999_v39 }
  0xf3   :  { %3792 = vmatprep.subr.bf16.mxu0 %v4000_v44 }
  0xf5   :  { %3752 = vmatmul.mubr.msk.f32.gmra.mxu0 %vm805_vm0, %v787_v16 }
  0xf6   :  { %3793 = vmatpush3.bf16.msra.mxu0 %v4000_v44 }
 0x102   :  { %v3756_v22 = vpop.f32.mrf.mxu1 }
 0x104   :  { %v1048_v25 = vpop.f32.mrf.mxu1 }
 0x106   :  { %v3759_v32 = vpop.f32.mrf.mxu1 }
 0x108   :  { %v1058_v36 = vpop.f32.mrf.mxu1 }
 0x119   :  { %v3551_v37 = vpop.f32.mrf.mxu0 }
 0x11b   :  { %v3552_v40 = vpop.f32.mrf.mxu0 }
 0x11c   :  { %v4828_v42 = vadd.f32 %v3552_v40, %v3551_v37 }
 0x11d   :  { %v4830_v43 = vpop.f32.mrf.mxu0 }
 0x11f   :  { %v4832_v45 = vpop.f32.mrf.mxu0 }
 0x121   :  { %v3557_v47 = vpop.f32.mrf.mxu0 }
 0x123   :  { %v3558_v49 = vpop.f32.mrf.mxu0 }
 0x124   :  { %v4835_v50 = vadd.f32 %v3558_v49, %v3557_v47  ;;  %v3762_v47 = vpop.f32.mrf.mxu1 }
 0x125   :  { %v4837_v51 = vpop.f32.mrf.mxu0 }
 0x127   :  { %v4839_v52 = vpop.f32.mrf.mxu0 }
 0x129   :  { %v3563_v53 = vpop.f32.mrf.mxu0 }
 0x12b   :  { %v3564_v54 = vpop.f32.mrf.mxu0 }
 0x12c   :  { %v4841_v55 = vadd.f32 %v3564_v54, %v3563_v53  ;;  %v1068_v54 = vpop.f32.mrf.mxu1 }
 0x12d   :  { %v4843_v56 = vpop.f32.mrf.mxu0 }
 0x12f   :  { %v4845_v57 = vpop.f32.mrf.mxu0 }
 0x131   :  { %v3569_v58 = vpop.f32.mrf.mxu0 }
 0x133   :  { %v3570_v59 = vpop.f32.mrf.mxu0 }
 0x134   :  { %v4847_v60 = vadd.f32 %v3570_v59, %v3569_v58 }
 0x135   :  { %v4849_v61 = vpop.f32.mrf.mxu0 }
 0x137   :  { %v4851_v62 = vpop.f32.mrf.mxu0 }
 0x139   :  { %v3575_v63 = vpop.f32.mrf.mxu0 }
 0x13b   :  { %v3576_v0 = vpop.f32.mrf.mxu0 }
 0x13c   :  { %v4853_v1 = vadd.f32 %v3576_v0, %v3575_v63 }
 0x13d   :  { %v4855_v2 = vpop.f32.mrf.mxu0 }
 0x13f   :  { %v4857_v3 = vpop.f32.mrf.mxu0 }
 0x141   :  { %v3581_v4 = vpop.f32.mrf.mxu0 }
 0x143   :  { %v3582_v5 = vpop.f32.mrf.mxu0 }
 0x144   :  { %v4859_v6 = vadd.f32 %v3582_v5, %v3581_v4 }
 0x145   :  { %v4861_v7 = vpop.f32.mrf.mxu0 }
 0x147   :  { %v4863_v8 = vpop.f32.mrf.mxu0 }
 0x149   :  { %v3587_v9 = vpop.f32.mrf.mxu0 }
 0x14b   :  { %v3588_v10 = vpop.f32.mrf.mxu0 }
 0x14c   :  { %v4865_v11 = vadd.f32 %v3588_v10, %v3587_v9  ;;  %v3765_v9 = vpop.f32.mrf.mxu1 }
 0x14d   :  { %v4867_v12 = vpop.f32.mrf.mxu0 }
 0x14f   :  { %v4869_v13 = vpop.f32.mrf.mxu0 }
 0x151   :  { %v3593_v14 = vpop.f32.mrf.mxu0 }
 0x153   :  { %v3594_v15 = vpop.f32.mrf.mxu0 }
 0x154   :  { %v4871_v16 = vadd.f32 %v3594_v15, %v3593_v14 }
 0x155   :  { %v3596_v17 = vpop.f32.mrf.mxu0 }
 0x157   :  { %v3597_v18 = vpop.f32.mrf.mxu0 }
 0x158   :  { %v4873_v19 = vadd.f32 %v3597_v18, %v3596_v17  ;;  %v1078_v17 = vpop.f32.mrf.mxu1 }
 0x159   :  { %v3599_v20 = vpop.f32.mrf.mxu0 }
 0x15b   :  { %v3600_v21 = vpop.f32.mrf.mxu0 }
 0x15c   :  { %v3601_v23 = vadd.f32 %v3600_v21, %v3599_v20 }
 0x15d   :  { %v3602_v24 = vpop.f32.mrf.mxu0 }
 0x15e   :  { %v1143_v29 = vadd.f32 %v3601_v23, %v1048_v25  ;;  %v3768_v25 = vpop.f32.mrf.mxu1 }
 0x15f   :  { %v3603_v26 = vpop.f32.mrf.mxu0 }
 0x160   :  { %v3604_v27 = vadd.f32 %v3603_v26, %v3602_v24 }
 0x161   :  { %v3605_v28 = vpop.f32.mrf.mxu0 }
 0x162   :  { %v1144_v30 = vadd.f32 %v3756_v22, %v3604_v27 }
 0x163   :  { %v3606_v31 = vpop.f32.mrf.mxu0 }
 0x164   :  { %v3607_v33 = vadd.f32 %v3606_v31, %v3605_v28  ;;  %v4875_v34 = vpack.c.bf16 %v1144_v30, %v1143_v29  ;;  %v1088_v29 = vpop.f32.mrf.mxu1 }
 0x165   :  { %v3608_v35 = vpop.f32.mrf.mxu0 }
 0x166   :  { %v1145_v40 = vadd.f32 %v3607_v33, %v1058_v36 }
 0x167   :  { %v3609_v37 = vpop.f32.mrf.mxu0 }
 0x168   :  { %v3610_v38 = vadd.f32 %v3609_v37, %v3608_v35  ;;  %v3771_v37 = vpop.f32.mrf.mxu1 }
 0x169   :  { %v3611_v39 = vpop.f32.mrf.mxu0 }
 0x16a   :  { %v1146_v41 = vadd.f32 %v3759_v32, %v3610_v38 }
 0x16b   :  { %v3612_v44 = vpop.f32.mrf.mxu0 }
 0x16c   :  { %v3613_v48 = vadd.f32 %v3612_v44, %v3611_v39  ;;  %v4877_v49 = vpack.c.bf16 %v1146_v41, %v1145_v40  ;;  %v1098_v41 = vpop.f32.mrf.mxu1 }
 0x16d   :  { %v3614_v53 = vpop.f32.mrf.mxu0 }
 0x16e   :  { %v1147_v0 = vadd.f32 %v3613_v48, %v1068_v54 }
 0x16f   :  { %v3615_v58 = vpop.f32.mrf.mxu0 }
 0x170   :  { %v3616_v59 = vadd.f32 %v3615_v58, %v3614_v53 }
 0x171   :  { %v3617_v63 = vpop.f32.mrf.mxu0 }
 0x172   :  { %v1148_v4 = vadd.f32 %v3762_v47, %v3616_v59  ;;  %v3774_v59 = vpop.f32.mrf.mxu1 }
 0x173   :  { %v3618_v5 = vpop.f32.mrf.mxu0 }
 0x174   :  { %v3619_v10 = vadd.f32 %v3618_v5, %v3617_v63  ;;  %v4879_v14 = vpack.c.bf16 %v1148_v4, %v1147_v0  ;;  %v1108_v5 = vpop.f32.mrf.mxu1 }
 0x175   :  { %v3620_v15 = vpop.f32.mrf.mxu0 }
 0x176   :  { %v1149_v22 = vadd.f32 %v3619_v10, %v1078_v17 }
 0x177   :  { %v3621_v18 = vpop.f32.mrf.mxu0 }
 0x178   :  { %v3622_v20 = vadd.f32 %v3621_v18, %v3620_v15 }
 0x179   :  { %v3623_v21 = vpop.f32.mrf.mxu0 }
 0x17a   :  { %v1150_v23 = vadd.f32 %v3765_v9, %v3622_v20 }
 0x17b   :  { %v3624_v24 = vpop.f32.mrf.mxu0 }
 0x17c   :  { %v3625_v26 = vadd.f32 %v3624_v24, %v3623_v21  ;;  %v4881_v27 = vpack.c.bf16 %v1150_v23, %v1149_v22  ;;  %v3777_v21 = vpop.f32.mrf.mxu1 }
 0x17d   :  { %v3626_v28 = vpop.f32.mrf.mxu0 }
 0x17e   :  { %v1151_v33 = vadd.f32 %v3625_v26, %v1088_v29 }
 0x17f   :  { %v3627_v30 = vpop.f32.mrf.mxu0 }
 0x180   :  { %v3628_v31 = vadd.f32 %v3627_v30, %v3626_v28  ;;  %v3556_v30 = vadd.f32 %v4832_v45, %v4830_v43 }
 0x181   :  { %v3629_v32 = vpop.f32.mrf.mxu0 }
 0x182   :  { %v1152_v35 = vadd.f32 %v3768_v25, %v3628_v31  ;;  %v1118_v25 = vpop.f32.mrf.mxu1 }
 0x183   :  { %v3630_v36 = vpop.f32.mrf.mxu0 }
 0x184   :  { %v3631_v38 = vadd.f32 %v3630_v36, %v3629_v32  ;;  %v4883_v39 = vpack.c.bf16 %v1152_v35, %v1151_v33 }
 0x185   :  { %v3632_v40 = vpop.f32.mrf.mxu0 }
 0x186   :  { %v1153_v53 = vadd.f32 %v3631_v38, %v1098_v41  ;;  %v3562_v41 = vadd.f32 %v4839_v52, %v4837_v51  ;;  %v4009_v51 = vld [vmem:[#allocation9 + $0x7c] ss:$12 sps:$4 sm:$0xff]   ;;  %v4903_v52 = vld [vmem:[#allocation9 + $0x98] ss:$12 sps:$4 sm:$0xff]  }
 0x187   :  { %v3633_v44 = vpop.f32.mrf.mxu0 }
 0x188   :  { %v3634_v47 = vadd.f32 %v3633_v44, %v3632_v40  ;;  %v4001_v40 = vld [vmem:[#allocation9 + $0xa8] ss:$12 sps:$4 sm:$0xff]  }
 0x189   :  { %v3635_v48 = vpop.f32.mrf.mxu0 }
 0x18a   :  { %v1154_v54 = vadd.f32 %v3771_v37, %v3634_v47  ;;  %v4006_v47 = vld [vmem:[#allocation9 + $0x94] ss:$12 sps:$4 sm:$0xff]  }
 0x18b   :  { %v3636_v58 = vpop.f32.mrf.mxu0 }
 0x18c   :  { %v3637_v63 = vadd.f32 %v3636_v58, %v3635_v48  ;;  %v4885_v0 = vpack.c.bf16 %v1154_v54, %v1153_v53  ;;  %v4896_v48 = vld [vmem:[#allocation9 + $0xb0] ss:$12 sps:$4 sm:$0xff]   ;;  %v3568_v58 = vadd.f32 %v4845_v57, %v4843_v56  ;;  %v3574_v56 = vadd.f32 %v4851_v62, %v4849_v61 }
 0x18d   :  { %v3638_v4 = vpop.f32.mrf.mxu0  ;;  %3826 = vmatprep.subr.bf16.mxu0 %v4896_v48  ;;  %v3580_v61 = vadd.f32 %v4857_v3, %v4855_v2  ;;  %v3586_v2 = vadd.f32 %v4863_v8, %v4861_v7  ;;  %v4016_v7 = vld [vmem:[#allocation9 + $0x30] ss:$12 sps:$4 sm:$0xff]   ;;  %v3592_v8 = vadd.f32 %v4869_v13, %v4867_v12 }
 0x18e   :  { %v1155_v17 = vadd.f32 %v3637_v63, %v1108_v5  ;;  %v4024_v12 = vld [vmem:[#allocation9 + $0x4] ss:$12 sps:$4 sm:$0xff]  }
 0x18f   :  { %v3639_v9 = vpop.f32.mrf.mxu0 }
 0x190   :  { %v3640_v10 = vadd.f32 %v3639_v9, %v3638_v4  ;;  %v4007_v9 = vld [vmem:[#allocation9 + $0x78] ss:$12 sps:$4 sm:$0xff]  }
 0x191   :  { %v3641_v15 = vpop.f32.mrf.mxu0 }
 0x192   :  { %v1156_v18 = vadd.f32 %v3774_v59, %v3640_v10  ;;  %v4012_v10 = vld [vmem:[#allocation9 + $0x64] ss:$12 sps:$4 sm:$0xff]  }
 0x193   :  { %v3642_v20 = vpop.f32.mrf.mxu0 }
 0x194   :  { %v3643_v22 = vadd.f32 %v3642_v20, %v3641_v15  ;;  %v4887_v23 = vpack.c.bf16 %v1156_v18, %v1155_v17  ;;  %v4910_v17 = vld [vmem:[#allocation9 + $0x80] ss:$12 sps:$4 sm:$0xff]  }
 0x195   :  { %v3644_v24 = vpop.f32.mrf.mxu0 }
 0x196   :  { %v1157_v31 = vadd.f32 %v3643_v22, %v1118_v25  ;;  %v4015_v22 = vld [vmem:[#allocation9 + $0x4c] ss:$12 sps:$4 sm:$0xff]   ;;  %v4918_v25 = vld [vmem:[#allocation9 + $0x68] ss:$12 sps:$4 sm:$0xff]  }
 0x197   :  { %v3645_v26 = vpop.f32.mrf.mxu0 }
 0x198   :  { %v3646_v28 = vadd.f32 %v3645_v26, %v3644_v24 }
 0x199   :  { %v3732_v29 = vpop.f32.mrf.mxu0 }
 0x19a   :  { %v1158_v32 = vadd.f32 %v3777_v21, %v3646_v28  ;;  %v1128_v35 = vadd.f32 %v3732_v29, %v3556_v30  ;;  %v4010_v21 = vld [vmem:[#allocation9 + $0x60] ss:$12 sps:$4 sm:$0xff]   ;;  %v4013_v29 = vld [vmem:[#allocation9 + $0x48] ss:$12 sps:$4 sm:$0xff]  }
 0x19b   :  { %v968_v33 = vpop.f32.mrf.mxu0  ;;  %v4018_v30 = vld [vmem:[#allocation9 + $0x34] ss:$12 sps:$4 sm:$0xff]  }
 0x19c   :  { %v1127_v36 = vadd.f32 %v4828_v42, %v968_v33  ;;  %v4892_v37 = vpack.c.bf16 %v1158_v32, %v1157_v31  ;;  %v4004_v42 = vld [vmem:[#allocation9 + $0x90] ss:$12 sps:$4 sm:$0xff]  }
 0x19d   :  { %v3735_v38 = vpop.f32.mrf.mxu0  ;;  %v4925_v32 = vld [vmem:[#allocation9 + $0x50] ss:$12 sps:$4 sm:$0xff]  }
 0x19e   :  { %v1159_v44 = vpack.c.bf16 %v1128_v35, %v1127_v36  ;;  %v1130_v54 = vadd.f32 %v3735_v38, %v3562_v41  ;;  %v4021_v38 = vld [vmem:[#allocation9 + $0x1c] ss:$12 sps:$4 sm:$0xff]   ;;  %v4933_v41 = vld [vmem:[#allocation9 + $0x38] ss:$12 sps:$4 sm:$0xff]  }
 0x19f   :  { %v978_v53 = vpop.f32.mrf.mxu0 }
 0x1a0   :  { %v1129_v43 = vadd.f32 %v4835_v50, %v978_v53  ;;  %1385 = vmatmul.mubr.bf16.vlgmr.msra.gmra.mxu1 %v1159_v44  ;;  %3794 = vmatprep.mubr.bf16.mxu0 %v1159_v44  ;;  %v4019_v53 = vld [vmem:[#allocation9 + $0x18] ss:$12 sps:$4 sm:$0xff]  }
 0x1a1   :  { %v3738_v45 = vpop.f32.mrf.mxu0  ;;  %1900 = vmatpush1.bf16.msra.mxu1 %v4001_v40  ;;  %1394 = vmatprep.mubr.bf16.mxu1 %v4525_v46 }
 0x1a2   :  { %v1160_v59 = vpack.c.bf16 %v1130_v54, %v1129_v43  ;;  %1901 = vmatprep.subr.bf16.mxu1 %v4006_v47  ;;  %v1132_v4 = vadd.f32 %v3738_v45, %v3568_v58  ;;  %v4938_v43 = vld [vmem:[#allocation9 + $0x20] ss:$12 sps:$4 sm:$0xff]  }
 0x1a3   :  { %v988_v63 = vpop.f32.mrf.mxu0 }
 0x1a4   :  { %v1131_v50 = vadd.f32 %v4841_v55, %v988_v63  ;;  %3795 = vmatmul.mubr.bf16.vlgmr.msra.gmra.mxu0 %v1160_v59  ;;  %v710_v63 = vld [vmem:[#allocation6 + $0x10] sm:$0xff] }
 0x1a5   :  { %v3741_v5 = vpop.f32.mrf.mxu0  ;;  %1902 = vmatpush1.bf16.msra.mxu1 %v4004_v42  ;;  %3827 = vmatpush3.bf16.msra.mxu0 %v4896_v48 }
 0x1a6   :  { %v1161_v57 = vpack.c.bf16 %v1132_v4, %v1131_v50  ;;  %1903 = vmatprep.subr.bf16.mxu1 %v4009_v51  ;;  %3828 = vmatprep.subr.bf16.mxu0 %v4903_v52  ;;  %v1134_v18 = vadd.f32 %v3741_v5, %v3574_v56  ;;  %v711_v4 = vld [vmem:[#allocation6 + $0x18] sm:$0xff]  ;;  %v712_v50 = vld [vmem:[#allocation6 + $0x20] sm:$0xff]  ;;  %v713_v5 = vld [vmem:[#allocation6 + $0x28] sm:$0xff] }
 0x1a7   :  { %v998_v15 = vpop.f32.mrf.mxu0  ;;  %v4970_v56 = vpack.c.bf16 %v713_v5, %v712_v50 }
 0x1a8   :  { %v1133_v55 = vadd.f32 %v4847_v60, %v998_v15  ;;  %1395 = vmatmul.mubr.bf16.gmra.mxu1 %v1160_v59  ;;  %3798 = vmatprep.mubr.bf16.mxu0 %v1161_v57  ;;  %v4945_v59 = vld [vmem:[#allocation9 + $0x8] ss:$12 sps:$4 sm:$0xff]   ;;  %v716_v15 = vld [vmem:[#allocation6 + $0x40] sm:$0xff] }
 0x1a9   :  { %v3744_v20 = vpop.f32.mrf.mxu0  ;;  %1404 = vmatprep.mubr.bf16.mxu1 %v4525_v46  ;;  %1904 = vmatpush1.bf16.msra.mxu1 %v4007_v9  ;;  %v4968_v9 = vpack.c.bf16 %v711_v4, %v710_v63 }
 0x1aa   :  { %v1162_v62 = vpack.c.bf16 %v1134_v18, %v1133_v55  ;;  %1905 = vmatprep.subr.bf16.mxu1 %v4012_v10  ;;  %3829 = vmatpush3.bf16.msra.mxu0 %v4903_v52  ;;  %v1136_v60 = vadd.f32 %v3744_v20, %v3580_v61  ;;  %v715_v10 = vld [vmem:[#allocation6 + $0x38] sm:$0xff]  ;;  %v717_v18 = vld [vmem:[#allocation6 + $0x48] sm:$0xff]  ;;  %v718_v20 = vld [vmem:[#allocation6 + $0x50] sm:$0xff] }
 0x1ab   :  { %v1008_v24 = vpop.f32.mrf.mxu0  ;;  %3830 = vmatprep.subr.bf16.mxu0 %v4910_v17  ;;  %v4978_v55 = vpack.c.bf16 %v717_v18, %v716_v15  ;;  %v720_v61 = vld [vmem:[#allocation6 + $0x60] sm:$0xff] }
 0x1ac   :  { %v1135_v26 = vadd.f32 %v4853_v1, %v1008_v24  ;;  %3799 = vmatmul.mubr.bf16.gmra.mxu0 %v1162_v62  ;;  %v722_v24 = vld [vmem:[#allocation6 + $0x70] sm:$0xff] }
 0x1ad   :  { %v3747_v28 = vpop.f32.mrf.mxu0  ;;  %1906 = vmatpush1.bf16.msra.mxu1 %v4010_v21  ;;  %v719_v21 = vld [vmem:[#allocation6 + $0x58] sm:$0xff] }
 0x1ae   :  { %v1163_v3 = vpack.c.bf16 %v1136_v60, %v1135_v26  ;;  %1907 = vmatprep.subr.bf16.mxu1 %v4015_v22  ;;  %3831 = vmatpush3.bf16.msra.mxu0 %v4910_v17  ;;  %v1138_v33 = vadd.f32 %v3747_v28, %v3586_v2  ;;  %v723_v60 = vld [vmem:[#allocation6 + $0x78] sm:$0xff]  ;;  %v724_v26 = vld [vmem:[#allocation6 + $0x80] sm:$0xff]  ;;  %v725_v28 = vld [vmem:[#allocation6 + $0x88] sm:$0xff] }
 0x1af   :  { %v1018_v31 = vpop.f32.mrf.mxu0  ;;  %3832 = vmatprep.subr.bf16.mxu0 %v4918_v25  ;;  %v726_v2 = vld [vmem:[#allocation6 + $0x90] sm:$0xff] }
 0x1b0   :  { %v1137_v1 = vadd.f32 %v4859_v6, %v1018_v31  ;;  %1405 = vmatmul.mubr.bf16.gmra.mxu1 %v1161_v57  ;;  %3802 = vmatprep.mubr.bf16.mxu0 %v1163_v3  ;;  %v714_v57 = vld [vmem:[#allocation6 + $0x30] sm:$0xff]  ;;  %v729_v31 = vld [vmem:[#allocation6 + $0xa8] sm:$0xff] }
 0x1b1   :  { %v3750_v35 = vpop.f32.mrf.mxu0  ;;  %1414 = vmatprep.mubr.bf16.mxu1 %v4525_v46  ;;  %1908 = vmatpush1.bf16.msra.mxu1 %v4013_v29  ;;  %v1714_v29 = vpack.c.bf16 %v725_v28, %v724_v26 }
 0x1b2   :  { %v1164_v36 = vpack.c.bf16 %v1138_v33, %v1137_v1  ;;  %1909 = vmatprep.subr.bf16.mxu1 %v4018_v30  ;;  %3833 = vmatpush3.bf16.msra.mxu0 %v4918_v25  ;;  %v1140_v6 = vadd.f32 %v3750_v35, %v3592_v8  ;;  %v728_v30 = vld [vmem:[#allocation6 + $0xa0] sm:$0xff]  ;;  %v731_v35 = vld [vmem:[#allocation6 + $0xb8] sm:$0xff]  ;;  %v733_v8 = vld [vmem:[#allocation6 + $0xc8] sm:$0xff] }
 0x1b3   :  { %v1028_v40 = vpop.f32.mrf.mxu0  ;;  %3834 = vmatprep.subr.bf16.mxu0 %v4925_v32  ;;  %v4994_v1 = vpack.c.bf16 %v729_v31, %v728_v30  ;;  %v736_v30 = vld [vmem:[#allocation6 + $0xe0] sm:$0xff]  ;;  %v737_v31 = vld [vmem:[#allocation6 + $0xe8] sm:$0xff] }
 0x1b4   :  { %v1139_v44 = vadd.f32 %v4865_v11, %v1028_v40  ;;  %3803 = vmatmul.mubr.bf16.gmra.mxu0 %v1164_v36  ;;  %v4022_v11 = vld [vmem:[#allocation9] ss:$12 sps:$4 sm:$0xff]   ;;  %v735_v40 = vld [vmem:[#allocation6 + $0xd8] sm:$0xff] }
 0x1b5   :  { %v3753_v47 = vpop.f32.mrf.mxu0  ;;  %1910 = vmatpush1.bf16.msra.mxu1 %v4016_v7  ;;  %v732_v7 = vld [vmem:[#allocation6 + $0xc0] sm:$0xff] }
 0x1b6   :  { %v1165_v54 = vpack.c.bf16 %v1140_v6, %v1139_v44  ;;  %1911 = vmatprep.subr.bf16.mxu1 %v4021_v38  ;;  %3835 = vmatpush3.bf16.msra.mxu0 %v4925_v32  ;;  %v1142_v45 = vadd.f32 %v3753_v47, %v4873_v19  ;;  %v709_v19 = vld [vmem:[#allocation6 + $0x8] sm:$0xff]  ;;  %v734_v38 = vld [vmem:[#allocation6 + $0xd0] sm:$0xff] }
 0x1b7   :  { %v1038_v13 = vpop.f32.mrf.mxu0  ;;  %3836 = vmatprep.subr.bf16.mxu0 %v4933_v41  ;;  %v5007_v6 = vpack.c.bf16 %v735_v40, %v734_v38 }
 0x1b8   :  { %v1141_v42 = vadd.f32 %v4871_v16, %v1038_v13  ;;  %1415 = vmatmul.mubr.bf16.gmra.mxu1 %v1162_v62  ;;  %3806 = vmatprep.mubr.bf16.mxu0 %v1165_v54  ;;  %v708_v16 = vld [vmem:[#allocation6] sm:$0xff]  ;;  %v721_v62 = vld [vmem:[#allocation6 + $0x68] sm:$0xff] }
 0x1b9   :  { %1424 = vmatprep.mubr.bf16.mxu1 %v4525_v46  ;;  %1912 = vmatpush1.bf16.msra.mxu1 %v4019_v53  ;;  %v4962_v51 = vpack.c.bf16 %v709_v19, %v708_v16  ;;  %v4986_v22 = vpack.c.bf16 %v721_v62, %v720_v61 }
 0x1ba   :  { %v1166_v58 = vpack.c.bf16 %v1142_v45, %v1141_v42  ;;  %1913 = vmatprep.subr.bf16.mxu1 %v4024_v12  ;;  %3837 = vmatpush3.bf16.msra.mxu0 %v4933_v41 }
 0x1bb   :  { %3838 = vmatprep.subr.bf16.mxu0 %v4938_v43 }
 0x1bc   :  { %3807 = vmatmul.mubr.bf16.gmra.mxu0 %v1166_v58 }
 0x1bd   :  { %3810 = vmatprep.mubr.bf16.mxu0 %v4875_v34  ;;  %1914 = vmatpush1.bf16.msra.mxu1 %v4022_v11 }
 0x1be   :  { %3876 = vmatprep.subr.bf16.mxu1 %v4896_v48  ;;  %3839 = vmatpush3.bf16.msra.mxu0 %v4938_v43 }
 0x1bf   :  { %3840 = vmatprep.subr.bf16.mxu0 %v4945_v59 }
 0x1c0   :  { %1425 = vmatmul.mubr.bf16.gmra.mxu1 %v1163_v3  ;;  %v727_v3 = vld [vmem:[#allocation6 + $0x98] sm:$0xff] }
 0x1c1   :  { %1434 = vmatprep.mubr.bf16.mxu1 %v4525_v46  ;;  %v1715_v33 = vpack.c.bf16 %v727_v3, %v726_v2 }
 0x1c2   :  { %3841 = vmatpush3.bf16.msra.mxu0 %v4945_v59 }
 0x1c4   :  { %3811 = vmatmul.mubr.bf16.gmra.mxu0 %v4877_v49 }
 0x1c5   :  { %3814 = vmatprep.mubr.bf16.mxu0 %v4879_v14 }
 0x1c8   :  { %1435 = vmatmul.mubr.bf16.gmra.mxu1 %v1164_v36 }
 0x1c9   :  { %1444 = vmatprep.mubr.bf16.mxu1 %v4525_v46 }
 0x1cc   :  { %3815 = vmatmul.mubr.bf16.gmra.mxu0 %v4881_v27 }
 0x1cd   :  { %3818 = vmatprep.mubr.bf16.mxu0 %v4883_v39 }
 0x1d0   :  { %1445 = vmatmul.mubr.bf16.gmra.mxu1 %v1165_v54 }
 0x1d1   :  { %1454 = vmatprep.mubr.bf16.mxu1 %v4525_v46 }
 0x1d4   :  { %3819 = vmatmul.mubr.bf16.gmra.mxu0 %v4885_v0 }
 0x1d5   :  { %3822 = vmatprep.mubr.bf16.mxu0 %v4887_v23 }
 0x1d8   :  { %1455 = vmatmul.mubr.bf16.gmra.mxu1 %v1166_v58 }
 0x1d9   :  { %1464 = vmatprep.mubr.bf16.mxu1 %v4525_v46 }
 0x1dc   :  { %3823 = vmatmul.mubr.bf16.gmra.mxu0 %v4892_v37 }
 0x1dd   :  { %3842 = vmatprep.mubr.bf16.mxu0 %v4962_v51 }
 0x1e0   :  { %1465 = vmatmul.mubr.bf16.gmra.mxu1 %v4875_v34  ;;  %v4976_v34 = vpack.c.bf16 %v715_v10, %v714_v57  ;;  %v5110_v10 = vld [vmem:[%s6146_s7] sm:$0x7] }
 0x1e1   :  { %1474 = vmatprep.mubr.bf16.mxu1 %v4525_v46 }
 0x1e4   :  { %3843 = vmatmul.mubr.bf16.vlgmr.msra.gmra.mxu0 %v4968_v9 }
 0x1e5   :  { %3846 = vmatprep.mubr.bf16.mxu0 %v4970_v56 }
 0x1e8   :  { %1475 = vmatmul.mubr.bf16.gmra.mxu1 %v4877_v49  ;;  %v4984_v49 = vpack.c.bf16 %v719_v21, %v718_v20 }
 0x1e9   :  { %1484 = vmatprep.mubr.bf16.mxu1 %v4525_v46 }
 0x1ec   :  { %3847 = vmatmul.mubr.bf16.gmra.mxu0 %v4976_v34 }
 0x1ed   :  { %3850 = vmatprep.mubr.bf16.mxu0 %v4978_v55 }
 0x1f0   :  { %1485 = vmatmul.mubr.bf16.gmra.mxu1 %v4879_v14  ;;  %v1713_v14 = vpack.c.bf16 %v723_v60, %v722_v24 }
 0x1f1   :  { %1494 = vmatprep.mubr.bf16.mxu1 %v4525_v46 }
 0x1f4   :  { %3851 = vmatmul.mubr.bf16.gmra.mxu0 %v4984_v49 }
 0x1f5   :  { %3854 = vmatprep.mubr.bf16.mxu0 %v4986_v22 }
 0x1f8   :  { %1495 = vmatmul.mubr.bf16.gmra.mxu1 %v4881_v27  ;;  %v730_v27 = vld [vmem:[#allocation6 + $0xb0] sm:$0xff] }
 0x1f9   :  { %1504 = vmatprep.mubr.bf16.mxu1 %v4525_v46  ;;  %v4999_v36 = vpack.c.bf16 %v731_v35, %v730_v27 }
 0x1fc   :  { %3855 = vmatmul.mubr.bf16.gmra.mxu0 %v1713_v14 }
 0x1fd   :  { %3858 = vmatprep.mubr.bf16.mxu0 %v1714_v29 }
 0x200   :  { %1505 = vmatmul.mubr.bf16.gmra.mxu1 %v4883_v39  ;;  %v5001_v39 = vpack.c.bf16 %v733_v8, %v732_v7  ;;  %v1720_v8 = vpack.c.bf16 %v737_v31, %v736_v30 }
 0x201   :  { %1514 = vmatprep.mubr.bf16.mxu1 %v4525_v46 }
 0x204   :  { %3859 = vmatmul.mubr.bf16.gmra.mxu0 %v1715_v33 }
 0x205   :  { %3862 = vmatprep.mubr.bf16.mxu0 %v4994_v1 }
 0x208   :  { %1515 = vmatmul.mubr.bf16.gmra.mxu1 %v4885_v0 }
 0x209   :  { %1524 = vmatprep.mubr.bf16.mxu1 %v4525_v46 }
 0x20c   :  { %3863 = vmatmul.mubr.bf16.gmra.mxu0 %v4999_v36 }
 0x20d   :  { %3866 = vmatprep.mubr.bf16.mxu0 %v5001_v39 }
 0x210   :  { %1525 = vmatmul.mubr.bf16.gmra.mxu1 %v4887_v23 }
 0x211   :  { %1534 = vmatprep.mubr.bf16.mxu1 %v4525_v46 }
 0x214   :  { %3867 = vmatmul.mubr.bf16.gmra.mxu0 %v5007_v6 }
 0x218   :  { %1535 = vmatmul.mubr.bf16.gmra.mxu1 %v4892_v37 }
 0x219   :  { %1931 = vmatprep.mubr.bf16.mxu1 %v4525_v46 }
 0x220   :  { %1932 = vmatmul.mubr.bf16.vlgmr.msra.gmra.mxu1 %v4962_v51 }
 0x221   :  { %1941 = vmatprep.mubr.bf16.mxu1 %v4525_v46  ;;  %3884 = vmatpush3.bf16.msra.mxu1 %v4896_v48 }
 0x222   :  { %3877 = vmatprep.subr.bf16.mxu1 %v4903_v52 }
 0x225   :  { %3885 = vmatpush3.bf16.msra.mxu1 %v4903_v52 }
 0x226   :  { %3878 = vmatprep.subr.bf16.mxu1 %v4910_v17 }
 0x228   :  { %1942 = vmatmul.mubr.bf16.gmra.mxu1 %v4968_v9 }
 0x229   :  { %1951 = vmatprep.mubr.bf16.mxu1 %v4525_v46  ;;  %3886 = vmatpush3.bf16.msra.mxu1 %v4910_v17 }
 0x22a   :  { %3879 = vmatprep.subr.bf16.mxu1 %v4918_v25 }
 0x22d   :  { %3887 = vmatpush3.bf16.msra.mxu1 %v4918_v25 }
 0x22e   :  { %3880 = vmatprep.subr.bf16.mxu1 %v4925_v32 }
 0x230   :  { %1952 = vmatmul.mubr.bf16.gmra.mxu1 %v4970_v56 }
 0x231   :  { %1961 = vmatprep.mubr.bf16.mxu1 %v4525_v46  ;;  %3888 = vmatpush3.bf16.msra.mxu1 %v4925_v32 }
 0x232   :  { %3881 = vmatprep.subr.bf16.mxu1 %v4933_v41 }
 0x235   :  { %3889 = vmatpush3.bf16.msra.mxu1 %v4933_v41 }
 0x236   :  { %3882 = vmatprep.subr.bf16.mxu1 %v4938_v43 }
 0x238   :  { %1962 = vmatmul.mubr.bf16.gmra.mxu1 %v4976_v34 }
 0x239   :  { %1971 = vmatprep.mubr.bf16.mxu1 %v4525_v46  ;;  %3890 = vmatpush3.bf16.msra.mxu1 %v4938_v43 }
 0x23a   :  { %3883 = vmatprep.subr.bf16.mxu1 %v4945_v59 }
 0x23d   :  { %3891 = vmatpush3.bf16.msra.mxu1 %v4945_v59  ;;  %v1209_v59 = vlaneseq }
 0x23f   :  { %v5095_v4 = vshrl.u32 %v1209_v59, 7 }
 0x240   :  { %1972 = vmatmul.mubr.bf16.gmra.mxu1 %v4978_v55 }
 0x241   :  { %1981 = vmatprep.mubr.bf16.mxu1 %v4525_v46  ;;  %v6150_v9 = vsub.s32 2, %v5095_v4 }
 0x243   :  { %v5119_v34 = vrot.slane %v5110_v10, %v6150_v9 }
 0x248   :  { %1982 = vmatmul.mubr.bf16.gmra.mxu1 %v4984_v49 }
 0x249   :  { %1991 = vmatprep.mubr.bf16.mxu1 %v4525_v46 }
 0x250   :  { %1992 = vmatmul.mubr.bf16.gmra.mxu1 %v4986_v22 }
 0x251   :  { %2001 = vmatprep.mubr.bf16.mxu1 %v4525_v46 }
 0x258   :  { %2002 = vmatmul.mubr.bf16.gmra.mxu1 %v1713_v14 }
 0x259   :  { %2011 = vmatprep.mubr.bf16.mxu1 %v4525_v46 }
 0x260   :  { %v5042_v0 = vpop.f32.mrf.mxu1  ;;  %2012 = vmatmul.mubr.bf16.gmra.mxu1 %v1714_v29 }
 0x261   :  { %2021 = vmatprep.mubr.bf16.mxu1 %v4525_v46 }
 0x262   :  { %v5045_v23 = vpop.f32.mrf.mxu1 }
 0x264   :  { %v5047_v37 = vpop.f32.mrf.mxu1  ;;  %v5049_v48 = vpop.f32.mrf.mxu0 }
 0x266   :  { %v5051_v52 = vpop.f32.mrf.mxu1  ;;  %v5053_v17 = vpop.f32.mrf.mxu0 }
 0x268   :  { %v5055_v25 = vpop.f32.mrf.mxu1  ;;  %v5057_v32 = vpop.f32.mrf.mxu0  ;;  %2022 = vmatmul.mubr.bf16.gmra.mxu1 %v1715_v33 }
 0x269   :  { %2031 = vmatprep.mubr.bf16.mxu1 %v4525_v46 }
 0x26a   :  { %v5060_v41 = vpop.f32.mrf.mxu1  ;;  %v5062_v44 = vpop.f32.mrf.mxu0 }
 0x26c   :  { %v5064_v47 = vpop.f32.mrf.mxu1  ;;  %v5066_v53 = vpop.f32.mrf.mxu0 }
 0x26e   :  { %v5068_v54 = vpop.f32.mrf.mxu1  ;;  %v5070_v12 = vpop.f32.mrf.mxu0 }
 0x270   :  { %v5072_v13 = vpop.f32.mrf.mxu1  ;;  %v5074_v43 = vpop.f32.mrf.mxu0  ;;  %2032 = vmatmul.mubr.bf16.gmra.mxu1 %v4994_v1 }
 0x271   :  { %2041 = vmatprep.mubr.bf16.mxu1 %v4525_v46 }
 0x272   :  { %v5078_v45 = vpop.f32.mrf.mxu1  ;;  %v5080_v42 = vpop.f32.mrf.mxu0 }
 0x274   :  { %v5082_v11 = vpop.f32.mrf.mxu1  ;;  %v5084_v58 = vpop.f32.mrf.mxu0 }
 0x276   :  { %v5086_v16 = vpop.f32.mrf.mxu1  ;;  %v5088_v19 = vpop.f32.mrf.mxu0 }
 0x278   :  { %v5090_v51 = vpop.f32.mrf.mxu1  ;;  %v5092_v63 = vpop.f32.mrf.mxu0  ;;  %2042 = vmatmul.mubr.bf16.gmra.mxu1 %v4999_v36 }
 0x279   :  { %2051 = vmatprep.mubr.bf16.mxu1 %v4525_v46 }
 0x27a   :  { %v5098_v50 = vpop.f32.mrf.mxu1  ;;  %v5100_v5 = vpop.f32.mrf.mxu0 }
 0x27c   :  { %v5103_v56 = vpop.f32.mrf.mxu1  ;;  %v5105_v57 = vpop.f32.mrf.mxu0 }
 0x27e   :  { %v5112_v15 = vpop.f32.mrf.mxu1  ;;  %v5114_v18 = vpop.f32.mrf.mxu0 }
 0x280   :  { %v5121_v55 = vpop.f32.mrf.mxu1  ;;  %v3809_v20 = vpop.f32.mrf.mxu0  ;;  %2052 = vmatmul.mubr.bf16.gmra.mxu1 %v5001_v39 }
 0x281   :  { %v5125_v21 = vadd.f32 %v3809_v20, %v5119_v34  ;;  %2061 = vmatprep.mubr.bf16.mxu1 %v4525_v46 }
 0x282   :  { %v5128_v61 = vpop.f32.mrf.mxu1  ;;  %v1630_v62 = vpop.f32.mrf.mxu0 }
 0x283   :  { %6151 = vst [vmem:[#allocation19_spill] sm:$0xff] %v5125_v21  ;;  %v5131_v49 = vadd.f32 %v1630_v62, %v5119_v34  ;;  %v738_v62 = vld [vmem:[#allocation6 + $0xf0] sm:$0xff] }
 0x284   :  { %v5133_v22 = vpop.f32.mrf.mxu1  ;;  %v3812_v24 = vpop.f32.mrf.mxu0 }
 0x285   :  { %6152 = vst [vmem:[#allocation20_spill] sm:$0xff] %v5131_v49  ;;  %v5136_v60 = vadd.f32 %v3812_v24, %v5119_v34  ;;  %v739_v24 = vld [vmem:[#allocation6 + $0xf8] sm:$0xff] }
 0x286   :  { %v5138_v26 = vpop.f32.mrf.mxu1  ;;  %v1643_v28 = vpop.f32.mrf.mxu0 }
 0x287   :  { %6153 = vst [vmem:[#allocation21_spill] sm:$0xff] %v5136_v60  ;;  %v5141_v14 = vadd.f32 %v1643_v28, %v5119_v34 }
 0x288   :  { %v5143_v29 = vpop.f32.mrf.mxu1  ;;  %v3813_v2 = vpop.f32.mrf.mxu0  ;;  %2062 = vmatmul.mubr.bf16.gmra.mxu1 %v5007_v6 }
 0x289   :  { %6154 = vst [vmem:[#allocation22_spill] sm:$0xff] %v5141_v14  ;;  %v5147_v3 = vadd.f32 %v3813_v2, %v5119_v34  ;;  %2071 = vmatprep.mubr.bf16.mxu1 %v4525_v46 }
 0x28a   :  { %v5150_v33 = vpop.f32.mrf.mxu1  ;;  %v1646_v1 = vpop.f32.mrf.mxu0 }
 0x28b   :  { %6155 = vst [vmem:[#allocation23_spill] sm:$0xff] %v5147_v3  ;;  %v5153_v27 = vadd.f32 %v1646_v1, %v5119_v34 }
 0x28c   :  { %v5155_v35 = vpop.f32.mrf.mxu1  ;;  %v3816_v7 = vpop.f32.mrf.mxu0 }
 0x28d   :  { %6156 = vst [vmem:[#allocation24_spill] sm:$0xff] %v5153_v27  ;;  %v5158_v36 = vadd.f32 %v3816_v7, %v5119_v34  ;;  %v1721_v7 = vpack.c.bf16 %v739_v24, %v738_v62 }
 0x28e   :  { %v5160_v39 = vpop.f32.mrf.mxu1  ;;  %v1659_v38 = vpop.f32.mrf.mxu0 }
 0x28f   :  { %6157 = vst [vmem:[#allocation25_spill] sm:$0xff] %v5158_v36  ;;  %v5163_v40 = vadd.f32 %v1659_v38, %v5119_v34 }
 0x290   :  { %v5165_v6 = vpop.f32.mrf.mxu1  ;;  %v3817_v59 = vpop.f32.mrf.mxu0  ;;  %2072 = vmatmul.mubr.bf16.gmra.mxu1 %v1720_v8 }
 0x291   :  { %6158 = vst [vmem:[#allocation26_spill] sm:$0xff] %v5163_v40  ;;  %v5168_v20 = vadd.f32 %v3817_v59, %v5119_v34  ;;  %2081 = vmatprep.mubr.bf16.mxu1 %v4525_v46 }
 0x292   :  { %v5171_v28 = vpop.f32.mrf.mxu1  ;;  %v1662_v2 = vpop.f32.mrf.mxu0 }
 0x293   :  { %6159 = vst [vmem:[#allocation27_spill] sm:$0xff] %v5168_v20  ;;  %v5174_v30 = vadd.f32 %v1662_v2, %v5119_v34 }
 0x294   :  { %v5176_v31 = vpop.f32.mrf.mxu1  ;;  %v3820_v1 = vpop.f32.mrf.mxu0 }
 0x295   :  { %6160 = vst [vmem:[#allocation28_spill] sm:$0xff] %v5174_v30  ;;  %v5179_v38 = vadd.f32 %v3820_v1, %v5119_v34 }
 0x296   :  { %v5181_v9 = vpop.f32.mrf.mxu1  ;;  %v1675_v59 = vpop.f32.mrf.mxu0 }
 0x297   :  { %6161 = vst [vmem:[#allocation29_spill] sm:$0xff] %v5179_v38  ;;  %v5184_v46 = vadd.f32 %v1675_v59, %v5119_v34 }
 0x298   :  { %v5186_v20 = vpop.f32.mrf.mxu1  ;;  %v3821_v36 = vpop.f32.mrf.mxu0  ;;  %2082 = vmatmul.mubr.bf16.gmra.mxu1 %v1721_v7 }
 0x299   :  { %6162 = vst [vmem:[#allocation30_spill] sm:$0xff] %v5184_v46  ;;  %v5189_v2 = vadd.f32 %v3821_v36, %v5119_v34  ;;  %3870 = vmatprep.mubr.bf16.mxu1 %v1720_v8 }
 0x29a   :  { %v5191_v30 = vpop.f32.mrf.mxu1  ;;  %v1678_v62 = vpop.f32.mrf.mxu0 }
 0x29b   :  { %6163 = vst [vmem:[#allocation31_spill] sm:$0xff] %v5189_v2  ;;  %v5194_v24 = vadd.f32 %v1678_v62, %v5119_v34 }
 0x29c   :  { %v5196_v1 = vpop.f32.mrf.mxu1  ;;  %v3824_v38 = vpop.f32.mrf.mxu0 }
 0x29d   :  { %6164 = vst [vmem:[#allocation32_spill] sm:$0xff] %v5194_v24  ;;  %v5199_v59 = vadd.f32 %v3824_v38, %v5119_v34 }
 0x29e   :  { %v5201_v46 = vpop.f32.mrf.mxu1  ;;  %v1691_v40 = vpop.f32.mrf.mxu0 }
 0x29f   :  { %6165 = vst [vmem:[#allocation33_spill] sm:$0xff] %v5199_v59  ;;  %v5204_v3 = vadd.f32 %v1691_v40, %v5119_v34 }
 0x2a0   :  { %v5206_v36 = vpop.f32.mrf.mxu1  ;;  %v3825_v8 = vpop.f32.mrf.mxu0  ;;  %3871 = vmatmul.mubr.bf16.vlgmr.msra.gmra.mxu1 %v1721_v7 }
 0x2a1   :  { %6166 = vst [vmem:[#allocation34_spill] sm:$0xff] %v5204_v3  ;;  %v5209_v2 = vadd.f32 %v3825_v8, %v5119_v34 }
 0x2a2   :  { %v5211_v62 = vpop.f32.mrf.mxu1  ;;  %v1694_v24 = vpop.f32.mrf.mxu0 }
 0x2a3   :  { %6167 = vst [vmem:[#allocation35_spill] sm:$0xff] %v5209_v2  ;;  %v5214_v60 = vadd.f32 %v1694_v24, %v5119_v34 }
 0x2a4   :  { %v5216_v38 = vpop.f32.mrf.mxu1 }
 0x2a5   :  { %6168 = vst [vmem:[#allocation36_spill] sm:$0xff] %v5214_v60 }
 0x2a6   :  { %v5218_v59 = vpop.f32.mrf.mxu1 }
 0x2a7   :  { %6169 = vst [vmem:[#allocation37_spill] sm:$0xff] %v5218_v59 }
 0x2a8   :  { %v5220_v27 = vpop.f32.mrf.mxu1 }
 0x2a9   :  { %6170 = vst [vmem:[#allocation38_spill] sm:$0xff] %v5220_v27 }
 0x2aa   :  { %v5222_v40 = vpop.f32.mrf.mxu1 }
 0x2ab   :  { %6171 = vst [vmem:[#allocation39_spill] sm:$0xff] %v5222_v40 }
 0x2ac   :  { %v5224_v3 = vpop.f32.mrf.mxu1 }
 0x2ad   :  { %6172 = vst [vmem:[#allocation40_spill] sm:$0xff] %v5224_v3 }
 0x2ae   :  { %v5226_v7 = vpop.f32.mrf.mxu1 }
 0x2af   :  { %6173 = vst [vmem:[#allocation41_spill] sm:$0xff] %v5226_v7 }
 0x2b0   :  { %v5228_v8 = vpop.f32.mrf.mxu1 }
 0x2b1   :  { %6174 = vst [vmem:[#allocation42_spill] sm:$0xff] %v5228_v8 }
 0x2b2   :  { %v5230_v2 = vpop.f32.mrf.mxu1 }
 0x2b3   :  { %6175 = vst [vmem:[#allocation43_spill] sm:$0xff] %v5230_v2 }
 0x2b4   :  { %v5232_v14 = vpop.f32.mrf.mxu1 }
 0x2b5   :  { %6176 = vst [vmem:[#allocation44_spill] sm:$0xff] %v5232_v14 }
 0x2b6   :  { %v5234_v24 = vpop.f32.mrf.mxu1 }
 0x2b7   :  { %6177 = vst [vmem:[#allocation45_spill] sm:$0xff] %v5234_v24  ;;  %v5256_v24 = vpop.f32.mrf.mxu0 }
 0x2b8   :  { %v5236_v60 = vpop.f32.mrf.mxu1  ;;  %6188 = vst [vmem:[#allocation56_spill] sm:$0xff] %v5256_v24 }
 0x2b9   :  { %6178 = vst [vmem:[#allocation46_spill] sm:$0xff] %v5236_v60 }
 0x2ba   :  { %v5238_v21 = vpop.f32.mrf.mxu1 }
 0x2bb   :  { %6179 = vst [vmem:[#allocation47_spill] sm:$0xff] %v5238_v21 }
 0x2bc   :  { %v5240_v49 = vpop.f32.mrf.mxu1 }
 0x2bd   :  { %6180 = vst [vmem:[#allocation48_spill] sm:$0xff] %v5240_v49  ;;  %v5262_v49 = vpop.f32.mrf.mxu0 }
 0x2be   :  { %v5242_v27 = vpop.f32.mrf.mxu1  ;;  %6191 = vst [vmem:[#allocation59_spill] sm:$0xff] %v5262_v49 }
 0x2bf   :  { %6181 = vst [vmem:[#allocation49_spill] sm:$0xff] %v5242_v27 }
 0x2c0   :  { %v5244_v40 = vpop.f32.mrf.mxu1 }
 0x2c1   :  { %6182 = vst [vmem:[#allocation50_spill] sm:$0xff] %v5244_v40 }
 0x2c2   :  { %v5246_v3 = vpop.f32.mrf.mxu1 }
 0x2c3   :  { %6183 = vst [vmem:[#allocation51_spill] sm:$0xff] %v5246_v3  ;;  %v5268_v3 = vpop.f32.mrf.mxu0 }
 0x2c4   :  { %v5248_v7 = vpop.f32.mrf.mxu1  ;;  %6194 = vst [vmem:[#allocation62_spill] sm:$0xff] %v5268_v3 }
 0x2c5   :  { %6184 = vst [vmem:[#allocation52_spill] sm:$0xff] %v5248_v7  ;;  %v5276_v24 = vpop.f32.mrf.mxu0 }
 0x2c6   :  { %v5250_v8 = vpop.f32.mrf.mxu1  ;;  %6197 = vst [vmem:[#allocation65_spill] sm:$0xff] %v5276_v24 }
 0x2c7   :  { %6185 = vst [vmem:[#allocation53_spill] sm:$0xff] %v5250_v8  ;;  %v1211_v8 = vsub.s32 0, %v5095_v4  ;;  %v5289_v3 = vpop.f32.mrf.mxu0 }
 0x2c8   :  { %v5252_v2 = vpop.f32.mrf.mxu1  ;;  %6199 = vst [vmem:[#allocation67_spill] sm:$0xff] %v5289_v3  ;;  %v5307_v3 = vadd.f32 %v5049_v48, %v5119_v34 }
 0x2c9   :  { %6186 = vst [vmem:[#allocation54_spill] sm:$0xff] %v5252_v2  ;;  %v1215_v2 = vsub.s32 1, %v5095_v4 }
 0x2ca   :  { %v5254_v14 = vpop.f32.mrf.mxu1 }
 0x2cb   :  { %6187 = vst [vmem:[#allocation55_spill] sm:$0xff] %v5254_v14 }
 0x2cc   :  { %v5258_v60 = vpop.f32.mrf.mxu1 }
 0x2cd   :  { %6189 = vst [vmem:[#allocation57_spill] sm:$0xff] %v5258_v60  ;;  %v5282_v60 = vrot.slane %v5110_v10, %v1215_v2 }
 0x2ce   :  { %v5260_v21 = vpop.f32.mrf.mxu1 }
 0x2cf   :  { %6190 = vst [vmem:[#allocation58_spill] sm:$0xff] %v5260_v21  ;;  %v5279_v21 = vrot.slane %v5110_v10, %v1211_v8  ;;  %v5327_v48 = vadd.f32 %v5060_v41, %v5282_v60  ;;  %v5349_v41 = vadd.f32 %v5070_v12, %v5119_v34 }
 0x2d0   :  { %v5264_v27 = vpop.f32.mrf.mxu1 }
 0x2d1   :  { %6192 = vst [vmem:[#allocation60_spill] sm:$0xff] %v5264_v27  ;;  %v5369_v12 = vadd.f32 %v5082_v11, %v5279_v21  ;;  %v5388_v11 = vadd.f32 %v5090_v51, %v5279_v21 }
 0x2d2   :  { %v5266_v40 = vpop.f32.mrf.mxu1 }
 0x2d3   :  { %6193 = vst [vmem:[#allocation61_spill] sm:$0xff] %v5266_v40  ;;  %v1754_v40 = vld [vmem:[%s6147_s8] sm:$0x7]  ;;  %s4526_s8 = smov [#allocation11]  }
 0x2d4   :  { %v5272_v7 = vpop.f32.mrf.mxu1  ;;  %v5299_v10 = vrot.slane %v1754_v40, %v1211_v8  ;;  %v5301_v59 = vrot.slane %v1754_v40, %v1215_v2  ;;  %v5319_v2 = vadd.f32 %v5055_v25, %v5279_v21  ;;  %v5337_v8 = vadd.f32 %v5064_v47, %v5279_v21  ;;  %s3154_s21 = sshll.u32 %s4526_s8, 4  ;;  %s3155_s21 = int_to_ptr.vmem [resolvable:$true] %s3154_s21 }
 0x2d5   :  { %6195 = vst [vmem:[#allocation63_spill] sm:$0xff] %v5272_v7  ;;  %v1389_v7 = vadd.f32 %v5045_v23, %v5282_v60  ;;  %v5315_v23 = vpop.f32.mrf.mxu0  ;;  %v5341_v25 = vadd.f32 %v5066_v53, %v5119_v34  ;;  %v5357_v47 = vadd.f32 %v5074_v43, %v5119_v34  ;;  %v5361_v53 = vadd.f32 %v5078_v45, %v5282_v60  ;;  %s4465_s25 = scalar_lea.vmem %s3155_s21, 4096  ;;  %p4470_p7 = scmp.lt.s32.totalorder %s3155_s21, %s3155_s21 }
 0x2d6   :  { %v5274_v14 = vpop.f32.mrf.mxu1  ;;  %v5377_v43 = vadd.f32 %v5086_v16, %v5282_v60  ;;  %v5396_v16 = vadd.f32 %v5098_v50, %v5282_v60  ;;  %v5413_v50 = vadd.f32 %v5112_v15, %v5282_v60  ;;  %v5432_v15 = vadd.f32 %v5133_v22, %v5279_v21  ;;  %p4466_p6 = scmp.ne.s32.totalorder %s3155_s21, %s4465_s25  ;;  %p4471_p8 = scmp.lt.s32.totalorder %s4465_s25, %s4465_s25 }
 0x2d7   :  { %6196 = vst [vmem:[#allocation64_spill] sm:$0xff] %v5274_v14  ;;  %v1387_v14 = vadd.f32 %v5042_v0, %v5279_v21  ;;  %v5313_v0 = vadd.f32 %v5053_v17, %v5119_v34 }
 0x2d8   :  { %v5284_v27 = vpop.f32.mrf.mxu1  ;;  %p4472_p9 = por %p4471_p8, %p4470_p7 }
 0x2d9   :  { %6198 = vst [vmem:[#allocation66_spill] sm:$0xff] %v5284_v27  ;;  %v1391_v27 = vadd.f32 %v5047_v37, %v5279_v21  ;;  %v5323_v37 = vadd.f32 %v5057_v32, %v5119_v34  ;;  %v5345_v32 = vadd.f32 %v5068_v54, %v5282_v60  ;;  %v5365_v54 = vadd.f32 %v5080_v42, %v5119_v34 }
 0x2da   :  { %v5291_v49 = vpop.f32.mrf.mxu1  ;;  %v5384_v42 = vadd.f32 %v5088_v19, %v5119_v34  ;;  %v5404_v19 = vadd.f32 %v5103_v56, %v5279_v21  ;;  %p4473_p10 = pnand %p4472_p9, %p4466_p6 }
 0x2db   :  { %6200 = vst [vmem:[#allocation68_spill] sm:$0xff] %v5291_v49  ;;  %v1393_v49 = vadd.f32 %v5051_v52, %v5282_v60  ;;  %v5331_v52 = vadd.f32 %v5062_v44, %v5119_v34  ;;  %v5353_v44 = vadd.f32 %v5072_v13, %v5279_v21  ;;  %v5373_v13 = vadd.f32 %v5084_v58, %v5119_v34 }
 0x2dc   :  { %v5297_v24 = vpop.f32.mrf.mxu1  ;;  %6204 = vst [vmem:[#allocation72_spill] sm:$0xff] %v5384_v42  ;;  %v5392_v58 = vadd.f32 %v5092_v63, %v5119_v34  ;;  %v5409_v63 = vadd.f32 %v5105_v57, %v5119_v34 }
 0x2dd   :  { %6201 = vst [vmem:[#allocation69_spill] sm:$0xff] %v5297_v24  ;;  %6203 = vst [vmem:[#allocation71_spill] sm:$0xff] %v5373_v13  ;;  %v5380_v24 = vpop.f32.mrf.mxu0 }
 0x2de   :  { %v5333_v17 = vpop.f32.mrf.mxu1  ;;  %6205 = vst [vmem:[#allocation73_spill] sm:$0xff] %v5392_v58  ;;  %6207 = vst [vmem:[#allocation75_spill] sm:$0xff] %v5409_v63  ;;  %v5417_v58 = vadd.f32 %v5114_v18, %v5119_v34  ;;  %v5436_v18 = vadd.f32 %v5138_v26, %v5282_v60  ;;  %v5451_v26 = vadd.f32 %v5150_v33, %v5282_v60 }
 0x2df   :  { %6202 = vst [vmem:[#allocation70_spill] sm:$0xff] %v5333_v17  ;;  %v5428_v63 = vpop.f32.mrf.mxu0  ;;  %v5468_v33 = vadd.f32 %v5171_v28, %v5282_v60 }
 0x2e0   :  { %v1933_v17 = vpop.f32.mrf.mxu1  ;;  %6208 = vst [vmem:[#allocation76_spill] sm:$0xff] %v5417_v58 }
 0x2e1   :  { %v1934_v45 = vadd.f32 %v1933_v17, %v5299_v10  ;;  %v5400_v17 = vadd.f32 %v5100_v5, %v5119_v34  ;;  %v5421_v5 = vadd.f32 %v5121_v55, %v5279_v21  ;;  %v5440_v34 = vadd.f32 %v5143_v29, %v5279_v21  ;;  %v5447_v22 = vpop.f32.mrf.mxu0 }
 0x2e2   :  { %v1935_v13 = vpop.f32.mrf.mxu1  ;;  %v5455_v29 = vadd.f32 %v5155_v35, %v5279_v21  ;;  %v5472_v35 = vadd.f32 %v5176_v31, %v5279_v21  ;;  %v5488_v31 = vadd.f32 %v5191_v30, %v5282_v60 }
 0x2e3   :  { %6206 = vst [vmem:[#allocation74_spill] sm:$0xff] %v5400_v17  ;;  %v2253_v42 = vadd.f32 %v1934_v45, %v1387_v14  ;;  %v1936_v51 = vadd.f32 %v1935_v13, %v5301_v59  ;;  %v5425_v14 = vadd.f32 %v5128_v61, %v5282_v60  ;;  %v6209_v61 = vsub.s32 2, %v5095_v4  ;;  %v6226_v17 = vld [vmem:[#allocation65_spill] sm:$0xff] }
 0x2e4   :  { %v1937_v56 = vpop.f32.mrf.mxu1  ;;  %v5459_v4 = vadd.f32 %v5160_v39, %v5282_v60  ;;  %v5476_v39 = vadd.f32 %v5181_v9, %v5282_v60  ;;  %v5492_v9 = vadd.f32 %v5196_v1, %v5279_v21  ;;  %v5510_v1 = vadd.f32 %v5216_v38, %v5279_v21  ;;  %v6216_v38 = vld [vmem:[#allocation38_spill] sm:$0xff] }
 0x2e5   :  { %v3312_v13 = vmul.f32 -1.442695, %v2253_v42  ;;  %v2477_v57 = vadd.f32 %v1936_v51, %v1389_v7  ;;  %v1938_v45 = vadd.f32 %v1937_v56, %v5299_v10  ;;  %v5444_v7 = vrot.slane %v1754_v40, %v6209_v61 }
 0x2e6   :  { %v1939_v55 = vpop.f32.mrf.mxu1  ;;  %v5463_v40 = vadd.f32 %v5165_v6, %v5279_v21  ;;  %v5480_v6 = vadd.f32 %v5186_v20, %v5279_v21  ;;  %v5496_v20 = vadd.f32 %v5201_v46, %v5282_v60  ;;  %6212 = vst [vmem:[#allocation79_spill] sm:$0xff] %v5510_v1  ;;  %v6213_v46 = vld [vmem:[#allocation37_spill] sm:$0xff] }
 0x2e7   :  { %4033 = vpow2.f32 %v3312_v13  ;;  %v3344_v42 = vmul.f32 -1.442695, %v2477_v57  ;;  %v2254_v51 = vadd.f32 %v1938_v45, %v1391_v27  ;;  %v1940_v56 = vadd.f32 %v1939_v55, %v5301_v59 }
 0x2e8   :  { %v1943_v27 = vpop.f32.mrf.mxu1  ;;  %v5552_v1 = vadd.f32 %v6226_v17, %v5444_v7 }
 0x2e9   :  { %4035 = vpow2.f32 %v3344_v42  ;;  %v3313_v13 = vmul.f32 -1.442695, %v2254_v51  ;;  %v2478_v57 = vadd.f32 %v1940_v56, %v1393_v49  ;;  %v1944_v45 = vadd.f32 %v1943_v27, %v5299_v10  ;;  %v5484_v42 = vpop.f32.mrf.mxu0 }
 0x2ea   :  { %v1945_v55 = vpop.f32.mrf.mxu1  ;;  %v5500_v51 = vadd.f32 %v5206_v36, %v5279_v21 }
 0x2eb   :  { %4037 = vpow2.f32 %v3313_v13  ;;  %v3345_v49 = vmul.f32 -1.442695, %v2478_v57  ;;  %v2255_v61 = vadd.f32 %v1944_v45, %v5319_v2  ;;  %v1946_v28 = vadd.f32 %v1945_v55, %v5301_v59  ;;  %v6215_v45 = vld [vmem:[#allocation56_spill] sm:$0xff] }
 0x2ec   :  { %6210 = vst [vmem:[#allocation77_spill] sm:$0xff] %v5500_v51  ;;  %v1947_v2 = vpop.f32.mrf.mxu1  ;;  %v5506_v13 = vadd.f32 %v5211_v62, %v5282_v60  ;;  %v5514_v57 = vadd.f32 %v6213_v46, %v5282_v60  ;;  %v5518_v55 = vadd.f32 %v6215_v45, %v5444_v7  ;;  %v6220_v45 = vld [vmem:[#allocation59_spill] sm:$0xff] }
 0x2ed   :  { %4039 = vpow2.f32 %v3345_v49  ;;  %v3314_v56 = vmul.f32 -1.442695, %v2255_v61  ;;  %v2479_v27 = vadd.f32 %v1946_v28, %v5327_v48  ;;  %v1948_v30 = vadd.f32 %v1947_v2, %v5299_v10  ;;  %v5522_v61 = vpop.f32.mrf.mxu0  ;;  %v6218_v2 = vld [vmem:[#allocation39_spill] sm:$0xff] }
 0x2ee   :  { %6211 = vst [vmem:[#allocation78_spill] sm:$0xff] %v5506_v13  ;;  %6214 = vst [vmem:[#allocation37_spill] sm:$0xff] %v5514_v57  ;;  %v1949_v36 = vpop.f32.mrf.mxu1  ;;  %v5526_v28 = vadd.f32 %v6216_v38, %v5279_v21  ;;  %v5530_v46 = vadd.f32 %v6218_v2, %v5282_v60  ;;  %v5534_v57 = vadd.f32 %v6220_v45, %v5444_v7  ;;  %v6222_v38 = vld [vmem:[#allocation40_spill] sm:$0xff]  ;;  %v6224_v2 = vld [vmem:[#allocation41_spill] sm:$0xff] }
 0x2ef   :  { %4041 = vpow2.f32 %v3314_v56  ;;  %v3346_v48 = vmul.f32 -1.442695, %v2479_v27  ;;  %v2256_v49 = vadd.f32 %v1948_v30, %v5337_v8  ;;  %v1950_v62 = vadd.f32 %v1949_v36, %v5301_v59  ;;  %v6221_v56 = vld [vmem:[#allocation62_spill] sm:$0xff] }
 0x2f0   :  { %6217 = vst [vmem:[#allocation56_spill] sm:$0xff] %v5526_v28  ;;  %6219 = vst [vmem:[#allocation38_spill] sm:$0xff] %v5530_v46  ;;  %v1953_v58 = vpop.f32.mrf.mxu1  ;;  %v5538_v8 = vadd.f32 %v6221_v56, %v5444_v7  ;;  %v5544_v28 = vadd.f32 %v6222_v38, %v5279_v21  ;;  %v5548_v46 = vadd.f32 %v6224_v2, %v5282_v60  ;;  %v2161_v56 = vpop.f32.mrf.mxu0  ;;  %v6228_v2 = vld [vmem:[#allocation42_spill] sm:$0xff] }
 0x2f1   :  { %4043 = vpow2.f32 %v3346_v48  ;;  %v3315_v27 = vmul.f32 -1.442695, %v2256_v49  ;;  %v2480_v30 = vadd.f32 %v1950_v62, %v5345_v32  ;;  %v1954_v36 = vadd.f32 %v1953_v58, %v5299_v10  ;;  %v6227_v48 = vld [vmem:[#allocation67_spill] sm:$0xff] }
 0x2f2   :  { %6223 = vst [vmem:[#allocation39_spill] sm:$0xff] %v5544_v28  ;;  %6225 = vst [vmem:[#allocation59_spill] sm:$0xff] %v5548_v46  ;;  %v1955_v45 = vpop.f32.mrf.mxu1  ;;  %v5556_v49 = vadd.f32 %v6227_v48, %v5444_v7  ;;  %v5562_v46 = vadd.f32 %v6228_v2, %v5279_v21  ;;  %v6230_v28 = vld [vmem:[#allocation43_spill] sm:$0xff]  ;;  %v5570_v48 = vadd.f32 %v5315_v23, %v5444_v7 }
 0x2f3   :  { %4045 = vpow2.f32 %v3315_v27  ;;  %v3347_v32 = vmul.f32 -1.442695, %v2480_v30  ;;  %v2257_v58 = vadd.f32 %v1954_v36, %v5353_v44  ;;  %v1956_v62 = vadd.f32 %v1955_v45, %v5301_v59  ;;  %v5577_v45 = vpop.f32.mrf.mxu0 }
 0x2f4   :  { %v4034_v38 = vpop.eup %4033  ;;  %6229 = vst [vmem:[#allocation62_spill] sm:$0xff] %v5562_v46  ;;  %v5566_v17 = vadd.f32 %v6230_v28, %v5282_v60  ;;  %v1957_v13 = vpop.f32.mrf.mxu1  ;;  %v5574_v44 = vadd.f32 %v5380_v24, %v5444_v7  ;;  %v6232_v28 = vld [vmem:[#allocation44_spill] sm:$0xff]  ;;  %v6234_v46 = vld [vmem:[#allocation45_spill] sm:$0xff] }
 0x2f5   :  { %v2381_v27 = vadd.f32 1.0, %v4034_v38  ;;  %4047 = vpow2.f32 %v3347_v32  ;;  %v3316_v30 = vmul.f32 -1.442695, %v2257_v58  ;;  %v2481_v36 = vadd.f32 %v1956_v62, %v5361_v53 }
 0x2f6   :  { %6231 = vst [vmem:[#allocation40_spill] sm:$0xff] %v5566_v17  ;;  %v4036_v2 = vpop.eup %4035  ;;  %v5581_v17 = vadd.f32 %v6232_v28, %v5279_v21  ;;  %v5585_v23 = vadd.f32 %v6234_v46, %v5282_v60  ;;  %v1958_v51 = vadd.f32 %v1957_v13, %v5299_v10  ;;  %v1959_v24 = vpop.f32.mrf.mxu1  ;;  %v5590_v32 = vadd.f32 %v5428_v63, %v5444_v7 }
 0x2f7   :  { %4049 = vrcp.f32 %v2381_v27  ;;  %v2605_v53 = vadd.f32 1.0, %v4036_v2  ;;  %v3348_v58 = vmul.f32 -1.442695, %v2481_v36  ;;  %v1960_v62 = vadd.f32 %v1959_v24, %v5301_v59  ;;  %v2174_v2 = vpop.f32.mrf.mxu0 }
 0x2f8   :  { %6233 = vst [vmem:[#allocation41_spill] sm:$0xff] %v5581_v17  ;;  %6235 = vst [vmem:[#allocation65_spill] sm:$0xff] %v5585_v23  ;;  %v4038_v38 = vpop.eup %4037  ;;  %4051 = vpow2.f32 %v3316_v30  ;;  %v2258_v28 = vadd.f32 %v1958_v51, %v5369_v12  ;;  %v1963_v17 = vpop.f32.mrf.mxu1  ;;  %v5596_v46 = vadd.f32 %v5447_v22, %v5444_v7  ;;  %v5600_v13 = vadd.f32 %v5484_v42, %v5444_v7  ;;  %v6237_v30 = vld [vmem:[#allocation46_spill] sm:$0xff]  ;;  %v6239_v51 = vld [vmem:[#allocation47_spill] sm:$0xff] }
 0x2f9   :  { %4053 = vrcp.f32 %v2605_v53  ;;  %v2382_v63 = vadd.f32 1.0, %v4038_v38  ;;  %v2482_v27 = vadd.f32 %v1960_v62, %v5377_v43  ;;  %v1964_v36 = vadd.f32 %v1963_v17, %v5299_v10 }
 0x2fa   :  { %6236 = vst [vmem:[#allocation67_spill] sm:$0xff] %v5596_v46  ;;  %v4040_v24 = vpop.eup %4039  ;;  %v5606_v12 = vadd.f32 %v6237_v30, %v5279_v21  ;;  %v5610_v22 = vadd.f32 %v6239_v51, %v5282_v60  ;;  %4055 = vpow2.f32 %v3348_v58  ;;  %v3317_v23 = vmul.f32 -1.442695, %v2258_v28  ;;  %v1965_v42 = vpop.f32.mrf.mxu1 }
 0x2fb   :  { %4057 = vrcp.f32 %v2382_v63  ;;  %v2606_v53 = vadd.f32 1.0, %v4040_v24  ;;  %v3349_v38 = vmul.f32 -1.442695, %v2482_v27  ;;  %v2259_v43 = vadd.f32 %v1964_v36, %v5388_v11  ;;  %v5622_v27 = vpop.f32.mrf.mxu0  ;;  %v6243_v24 = vld [vmem:[#allocation49_spill] sm:$0xff] }
 0x2fc   :  { %6238 = vst [vmem:[#allocation42_spill] sm:$0xff] %v5606_v12  ;;  %6240 = vst [vmem:[#allocation43_spill] sm:$0xff] %v5610_v22  ;;  %v4042_v62 = vpop.eup %4041  ;;  %4059 = vpow2.f32 %v3317_v23  ;;  %v1966_v17 = vadd.f32 %v1965_v42, %v5301_v59  ;;  %v1967_v46 = vpop.f32.mrf.mxu1  ;;  %v5616_v30 = vadd.f32 %v5522_v61, %v5444_v7  ;;  %v5619_v51 = vadd.f32 %v2161_v56, %v5444_v7  ;;  %v6241_v23 = vld [vmem:[#allocation48_spill] sm:$0xff] }
 0x2fd   :  { %4061 = vrcp.f32 %v2606_v53  ;;  %v2383_v58 = vadd.f32 1.0, %v4042_v62  ;;  %v3318_v28 = vmul.f32 -1.442695, %v2259_v43  ;;  %v1968_v63 = vadd.f32 %v1967_v46, %v5299_v10  ;;  %v6245_v53 = vld [vmem:[#allocation50_spill] sm:$0xff] }
 0x2fe   :  { %v4044_v11 = vpop.eup %4043  ;;  %v5626_v36 = vadd.f32 %v6241_v23, %v5279_v21  ;;  %v5630_v42 = vadd.f32 %v6243_v24, %v5282_v60  ;;  %4063 = vpow2.f32 %v3349_v38  ;;  %v2483_v61 = vadd.f32 %v1966_v17, %v5396_v16  ;;  %v1969_v56 = vpop.f32.mrf.mxu1  ;;  %v6247_v23 = vld [vmem:[#allocation51_spill] sm:$0xff]  ;;  %v6249_v24 = vld [vmem:[#allocation52_spill] sm:$0xff] }
 0x2ff   :  { %v5635_v43 = vadd.f32 %v6245_v53, %v5279_v21  ;;  %4065 = vrcp.f32 %v2383_v58  ;;  %v2260_v46 = vadd.f32 %v1968_v63, %v5404_v19  ;;  %v1970_v62 = vadd.f32 %v1969_v56, %v5301_v59  ;;  %v2177_v19 = vpop.f32.mrf.mxu0  ;;  %v6250_v56 = vld [vmem:[#allocation53_spill] sm:$0xff] }
 0x300   :  { %6242 = vst [vmem:[#allocation44_spill] sm:$0xff] %v5626_v36  ;;  %6244 = vst [vmem:[#allocation45_spill] sm:$0xff] %v5630_v42  ;;  %v4046_v22 = vpop.eup %4045  ;;  %v5641_v36 = vadd.f32 %v6247_v23, %v5282_v60  ;;  %v5645_v38 = vadd.f32 %v6249_v24, %v5279_v21  ;;  %4067 = vpow2.f32 %v3318_v28  ;;  %v3350_v16 = vmul.f32 -1.442695, %v2483_v61  ;;  %v1973_v17 = vpop.f32.mrf.mxu1 }
 0x301   :  { %6246 = vst [vmem:[#allocation46_spill] sm:$0xff] %v5635_v43  ;;  %v2607_v42 = vadd.f32 1.0, %v4044_v11  ;;  %v2384_v53 = vadd.f32 1.0, %v4046_v22  ;;  %v3319_v43 = vmul.f32 -1.442695, %v2260_v46  ;;  %v2484_v58 = vadd.f32 %v1970_v62, %v5413_v50  ;;  %v6252_v50 = vld [vmem:[#allocation54_spill] sm:$0xff] }
 0x302   :  { %6248 = vst [vmem:[#allocation47_spill] sm:$0xff] %v5641_v36  ;;  %v4048_v63 = vpop.eup %4047  ;;  %v5650_v12 = vadd.f32 %v6250_v56, %v5282_v60  ;;  %4069 = vpow2.f32 %v3350_v16  ;;  %v1974_v23 = vadd.f32 %v1973_v17, %v5299_v10  ;;  %v1975_v36 = vpop.f32.mrf.mxu1  ;;  %v5654_v24 = vadd.f32 %v2174_v2, %v5444_v7 }
 0x303   :  { %4071 = vrcp.f32 %v2384_v53  ;;  %v2608_v28 = vadd.f32 1.0, %v4048_v63  ;;  %v3351_v11 = vmul.f32 -1.442695, %v2484_v58  ;;  %v1976_v22 = vadd.f32 %v1975_v36, %v5301_v59  ;;  %v6254_v63 = vld [vmem:[#allocation55_spill] sm:$0xff] }
 0x304   :  { %6251 = vst [vmem:[#allocation48_spill] sm:$0xff] %v5650_v12  ;;  %v4050_v61 = vpop.eup %4049  ;;  %v5659_v46 = vadd.f32 %v6252_v50, %v5279_v21  ;;  %4073 = vpow2.f32 %v3319_v43  ;;  %v2261_v62 = vadd.f32 %v1974_v23, %v5421_v5  ;;  %v1977_v16 = vpop.f32.mrf.mxu1  ;;  %v5663_v17 = vadd.f32 %v2177_v19, %v5444_v7  ;;  %v6256_v12 = vld [vmem:[#allocation57_spill] sm:$0xff] }
 0x305   :  { %v4052_v56 = vpop.eup %4051  ;;  %4075 = vrcp.f32 %v2607_v42  ;;  %v2485_v2 = vadd.f32 %v1976_v22, %v5425_v14  ;;  %v2701_v53 = vmul.f32 %v4050_v61, %v5534_v57  ;;  %v1978_v36 = vadd.f32 %v1977_v16, %v5299_v10 }
 0x306   :  { %6253 = vst [vmem:[#allocation49_spill] sm:$0xff] %v5659_v46  ;;  %v5668_v58 = vpop.eup %4053  ;;  %v5672_v50 = vadd.f32 %v6254_v63, %v5282_v60  ;;  %v2385_v43 = vadd.f32 1.0, %v4052_v56  ;;  %4077 = vpow2.f32 %v3351_v11  ;;  %v3320_v5 = vmul.f32 -1.442695, %v2261_v62  ;;  %v1979_v23 = vpop.f32.mrf.mxu1 }
 0x307   :  { %v4056_v19 = vpop.eup %4055  ;;  %v5676_v42 = vadd.f32 %v6256_v12, %v5279_v21  ;;  %4079 = vrcp.f32 %v2608_v28  ;;  %v3352_v14 = vmul.f32 -1.442695, %v2485_v2  ;;  %v2733_v57 = vadd.f32 %v2701_v53, %v5313_v0  ;;  %v5681_v11 = vpop.f32.mrf.mxu0 }
 0x308   :  { %6255 = vst [vmem:[#allocation50_spill] sm:$0xff] %v5672_v50  ;;  %v4058_v22 = vpop.eup %4057  ;;  %4081 = vrcp.f32 %v2385_v43  ;;  %v2609_v61 = vadd.f32 1.0, %v4056_v19  ;;  %v2262_v16 = vadd.f32 %v1978_v36, %v5432_v15  ;;  %v1980_v63 = vadd.f32 %v1979_v23, %v5301_v59  ;;  %v1983_v56 = vpop.f32.mrf.mxu1  ;;  %v6257_v50 = vld [vmem:[#allocation58_spill] sm:$0xff]  ;;  %v6259_v15 = vld [vmem:[#allocation60_spill] sm:$0xff]  ;;  %v6260_v19 = vld [vmem:[#allocation61_spill] sm:$0xff] }
 0x309   :  { %v4060_v62 = vpop.eup %4059  ;;  %v5685_v46 = vadd.f32 %v6257_v50, %v5282_v60  ;;  %4083 = vpow2.f32 %v3320_v5  ;;  %v2702_v12 = vmul.f32 %v4058_v22, %v5552_v1  ;;  %v5690_v0 = vadd.f32 %v5577_v45, %v5444_v7 }
 0x30a   :  { %v5692_v28 = vpop.eup %4061  ;;  %v5696_v2 = vadd.f32 %v6259_v15, %v5279_v21  ;;  %4085 = vrcp.f32 %v2609_v61  ;;  %v2386_v53 = vadd.f32 1.0, %v4060_v62  ;;  %v1985_v36 = vpop.f32.mrf.mxu1  ;;  %v5700_v50 = vadd.f32 %v5622_v27, %v5444_v7 }
 0x30b   :  { %6258 = vst [vmem:[#allocation51_spill] sm:$0xff] %v5685_v46  ;;  %v4064_v43 = vpop.eup %4063  ;;  %4087 = vpow2.f32 %v3352_v14  ;;  %v3321_v1 = vmul.f32 -1.442695, %v2262_v16  ;;  %v2486_v5 = vadd.f32 %v1980_v63, %v5436_v18  ;;  %v5704_v45 = vadd.f32 %v2702_v12, %v5331_v52  ;;  %v2190_v27 = vpop.f32.mrf.mxu0  ;;  %v6262_v14 = vld [vmem:[#allocation63_spill] sm:$0xff]  ;;  %v6264_v18 = vld [vmem:[#allocation64_spill] sm:$0xff]  ;;  %v6266_v12 = vld [vmem:[#allocation66_spill] sm:$0xff] }
 0x30c   :  { %v4066_v23 = vpop.eup %4065  ;;  %v5708_v22 = vadd.f32 %v6260_v19, %v5282_v60  ;;  %4089 = vrcp.f32 %v2386_v53  ;;  %v2610_v61 = vadd.f32 1.0, %v4064_v43  ;;  %v1984_v62 = vadd.f32 %v1983_v56, %v5299_v10  ;;  %v1987_v15 = vpop.f32.mrf.mxu1 }
 0x30d   :  { %v4068_v46 = vpop.eup %4067  ;;  %v5713_v16 = vadd.f32 %v6262_v14, %v5279_v21  ;;  %v5717_v52 = vadd.f32 %v6264_v18, %v5282_v60  ;;  %v2703_v63 = vmul.f32 %v4066_v23, %v5518_v55  ;;  %4091 = vtanh.f32 %v2733_v57 }
 0x30e   :  { %6261 = vst [vmem:[#allocation52_spill] sm:$0xff] %v5708_v22  ;;  %v5722_v53 = vadd.f32 %v6266_v12, %v5279_v21  ;;  %4093 = vrcp.f32 %v2610_v61  ;;  %v2387_v56 = vadd.f32 1.0, %v4068_v46  ;;  %v1986_v43 = vadd.f32 %v1985_v36, %v5301_v59  ;;  %v1989_v19 = vpop.f32.mrf.mxu1  ;;  %v6267_v36 = vld [vmem:[#allocation68_spill] sm:$0xff] }
 0x30f   :  { %6263 = vst [vmem:[#allocation53_spill] sm:$0xff] %v5713_v16  ;;  %6265 = vst [vmem:[#allocation54_spill] sm:$0xff] %v5717_v52  ;;  %v4070_v22 = vpop.eup %4069  ;;  %v2735_v14 = vadd.f32 %v2703_v63, %v5307_v3  ;;  %4095 = vpow2.f32 %v3321_v1  ;;  %v3353_v16 = vmul.f32 -1.442695, %v2486_v5  ;;  %v5727_v18 = vadd.f32 %v2190_v27, %v5444_v7  ;;  %v4353_v63 = vld [vmem:[#allocation6] sm:$0xff] }
 0x310   :  { %v4072_v52 = vpop.eup %4071  ;;  %4097 = vrcp.f32 %v2387_v56  ;;  %v2611_v55 = vadd.f32 1.0, %v4070_v22  ;;  %v2263_v57 = vadd.f32 %v1984_v62, %v5440_v34  ;;  %v1988_v23 = vadd.f32 %v1987_v15, %v5299_v10  ;;  %v1993_v61 = vpop.f32.mrf.mxu1 }
 0x311   :  { %v4074_v46 = vpop.eup %4073  ;;  %v5733_v12 = vadd.f32 %v6267_v36, %v5282_v60  ;;  %4099 = vtanh.f32 %v2735_v14  ;;  %v2704_v3 = vmul.f32 %v4072_v52, %v5538_v8  ;;  %v1990_v1 = vadd.f32 %v1989_v19, %v5301_v59 }
 0x312   :  { %v5737_v5 = vpop.eup %4075  ;;  %4101 = vrcp.f32 %v2611_v55  ;;  %v2388_v27 = vadd.f32 1.0, %v4074_v46  ;;  %v2487_v22 = vadd.f32 %v1986_v43, %v5451_v26  ;;  %v1994_v34 = vadd.f32 %v1993_v61, %v5299_v10  ;;  %v1995_v62 = vpop.f32.mrf.mxu1  ;;  %v4354_v61 = vld [vmem:[#allocation6 + $0x8] sm:$0xff] }
 0x313   :  { %v4078_v15 = vpop.eup %4077  ;;  %v2861_v56 = vmul.f32 %v4353_v63, %v5668_v58  ;;  %v2797_v36 = vsub.f32 1.0, %v5668_v58  ;;  %v2736_v14 = vadd.f32 %v2704_v3, %v5323_v37  ;;  %4103 = vpow2.f32 %v3353_v16 }
 0x314   :  { %v5744_v8 = vpop.eup %4079  ;;  %4105 = vrcp.f32 %v2388_v27  ;;  %v2612_v52 = vadd.f32 1.0, %v4078_v15  ;;  %v3322_v19 = vmul.f32 -1.442695, %v2263_v57  ;;  %v2264_v55 = vadd.f32 %v1988_v23, %v5455_v29  ;;  %v1997_v26 = vpop.f32.mrf.mxu1 }
 0x315   :  { %v4082_v43 = vpop.eup %4081  ;;  %v5748_v46 = vmul.f32 %v4354_v61, %v5692_v28  ;;  %4107 = vtanh.f32 %v2736_v14  ;;  %v2488_v63 = vadd.f32 %v1990_v1, %v5459_v4  ;;  %v1996_v58 = vadd.f32 %v1995_v62, %v5301_v59 }
 0x316   :  { %v4084_v37 = vpop.eup %4083  ;;  %4109 = vrcp.f32 %v2612_v52  ;;  %v3354_v16 = vmul.f32 -1.442695, %v2487_v22  ;;  %v2265_v3 = vadd.f32 %v1994_v34, %v5463_v40  ;;  %v2705_v57 = vmul.f32 %v4082_v43, %v5570_v48  ;;  %v1999_v27 = vpop.f32.mrf.mxu1  ;;  %v4355_v48 = vld [vmem:[#allocation6 + $0x10] sm:$0xff] }
 0x317   :  { %v5754_v29 = vpop.eup %4085  ;;  %v2389_v23 = vadd.f32 1.0, %v4084_v37  ;;  %4111 = vtanh.f32 %v5704_v45  ;;  %v1998_v14 = vadd.f32 %v1997_v26, %v5299_v10  ;;  %v3323_v1 = vmul.f32 -1.442695, %v2264_v55 }
 0x318   :  { %v4088_v4 = vpop.eup %4087  ;;  %4113 = vpow2.f32 %v3322_v19  ;;  %v2489_v62 = vadd.f32 %v1996_v58, %v5468_v33  ;;  %v2737_v22 = vadd.f32 %v2705_v57, %v5349_v41  ;;  %v2003_v40 = vpop.f32.mrf.mxu1  ;;  %v2863_v52 = vmul.f32 %v4355_v48, %v5737_v5 }
 0x319   :  { %v4090_v34 = vpop.eup %4089  ;;  %4115 = vrcp.f32 %v2389_v23  ;;  %v2613_v43 = vadd.f32 1.0, %v4088_v4  ;;  %v3355_v61 = vmul.f32 -1.442695, %v2488_v63  ;;  %v3324_v37 = vmul.f32 -1.442695, %v2265_v3 }
 0x31a   :  { %v4092_v45 = vpop.eup %4091  ;;  %4117 = vpow2.f32 %v3354_v16  ;;  %v2000_v26 = vadd.f32 %v1999_v27, %v5301_v59  ;;  %v2706_v19 = vmul.f32 %v4090_v34, %v5590_v32  ;;  %v2005_v55 = vpop.f32.mrf.mxu1  ;;  %v2799_v41 = vsub.f32 1.0, %v5737_v5 }
 0x31b   :  { %v5764_v15 = vpop.eup %4093  ;;  %4119 = vrcp.f32 %v2613_v43  ;;  %v2829_v33 = vmul.f32 %v4092_v45, %v2797_v36  ;;  %v2266_v58 = vadd.f32 %v1998_v14, %v5472_v35  ;;  %v3356_v23 = vmul.f32 -1.442695, %v2489_v62  ;;  %v4356_v36 = vld [vmem:[#allocation6 + $0x18] sm:$0xff] }
 0x31c   :  { %v4096_v57 = vpop.eup %4095  ;;  %4121 = vpow2.f32 %v3323_v1  ;;  %v2490_v63 = vadd.f32 %v2000_v26, %v5476_v39  ;;  %v5770_v16 = vadd.f32 %v2706_v19, %v5365_v54  ;;  %v2007_v3 = vpop.f32.mrf.mxu1  ;;  %v2004_v5 = vadd.f32 %v2003_v40, %v5299_v10 }
 0x31d   :  { %v4098_v27 = vpop.eup %4097  ;;  %v5772_v32 = vadd.f32 %v2861_v56, %v2829_v33  ;;  %v2390_v4 = vadd.f32 1.0, %v4096_v57  ;;  %4123 = vpow2.f32 %v3355_v61  ;;  %v2864_v35 = vmul.f32 %v4356_v36, %v5744_v8  ;;  %v4357_v33 = vld [vmem:[#allocation6 + $0x20] sm:$0xff] }
 0x31e   :  { %v4100_v34 = vpop.eup %4099  ;;  %4125 = vpow2.f32 %v3324_v37  ;;  %v2707_v14 = vmul.f32 %v4098_v27, %v5556_v49  ;;  %v2006_v39 = vadd.f32 %v2005_v55, %v5301_v59  ;;  %v2009_v1 = vpop.f32.mrf.mxu1  ;;  %v2800_v48 = vsub.f32 1.0, %v5744_v8 }
 0x31f   :  { %v5778_v54 = vpop.eup %4101  ;;  %v2831_v62 = vmul.f32 %v4100_v34, %v2799_v41  ;;  %v2925_v56 = vmax.f32 %v5772_v32, 0.0  ;;  %4127 = vrcp.f32 %v2390_v4  ;;  %v3325_v61 = vmul.f32 -1.442695, %v2266_v58 }
 0x320   :  { %v4104_v43 = vpop.eup %4103  ;;  %v2739_v40 = vadd.f32 %v2707_v14, %v5341_v25  ;;  %4129 = vpow2.f32 %v3356_v23  ;;  %v3357_v45 = vmul.f32 -1.442695, %v2490_v63  ;;  %v2013_v37 = vpop.f32.mrf.mxu1  ;;  %v2267_v55 = vadd.f32 %v2004_v5, %v5480_v6 }
 0x321   :  { %v4106_v26 = vpop.eup %4105  ;;  %v2895_v49 = vadd.f32 %v2863_v52, %v2831_v62  ;;  %2957 = vst [vmem:[#allocation11] sm:$0xff] %v2925_v56  ;;  %v2614_v19 = vadd.f32 1.0, %v4104_v43  ;;  %4131 = vtanh.f32 %v2737_v22  ;;  %v5787_v8 = vmul.f32 %v4357_v33, %v5754_v29 }
 0x322   :  { %v4108_v41 = vpop.eup %4107  ;;  %4133 = vtanh.f32 %v2739_v40  ;;  %v2708_v25 = vmul.f32 %v4106_v26, %v5574_v44  ;;  %v2491_v58 = vadd.f32 %v2006_v39, %v5488_v31  ;;  %v2015_v57 = vpop.f32.mrf.mxu1  ;;  %v2008_v22 = vadd.f32 %v2007_v3, %v5299_v10 }
 0x323   :  { %v5791_v23 = vpop.eup %4109  ;;  %v2927_v52 = vmax.f32 %v2895_v49, 0.0  ;;  %v2832_v63 = vmul.f32 %v4108_v41, %v2800_v48  ;;  %4135 = vrcp.f32 %v2614_v19  ;;  %v2801_v6 = vsub.f32 1.0, %v5754_v29 }
 0x324   :  { %v4112_v27 = vpop.eup %4111  ;;  %4137 = vpow2.f32 %v3325_v61  ;;  %v2740_v4 = vadd.f32 %v2708_v25, %v5357_v47  ;;  %v2010_v5 = vadd.f32 %v2009_v1, %v5301_v59  ;;  %v2017_v34 = vpop.f32.mrf.mxu1  ;;  %v6268_v36 = vsub.f32 1.0, %v5692_v28  ;;  %v6269_v25 = vld [vmem:[#allocation77_spill] sm:$0xff] }
 0x325   :  { %v4114_v44 = vpop.eup %4113  ;;  %2959 = vst [vmem:[#allocation11 + $0x10] sm:$0xff] %v2927_v52  ;;  %v2896_v31 = vadd.f32 %v2864_v35, %v2832_v63  ;;  %4139 = vpow2.f32 %v3357_v45  ;;  %v3326_v39 = vmul.f32 -1.442695, %v2267_v55  ;;  %v3358_v3 = vmul.f32 -1.442695, %v2491_v58 }
 0x326   :  { %v2830_v14 = vmul.f32 %v4112_v27, %v6268_v36  ;;  %v4116_v62 = vpop.eup %4115  ;;  %v2391_v48 = vadd.f32 1.0, %v4114_v44  ;;  %4141 = vtanh.f32 %v2740_v4  ;;  %v2014_v43 = vadd.f32 %v2013_v37, %v5299_v10  ;;  %v2019_v40 = vpop.f32.mrf.mxu1  ;;  %v4358_v37 = vld [vmem:[#allocation6 + $0x30] sm:$0xff] }
 0x327   :  { %v4118_v61 = vpop.eup %4117  ;;  %v2928_v47 = vmax.f32 %v2896_v31, 0.0  ;;  %4143 = vtanh.f32 %v5770_v16  ;;  %v2268_v35 = vadd.f32 %v2008_v22, %v5492_v9  ;;  %v2802_v45 = vsub.f32 1.0, %v5764_v15 }
 0x328   :  { %v2894_v1 = vadd.f32 %v5748_v46, %v2830_v14  ;;  %v5803_v26 = vpop.eup %4119  ;;  %4145 = vrcp.f32 %v2391_v48  ;;  %v2615_v28 = vadd.f32 1.0, %v4118_v61  ;;  %v2492_v49 = vadd.f32 %v2010_v5, %v5496_v20  ;;  %v2023_v19 = vpop.f32.mrf.mxu1 }
 0x329   :  { %v4122_v55 = vpop.eup %4121  ;;  %v2867_v41 = vmul.f32 %v4358_v37, %v5778_v54  ;;  %2960 = vst [vmem:[#allocation11 + $0x18] sm:$0xff] %v2928_v47  ;;  %v3448_v33 = vpack.c.bf16 %v2928_v47, %v2927_v52  ;;  %4147 = vpow2.f32 %v3326_v39  ;;  %v2269_v58 = vadd.f32 %v2014_v43, %v6269_v25  ;;  %v6270_v39 = vld [vmem:[#allocation78_spill] sm:$0xff]  ;;  %v6271_v43 = vld [vmem:[#allocation72_spill] sm:$0xff] }
 0x32a   :  { %v2926_v46 = vmax.f32 %v2894_v1, 0.0  ;;  %v4124_v16 = vpop.eup %4123  ;;  %4149 = vrcp.f32 %v2615_v28  ;;  %v2392_v9 = vadd.f32 1.0, %v4122_v55  ;;  %v2016_v63 = vadd.f32 %v2015_v57, %v5301_v59  ;;  %v5810_v22 = vpop.f32.mrf.mxu1  ;;  %v6272_v55 = vld [vmem:[#allocation79_spill] sm:$0xff] }
 0x32b   :  { %v4126_v27 = vpop.eup %4125  ;;  %3520 = vst [vmem:[#allocation12 + $0x8] sm:$0xff] %v3448_v33   ;;  %4151 = vpow2.f32 %v3358_v3  ;;  %v3327_v4 = vmul.f32 -1.442695, %v2268_v35  ;;  %v2709_v52 = vmul.f32 %v4116_v62, %v5600_v13  ;;  %v2616_v44 = vadd.f32 1.0, %v4124_v16 }
 0x32c   :  { %2958 = vst [vmem:[#allocation11 + $0x8] sm:$0xff] %v2926_v46  ;;  %v3443_v20 = vpack.c.bf16 %v2926_v46, %v2925_v56  ;;  %v4128_v5 = vpop.eup %4127  ;;  %4153 = vrcp.f32 %v2392_v9  ;;  %v2393_v31 = vadd.f32 1.0, %v4126_v27  ;;  %v3359_v36 = vmul.f32 -1.442695, %v2492_v49  ;;  %v5815_v14 = vpop.f32.mrf.mxu1 }
 0x32d   :  { %v4130_v57 = vpop.eup %4129  ;;  %v2493_v48 = vadd.f32 %v2016_v63, %v6270_v39  ;;  %v2741_v61 = vadd.f32 %v2709_v52, %v6271_v43  ;;  %v2018_v32 = vadd.f32 %v2017_v34, %v5299_v10  ;;  %v2020_v56 = vadd.f32 %v2019_v40, %v5301_v59  ;;  %v5843_v52 = vpop.f32.mrf.mxu0 }
 0x32e   :  { %3444 = vst [vmem:[#allocation12] sm:$0xff] %v3443_v20   ;;  %v4132_v3 = vpop.eup %4131  ;;  %4155 = vrcp.f32 %v2393_v31  ;;  %v2803_v13 = vsub.f32 1.0, %v5778_v54  ;;  %v3328_v62 = vmul.f32 -1.442695, %v2269_v58  ;;  %v2710_v47 = vmul.f32 %v4128_v5, %v5619_v51  ;;  %v5823_v1 = vpop.f32.mrf.mxu1  ;;  %v6273_v54 = vld [vmem:[#allocation74_spill] sm:$0xff] }
 0x32f   :  { %v4134_v35 = vpop.eup %4133  ;;  %v2617_v28 = vadd.f32 1.0, %v4130_v57  ;;  %v2833_v49 = vmul.f32 %v4132_v3, %v2801_v6  ;;  %4157 = vpow2.f32 %v3327_v4  ;;  %v2270_v37 = vadd.f32 %v2018_v32, %v6272_v55  ;;  %v6274_v6 = vld [vmem:[#allocation37_spill] sm:$0xff]  ;;  %v4360_v32 = vld [vmem:[#allocation6 + $0x28] sm:$0xff] }
 0x330   :  { %v5828_v34 = vpop.eup %4135  ;;  %4159 = vrcp.f32 %v2616_v44  ;;  %v2835_v40 = vmul.f32 %v4134_v35, %v2803_v13  ;;  %v2804_v33 = vsub.f32 1.0, %v5791_v23  ;;  %v5832_v46 = vadd.f32 %v2710_v47, %v6273_v54  ;;  %v5834_v51 = vpop.f32.mrf.mxu1  ;;  %v4359_v44 = vld [vmem:[#allocation6 + $0x38] sm:$0xff]  ;;  %v6275_v47 = vld [vmem:[#allocation67_spill] sm:$0xff] }
 0x331   :  { %v4138_v16 = vpop.eup %4137  ;;  %v5837_v9 = vadd.f32 %v5787_v8, %v2833_v49  ;;  %4161 = vpow2.f32 %v3359_v36  ;;  %v3360_v29 = vmul.f32 -1.442695, %v2493_v48  ;;  %v2494_v25 = vadd.f32 %v2020_v56, %v6274_v6 }
 0x332   :  { %v4140_v58 = vpop.eup %4139  ;;  %v2899_v63 = vadd.f32 %v2867_v41, %v2835_v40  ;;  %v2394_v27 = vadd.f32 1.0, %v4138_v16  ;;  %4163 = vpow2.f32 %v3328_v62  ;;  %v2024_v20 = vadd.f32 %v2023_v19, %v5299_v10  ;;  %v5841_v4 = vpop.f32.mrf.mxu1 }
 0x333   :  { %v4142_v5 = vpop.eup %4141  ;;  %v2868_v31 = vmul.f32 %v4359_v44, %v5791_v23  ;;  %4165 = vrcp.f32 %v2617_v28  ;;  %v2929_v8 = vmax.f32 %v5837_v9, 0.0  ;;  %v3329_v36 = vmul.f32 -1.442695, %v2270_v37  ;;  %v6276_v28 = vld [vmem:[#allocation56_spill] sm:$0xff]  ;;  %v2193_v37 = vpop.f32.mrf.mxu0  ;;  %v6277_v9 = vld [vmem:[#allocation71_spill] sm:$0xff] }
 0x334   :  { %v4144_v57 = vpop.eup %4143  ;;  %v2931_v39 = vmax.f32 %v2899_v63, 0.0  ;;  %4167 = vrcp.f32 %v2394_v27  ;;  %v2836_v41 = vmul.f32 %v4142_v5, %v2804_v33  ;;  %v2618_v48 = vadd.f32 1.0, %v4140_v58  ;;  %v5847_v43 = vpop.f32.mrf.mxu1  ;;  %v6278_v58 = vld [vmem:[#allocation69_spill] sm:$0xff] }
 0x335   :  { %v4146_v19 = vpop.eup %4145  ;;  %v2866_v56 = vmul.f32 %v4360_v32, %v5764_v15  ;;  %2961 = vst [vmem:[#allocation11 + $0x20] sm:$0xff] %v2929_v8  ;;  %v2834_v3 = vmul.f32 %v4144_v57, %v2802_v45  ;;  %4169 = vpow2.f32 %v3360_v29  ;;  %v3361_v23 = vmul.f32 -1.442695, %v2494_v25 }
 0x336   :  { %v4148_v13 = vpop.eup %4147  ;;  %2963 = vst [vmem:[#allocation11 + $0x30] sm:$0xff] %v2931_v39  ;;  %v2900_v62 = vadd.f32 %v2868_v31, %v2836_v41  ;;  %v2711_v35 = vmul.f32 %v4146_v19, %v6275_v47  ;;  %4171 = vtanh.f32 %v2741_v61  ;;  %v2271_v49 = vadd.f32 %v2024_v20, %v6276_v28  ;;  %v5854_v55 = vpop.f32.mrf.mxu1  ;;  %v6282_v28 = vld [vmem:[#allocation59_spill] sm:$0xff] }
 0x337   :  { %v5856_v40 = vpop.eup %4149  ;;  %v2898_v33 = vadd.f32 %v2866_v56, %v2834_v3  ;;  %v2395_v54 = vadd.f32 1.0, %v4148_v13  ;;  %4173 = vpow2.f32 %v3329_v36  ;;  %v2026_v15 = vadd.f32 %v5810_v22, %v5301_v59  ;;  %v5879_v31 = vpop.f32.mrf.mxu0 }
 0x338   :  { %v4152_v45 = vpop.eup %4151  ;;  %v2932_v16 = vmax.f32 %v2900_v62, 0.0  ;;  %4175 = vrcp.f32 %v2618_v48  ;;  %v2743_v29 = vadd.f32 %v2711_v35, %v6277_v9  ;;  %v2028_v61 = vadd.f32 %v5815_v14, %v5299_v10  ;;  %v5863_v6 = vpop.f32.mrf.mxu1  ;;  %v6279_v48 = vld [vmem:[#allocation38_spill] sm:$0xff] }
 0x339   :  { %v4154_v25 = vpop.eup %4153  ;;  %v5867_v63 = vadd.f32 %v6278_v58, %v5279_v21  ;;  %v2930_v27 = vmax.f32 %v2898_v33, 0.0  ;;  %4177 = vrcp.f32 %v2395_v54  ;;  %v5870_v20 = vadd.f32 %v2193_v37, %v5444_v7  ;;  %v2206_v54 = vpop.f32.mrf.mxu0 }
 0x33a   :  { %2964 = vst [vmem:[#allocation11 + $0x38] sm:$0xff] %v2932_v16  ;;  %v3458_v22 = vpack.c.bf16 %v2932_v16, %v2931_v39  ;;  %4179 = vtanh.f32 %v2743_v29  ;;  %v2712_v5 = vmul.f32 %v4154_v25, %v5616_v30  ;;  %v5873_v44 = vpop.f32.mrf.mxu1  ;;  %v5877_v14 = vadd.f32 %v5681_v11, %v5444_v7  ;;  %v6280_v39 = vld [vmem:[#allocation73_spill] sm:$0xff]  ;;  %v6281_v30 = vld [vmem:[#allocation39_spill] sm:$0xff]  ;;  %v6284_v29 = vld [vmem:[#allocation40_spill] sm:$0xff] }
 0x33b   :  { %v4156_v21 = vpop.eup %4155  ;;  %2962 = vst [vmem:[#allocation11 + $0x28] sm:$0xff] %v2930_v27  ;;  %v3453_v36 = vpack.c.bf16 %v2930_v27, %v2929_v8  ;;  %v2619_v57 = vadd.f32 1.0, %v4152_v45  ;;  %v3330_v41 = vmul.f32 -1.442695, %v2271_v49  ;;  %v2495_v19 = vadd.f32 %v2026_v15, %v6279_v48  ;;  %v6283_v45 = vld [vmem:[#allocation62_spill] sm:$0xff] }
 0x33c   :  { %v4158_v32 = vpop.eup %4157  ;;  %3522 = vst [vmem:[#allocation12 + $0x18] sm:$0xff] %v3458_v22   ;;  %v2744_v56 = vadd.f32 %v2712_v5, %v6280_v39  ;;  %4181 = vpow2.f32 %v3361_v23  ;;  %v2272_v3 = vadd.f32 %v2028_v61, %v6281_v30  ;;  %v2030_v11 = vadd.f32 %v5823_v1, %v5301_v59  ;;  %v5886_v13 = vpop.f32.mrf.mxu1 }
 0x33d   :  { %v5888_v62 = vpop.eup %4159  ;;  %3521 = vst [vmem:[#allocation12 + $0x10] sm:$0xff] %v3453_v36   ;;  %v2396_v8 = vadd.f32 1.0, %v4158_v32  ;;  %4183 = vtanh.f32 %v5832_v46  ;;  %v2034_v47 = vadd.f32 %v5834_v51, %v5299_v10  ;;  %v2036_v35 = vadd.f32 %v5841_v4, %v5301_v59 }
 0x33e   :  { %v4162_v23 = vpop.eup %4161  ;;  %4185 = vtanh.f32 %v2744_v56  ;;  %v2496_v49 = vadd.f32 %v2030_v11, %v6282_v28  ;;  %v2713_v1 = vmul.f32 %v4156_v21, %v5654_v24  ;;  %v5897_v37 = vpop.f32.mrf.mxu1  ;;  %v5901_v33 = vadd.f32 %v5843_v52, %v5444_v7  ;;  %v6285_v24 = vld [vmem:[#allocation76_spill] sm:$0xff]  ;;  %v4361_v52 = vld [vmem:[#allocation6 + $0x40] sm:$0xff] }
 0x33f   :  { %v4164_v46 = vpop.eup %4163  ;;  %4187 = vrcp.f32 %v2396_v8  ;;  %v2620_v15 = vadd.f32 1.0, %v4162_v23  ;;  %v3362_v51 = vmul.f32 -1.442695, %v2495_v19  ;;  %v2273_v16 = vadd.f32 %v2034_v47, %v6283_v45  ;;  %v6286_v23 = vld [vmem:[#allocation41_spill] sm:$0xff] }
 0x340   :  { %v5904_v4 = vpop.eup %4165  ;;  %v2397_v9 = vadd.f32 1.0, %v4164_v46  ;;  %4189 = vpow2.f32 %v3330_v41  ;;  %v2497_v61 = vadd.f32 %v2036_v35, %v6284_v29  ;;  %v2745_v25 = vadd.f32 %v2713_v1, %v6285_v24  ;;  %v5908_v58 = vpop.f32.mrf.mxu1  ;;  %v4362_v45 = vld [vmem:[#allocation6 + $0x50] sm:$0xff] }
 0x341   :  { %v4168_v27 = vpop.eup %4167  ;;  %v2869_v22 = vmul.f32 %v4361_v52, %v5803_v26  ;;  %4191 = vrcp.f32 %v2619_v57  ;;  %v3331_v5 = vmul.f32 -1.442695, %v2272_v3  ;;  %v5912_v21 = vadd.f32 %v2206_v54, %v5444_v7  ;;  %v6288_v29 = vld [vmem:[#allocation65_spill] sm:$0xff] }
 0x342   :  { %v4170_v36 = vpop.eup %4169  ;;  %4193 = vrcp.f32 %v2620_v15  ;;  %v2805_v48 = vsub.f32 1.0, %v5803_v26  ;;  %v3363_v41 = vmul.f32 -1.442695, %v2496_v49  ;;  %v2038_v19 = vadd.f32 %v5847_v43, %v5299_v10  ;;  %v5917_v32 = vpop.f32.mrf.mxu1  ;;  %v6287_v49 = vld [vmem:[#allocation20_spill] sm:$0xff] }
 0x343   :  { %v4172_v39 = vpop.eup %4171  ;;  %4195 = vrcp.f32 %v2397_v9  ;;  %v2806_v56 = vsub.f32 1.0, %v5828_v34  ;;  %v2040_v57 = vadd.f32 %v5854_v55, %v5301_v59  ;;  %v2714_v30 = vmul.f32 %v4168_v27, %v5663_v17 }
 0x344   :  { %v4174_v3 = vpop.eup %4173  ;;  %v2837_v11 = vmul.f32 %v4172_v39, %v2805_v48  ;;  %4197 = vpow2.f32 %v3362_v51  ;;  %v3332_v8 = vmul.f32 -1.442695, %v2273_v16  ;;  %v3364_v26 = vmul.f32 -1.442695, %v2497_v61  ;;  %v5923_v47 = vpop.f32.mrf.mxu1 }
 0x345   :  { %v5925_v35 = vpop.eup %4175  ;;  %v2398_v43 = vadd.f32 1.0, %v4174_v3  ;;  %4199 = vpow2.f32 %v3331_v5  ;;  %v2274_v28 = vadd.f32 %v2038_v19, %v6286_v23  ;;  %v5929_v1 = vadd.f32 %v2714_v30, %v6287_v49  ;;  %v5949_v30 = vpop.f32.mrf.mxu0 }
 0x346   :  { %v4178_v54 = vpop.eup %4177  ;;  %v2807_v55 = vsub.f32 1.0, %v5856_v40  ;;  %v5932_v17 = vadd.f32 %v2869_v22, %v2837_v11  ;;  %4201 = vpow2.f32 %v3363_v41  ;;  %v2044_v46 = vadd.f32 %v5863_v6, %v5299_v10  ;;  %v5936_v15 = vpop.f32.mrf.mxu1  ;;  %v6289_v6 = vld [vmem:[#allocation75_spill] sm:$0xff]  ;;  %v4363_v11 = vld [vmem:[#allocation6 + $0x48] sm:$0xff] }
 0x347   :  { %v4180_v51 = vpop.eup %4179  ;;  %v2871_v16 = vmul.f32 %v4362_v45, %v5856_v40  ;;  %4203 = vrcp.f32 %v2398_v43  ;;  %v2715_v9 = vmul.f32 %v4178_v54, %v5690_v0  ;;  %v2498_v61 = vadd.f32 %v2040_v57, %v6288_v29  ;;  %v6290_v40 = vld [vmem:[#allocation42_spill] sm:$0xff]  ;;  %v2209_v29 = vpop.f32.mrf.mxu0 }
 0x348   :  { %v2839_v24 = vmul.f32 %v4180_v51, %v2807_v55  ;;  %v2621_v27 = vadd.f32 1.0, %v4170_v36  ;;  %v2933_v52 = vmax.f32 %v5932_v17, 0.0  ;;  %4205 = vpow2.f32 %v3332_v8  ;;  %v5947_v36 = vpop.f32.mrf.mxu1 }
 0x349   :  { %v4182_v22 = vpop.eup %4181  ;;  %v2808_v5 = vsub.f32 1.0, %v5888_v62  ;;  %v2747_v48 = vadd.f32 %v2715_v9, %v6289_v6  ;;  %4207 = vpow2.f32 %v3364_v26  ;;  %v3333_v41 = vmul.f32 -1.442695, %v2274_v28  ;;  %v4364_v28 = vld [vmem:[#allocation6 + $0x58] sm:$0xff] }
 0x34a   :  { %v4184_v19 = vpop.eup %4183  ;;  %v2903_v39 = vadd.f32 %v2871_v16, %v2839_v24  ;;  %2965 = vst [vmem:[#allocation11 + $0x40] sm:$0xff] %v2933_v52  ;;  %4209 = vtanh.f32 %v2745_v25  ;;  %v2275_v0 = vadd.f32 %v2044_v46, %v6290_v40  ;;  %v2046_v57 = vadd.f32 %v5873_v44, %v5301_v59  ;;  %v6291_v16 = vld [vmem:[#allocation43_spill] sm:$0xff] }
 0x34b   :  { %v4186_v3 = vpop.eup %4185  ;;  %v2870_v8 = vmul.f32 %v4363_v11, %v5828_v34  ;;  %v2838_v43 = vmul.f32 %v4184_v19, %v2806_v56  ;;  %4211 = vtanh.f32 %v2747_v48  ;;  %v3365_v26 = vmul.f32 -1.442695, %v2498_v61 }
 0x34c   :  { %v4188_v23 = vpop.eup %4187  ;;  %v2872_v25 = vmul.f32 %v4364_v28, %v5888_v62  ;;  %v2935_v49 = vmax.f32 %v2903_v39, 0.0  ;;  %4213 = vrcp.f32 %v2621_v27  ;;  %v2840_v54 = vmul.f32 %v4186_v3, %v2808_v5  ;;  %v5959_v62 = vpop.f32.mrf.mxu1  ;;  %v6292_v27 = vld [vmem:[#allocation19_spill] sm:$0xff] }
 0x34d   :  { %v4190_v55 = vpop.eup %4189  ;;  %v2902_v44 = vadd.f32 %v2870_v8, %v2838_v43  ;;  %4215 = vpow2.f32 %v3333_v41  ;;  %v2716_v17 = vmul.f32 %v4188_v23, %v5700_v50  ;;  %v2048_v46 = vadd.f32 %v5886_v13, %v5299_v10  ;;  %v4365_v39 = vld [vmem:[#allocation6 + $0x60] sm:$0xff] }
 0x34e   :  { %v5956_v51 = vpop.eup %4191  ;;  %2967 = vst [vmem:[#allocation11 + $0x50] sm:$0xff] %v2935_v49  ;;  %v2904_v34 = vadd.f32 %v2872_v25, %v2840_v54  ;;  %v2399_v56 = vadd.f32 1.0, %v4190_v55  ;;  %v3334_v45 = vmul.f32 -1.442695, %v2275_v0  ;;  %v2499_v9 = vadd.f32 %v2046_v57, %v6291_v16  ;;  %v5974_v43 = vpop.f32.mrf.mxu1  ;;  %v6295_v54 = vld [vmem:[#allocation46_spill] sm:$0xff] }
 0x34f   :  { %v5961_v61 = vpop.eup %4193  ;;  %v2934_v24 = vmax.f32 %v2902_v44, 0.0  ;;  %v2748_v5 = vadd.f32 %v2716_v17, %v6292_v27  ;;  %4217 = vpow2.f32 %v3365_v26  ;;  %v2050_v50 = vadd.f32 %v5897_v37, %v5301_v59  ;;  %v4366_v17 = vld [vmem:[#allocation6 + $0x70] sm:$0xff] }
 0x350   :  { %v4196_v13 = vpop.eup %4195  ;;  %v2936_v6 = vmax.f32 %v2904_v34, 0.0  ;;  %v2622_v48 = vadd.f32 1.0, %v4182_v22  ;;  %4219 = vrcp.f32 %v2399_v56  ;;  %v2054_v41 = vadd.f32 %v5908_v58, %v5299_v10  ;;  %v6293_v22 = vld [vmem:[#allocation44_spill] sm:$0xff]  ;;  %v5986_v27 = vpop.f32.mrf.mxu1 }
 0x351   :  { %v4198_v19 = vpop.eup %4197  ;;  %v2873_v40 = vmul.f32 %v4365_v39, %v5904_v4  ;;  %2966 = vst [vmem:[#allocation11 + $0x48] sm:$0xff] %v2934_v24  ;;  %v3463_v0 = vpack.c.bf16 %v2934_v24, %v2933_v52  ;;  %4221 = vtanh.f32 %v2748_v5  ;;  %v5970_v57 = vadd.f32 %v2209_v29, %v5444_v7  ;;  %v6294_v52 = vld [vmem:[#allocation45_spill] sm:$0xff]  ;;  %v6296_v29 = vld [vmem:[#allocation22_spill] sm:$0xff] }
 0x352   :  { %v4200_v3 = vpop.eup %4199  ;;  %2968 = vst [vmem:[#allocation11 + $0x58] sm:$0xff] %v2936_v6  ;;  %v3468_v37 = vpack.c.bf16 %v2936_v6, %v2935_v49  ;;  %v2623_v11 = vadd.f32 1.0, %v4198_v19  ;;  %4223 = vtanh.f32 %v5929_v1  ;;  %v2276_v8 = vadd.f32 %v2048_v46, %v6293_v22 }
 0x353   :  { %v4202_v58 = vpop.eup %4201  ;;  %3523 = vst [vmem:[#allocation12 + $0x20] sm:$0xff] %v3463_v0   ;;  %v2400_v26 = vadd.f32 1.0, %v4200_v3  ;;  %4225 = vpow2.f32 %v3334_v45  ;;  %v3366_v23 = vmul.f32 -1.442695, %v2499_v9  ;;  %v2500_v28 = vadd.f32 %v2050_v50, %v6294_v52  ;;  %v6298_v3 = vld [vmem:[#allocation24_spill] sm:$0xff] }
 0x354   :  { %v4204_v25 = vpop.eup %4203  ;;  %3524 = vst [vmem:[#allocation12 + $0x28] sm:$0xff] %v3468_v37   ;;  %4227 = vrcp.f32 %v2622_v48  ;;  %v2277_v55 = vadd.f32 %v2054_v41, %v6295_v54  ;;  %v2056_v49 = vadd.f32 %v5917_v32, %v5301_v59  ;;  %v2717_v1 = vmul.f32 %v4196_v13, %v5727_v18  ;;  %v4367_v52 = vld [vmem:[#allocation6 + $0x68] sm:$0xff] }
 0x355   :  { %v4206_v44 = vpop.eup %4205  ;;  %v2875_v46 = vmul.f32 %v4366_v17, %v5956_v51  ;;  %4229 = vrcp.f32 %v2400_v26  ;;  %v2809_v34 = vsub.f32 1.0, %v5904_v4  ;;  %v2058_v56 = vadd.f32 %v5923_v47, %v5299_v10  ;;  %v6297_v47 = vld [vmem:[#allocation47_spill] sm:$0xff] }
 0x356   :  { %v4208_v45 = vpop.eup %4207  ;;  %4231 = vrcp.f32 %v2623_v11  ;;  %v2401_v16 = vadd.f32 1.0, %v4206_v44  ;;  %v3335_v9 = vmul.f32 -1.442695, %v2276_v8  ;;  %v2749_v24 = vadd.f32 %v2717_v1, %v6296_v29  ;;  %v6003_v8 = vpop.f32.mrf.mxu1  ;;  %v4368_v1 = vld [vmem:[#allocation6 + $0x78] sm:$0xff] }
 0x357   :  { %v4210_v32 = vpop.eup %4209  ;;  %v2811_v18 = vsub.f32 1.0, %v5956_v51  ;;  %4233 = vpow2.f32 %v3366_v23  ;;  %v3367_v5 = vmul.f32 -1.442695, %v2500_v28  ;;  %v2718_v50 = vmul.f32 %v4204_v25, %v5870_v20 }
 0x358   :  { %v4212_v13 = vpop.eup %4211  ;;  %4235 = vrcp.f32 %v2401_v16  ;;  %v2841_v4 = vmul.f32 %v4210_v32, %v2809_v34  ;;  %v3336_v6 = vmul.f32 -1.442695, %v2277_v55  ;;  %v2501_v48 = vadd.f32 %v2056_v49, %v6297_v47 }
 0x359   :  { %v5991_v41 = vpop.eup %4213  ;;  %v2624_v19 = vadd.f32 1.0, %v4202_v58  ;;  %v2843_v39 = vmul.f32 %v4212_v13, %v2811_v18  ;;  %v2278_v0 = vadd.f32 %v2058_v56, %v5645_v38  ;;  %v5995_v37 = vadd.f32 %v2718_v50, %v6298_v3  ;;  %v6012_v56 = vpop.f32.mrf.mxu1 }
 0x35a   :  { %v4216_v51 = vpop.eup %4215  ;;  %v5997_v11 = vadd.f32 %v2873_v40, %v2841_v4  ;;  %4237 = vpow2.f32 %v3335_v9  ;;  %v2060_v20 = vadd.f32 %v5936_v15, %v5301_v59  ;;  %v2064_v22 = vadd.f32 %v5947_v36, %v5299_v10  ;;  %v6300_v9 = vld [vmem:[#allocation48_spill] sm:$0xff] }
 0x35b   :  { %v2907_v26 = vadd.f32 %v2875_v46, %v2843_v39  ;;  %v2625_v58 = vadd.f32 1.0, %v4208_v45  ;;  %v2402_v23 = vadd.f32 1.0, %v4216_v51  ;;  %4239 = vpow2.f32 %v3367_v5  ;;  %v6299_v46 = vld [vmem:[#allocation49_spill] sm:$0xff] }
 0x35c   :  { %v4218_v38 = vpop.eup %4217  ;;  %v2874_v28 = vmul.f32 %v4367_v52, %v5925_v35  ;;  %v2937_v40 = vmax.f32 %v5997_v11, 0.0  ;;  %v2810_v25 = vsub.f32 1.0, %v5925_v35  ;;  %4241 = vpow2.f32 %v3336_v6  ;;  %v6301_v5 = vld [vmem:[#allocation21_spill] sm:$0xff]  ;;  %v6303_v52 = vld [vmem:[#allocation23_spill] sm:$0xff] }
 0x35d   :  { %v4220_v54 = vpop.eup %4219  ;;  %v2939_v15 = vmax.f32 %v2907_v26, 0.0  ;;  %4243 = vrcp.f32 %v2402_v23  ;;  %v2812_v36 = vsub.f32 1.0, %v5961_v61  ;;  %v3337_v55 = vmul.f32 -1.442695, %v2278_v0 }
 0x35e   :  { %v4222_v49 = vpop.eup %4221  ;;  %v2876_v44 = vmul.f32 %v4368_v1, %v5961_v61  ;;  %4245 = vrcp.f32 %v2624_v19  ;;  %2969 = vst [vmem:[#allocation11 + $0x60] sm:$0xff] %v2937_v40  ;;  %v2719_v17 = vmul.f32 %v4220_v54, %v5877_v14  ;;  %v2279_v34 = vadd.f32 %v2064_v22, %v6299_v46  ;;  %v6302_v22 = vld [vmem:[#allocation50_spill] sm:$0xff] }
 0x35f   :  { %v4224_v35 = vpop.eup %4223  ;;  %2971 = vst [vmem:[#allocation11 + $0x70] sm:$0xff] %v2939_v15  ;;  %4247 = vrcp.f32 %v2625_v58  ;;  %v2844_v45 = vmul.f32 %v4222_v49, %v2812_v36  ;;  %v3368_v16 = vmul.f32 -1.442695, %v2501_v48  ;;  %v2502_v29 = vadd.f32 %v2060_v20, %v6300_v9  ;;  %v6304_v46 = vld [vmem:[#allocation26_spill] sm:$0xff] }
 0x360   :  { %v4226_v32 = vpop.eup %4225  ;;  %v2842_v18 = vmul.f32 %v4224_v35, %v2810_v25  ;;  %v2751_v50 = vadd.f32 %v2719_v17, %v6301_v5  ;;  %4249 = vtanh.f32 %v2749_v24  ;;  %v2066_v61 = vadd.f32 %v5959_v62, %v5301_v59  ;;  %v2077_v24 = vpop.f32.mrf.mxu1 }
 0x361   :  { %v6018_v14 = vpop.eup %4227  ;;  %v2908_v13 = vadd.f32 %v2876_v44, %v2844_v45  ;;  %v2403_v4 = vadd.f32 1.0, %v4226_v32  ;;  %4251 = vpow2.f32 %v3337_v55  ;;  %v2068_v6 = vadd.f32 %v5974_v43, %v5299_v10  ;;  %v6047_v35 = vpop.f32.mrf.mxu0 }
 0x362   :  { %v4230_v47 = vpop.eup %4229  ;;  %v2906_v48 = vadd.f32 %v2874_v28, %v2842_v18  ;;  %4253 = vtanh.f32 %v2751_v50  ;;  %v3338_v19 = vmul.f32 -1.442695, %v2279_v34  ;;  %v6024_v39 = vadd.f32 %v5879_v31, %v5444_v7  ;;  %v6039_v54 = vpop.f32.mrf.mxu1  ;;  %v4370_v50 = vld [vmem:[#allocation6 + $0x88] sm:$0xff] }
 0x363   :  { %v6026_v0 = vpop.eup %4231  ;;  %v2940_v62 = vmax.f32 %v2908_v13, 0.0  ;;  %v2626_v3 = vadd.f32 1.0, %v4218_v38  ;;  %4255 = vrcp.f32 %v2403_v4  ;;  %v2720_v51 = vmul.f32 %v4230_v47, %v5901_v33  ;;  %v6305_v13 = vld [vmem:[#allocation51_spill] sm:$0xff] }
 0x364   :  { %v4234_v11 = vpop.eup %4233  ;;  %v2938_v20 = vmax.f32 %v2906_v48, 0.0  ;;  %4257 = vpow2.f32 %v3368_v16  ;;  %v3369_v43 = vmul.f32 -1.442695, %v2502_v29  ;;  %v2503_v26 = vadd.f32 %v2066_v61, %v6302_v22  ;;  %v2083_v29 = vpop.f32.mrf.mxu1 }
 0x365   :  { %v4236_v58 = vpop.eup %4235  ;;  %2972 = vst [vmem:[#allocation11 + $0x78] sm:$0xff] %v2940_v62  ;;  %v3478_v23 = vpack.c.bf16 %v2940_v62, %v2939_v15  ;;  %v2752_v31 = vadd.f32 %v2720_v51, %v6303_v52  ;;  %4259 = vtanh.f32 %v5995_v37  ;;  %v2280_v28 = vadd.f32 %v2068_v6, %v5676_v42  ;;  %v4369_v15 = vld [vmem:[#allocation6 + $0x80] sm:$0xff] }
 0x366   :  { %2970 = vst [vmem:[#allocation11 + $0x68] sm:$0xff] %v2938_v20  ;;  %v3473_v38 = vpack.c.bf16 %v2938_v20, %v2937_v40  ;;  %4261 = vpow2.f32 %v3338_v19  ;;  %v2074_v33 = vadd.f32 %v6003_v8, %v5299_v10  ;;  %v6037_v25 = vadd.f32 %v5949_v30, %v5444_v7  ;;  %v6306_v19 = vld [vmem:[#allocation28_spill] sm:$0xff] }
 0x367   :  { %v4238_v36 = vpop.eup %4237  ;;  %v2877_v55 = vmul.f32 %v4369_v15, %v5991_v41  ;;  %3526 = vst [vmem:[#allocation12 + $0x38] sm:$0xff] %v3478_v23   ;;  %4263 = vrcp.f32 %v2626_v3  ;;  %v2627_v37 = vadd.f32 1.0, %v4234_v11  ;;  %v2721_v42 = vmul.f32 %v4236_v58, %v5912_v21  ;;  %v6307_v3 = vld [vmem:[#allocation52_spill] sm:$0xff]  ;;  %v6308_v11 = vld [vmem:[#allocation53_spill] sm:$0xff] }
 0x368   :  { %v4240_v40 = vpop.eup %4239  ;;  %3525 = vst [vmem:[#allocation12 + $0x30] sm:$0xff] %v3473_v38   ;;  %v2404_v49 = vadd.f32 1.0, %v4238_v36  ;;  %4265 = vtanh.f32 %v2752_v31  ;;  %v2070_v8 = vadd.f32 %v5986_v27, %v5301_v59  ;;  %v2281_v30 = vadd.f32 %v2074_v33, %v5696_v2 }
 0x369   :  { %v4242_v1 = vpop.eup %4241  ;;  %4267 = vpow2.f32 %v3369_v43  ;;  %v3370_v44 = vmul.f32 -1.442695, %v2503_v26  ;;  %v3339_v17 = vmul.f32 -1.442695, %v2280_v28  ;;  %v2753_v34 = vadd.f32 %v2721_v42, %v6304_v46  ;;  %v2085_v43 = vpop.f32.mrf.mxu1  ;;  %v4371_v26 = vld [vmem:[#allocation6 + $0x90] sm:$0xff] }
 0x36a   :  { %v4244_v45 = vpop.eup %4243  ;;  %4269 = vrcp.f32 %v2404_v49  ;;  %v2405_v21 = vadd.f32 1.0, %v4242_v1  ;;  %v2076_v16 = vadd.f32 %v6012_v56, %v5301_v59  ;;  %v2078_v9 = vadd.f32 %v2077_v24, %v5299_v10 }
 0x36b   :  { %v6052_v27 = vpop.eup %4245  ;;  %4271 = vrcp.f32 %v2627_v37  ;;  %v2628_v2 = vadd.f32 1.0, %v4240_v40  ;;  %v2813_v32 = vsub.f32 1.0, %v5991_v41  ;;  %v2722_v18 = vmul.f32 %v4244_v45, %v5970_v57  ;;  %v2222_v41 = vpop.f32.mrf.mxu0 }
 0x36c   :  { %v6056_v5 = vpop.eup %4247  ;;  %v2878_v61 = vmul.f32 %v4370_v50, %v6018_v14  ;;  %4273 = vrcp.f32 %v2405_v21  ;;  %v2504_v4 = vadd.f32 %v2070_v8, %v6305_v13  ;;  %v3340_v56 = vmul.f32 -1.442695, %v2281_v30  ;;  %v2087_v1 = vpop.f32.mrf.mxu1 }
 0x36d   :  { %v4250_v6 = vpop.eup %4249  ;;  %v2815_v47 = vsub.f32 1.0, %v6026_v0  ;;  %v2814_v48 = vsub.f32 1.0, %v6018_v14  ;;  %4275 = vpow2.f32 %v3339_v17  ;;  %v6063_v24 = vadd.f32 %v2722_v18, %v6306_v19  ;;  %v6073_v42 = vpop.f32.mrf.mxu0  ;;  %v6309_v17 = vld [vmem:[#allocation25_spill] sm:$0xff] }
 0x36e   :  { %v4252_v57 = vpop.eup %4251  ;;  %v2845_v62 = vmul.f32 %v4250_v6, %v2813_v32  ;;  %4277 = vpow2.f32 %v3370_v44  ;;  %v2505_v51 = vadd.f32 %v2076_v16, %v6307_v3  ;;  %v2282_v20 = vadd.f32 %v2078_v9, %v6308_v11 }
 0x36f   :  { %v4254_v22 = vpop.eup %4253  ;;  %v2879_v58 = vmul.f32 %v4371_v26, %v6026_v0  ;;  %4279 = vrcp.f32 %v2628_v2  ;;  %v2406_v23 = vadd.f32 1.0, %v4252_v57  ;;  %v2084_v14 = vadd.f32 %v2083_v29, %v5299_v10  ;;  %v6310_v2 = vld [vmem:[#allocation54_spill] sm:$0xff]  ;;  %v2225_v50 = vpop.f32.mrf.mxu0  ;;  %v6311_v26 = vld [vmem:[#allocation27_spill] sm:$0xff] }
 0x370   :  { %v4256_v52 = vpop.eup %4255  ;;  %v2847_v31 = vmul.f32 %v4254_v22, %v2815_v47  ;;  %v2909_v28 = vadd.f32 %v2877_v55, %v2845_v62  ;;  %v3371_v38 = vmul.f32 -1.442695, %v2504_v4  ;;  %4281 = vpow2.f32 %v3340_v56  ;;  %v4372_v4 = vld [vmem:[#allocation6 + $0x98] sm:$0xff] }
 0x371   :  { %v4258_v33 = vpop.eup %4257  ;;  %4283 = vrcp.f32 %v2406_v23  ;;  %v2816_v36 = vsub.f32 1.0, %v6052_v27  ;;  %v2723_v15 = vmul.f32 %v4256_v52, %v6024_v39  ;;  %v2080_v37 = vadd.f32 %v6039_v54, %v5301_v59 }
 0x372   :  { %v4260_v0 = vpop.eup %4259  ;;  %v2911_v40 = vadd.f32 %v2879_v58, %v2847_v31  ;;  %v2941_v49 = vmax.f32 %v2909_v28, 0.0  ;;  %v3372_v8 = vmul.f32 -1.442695, %v2505_v51  ;;  %v3341_v30 = vmul.f32 -1.442695, %v2282_v20 }
 0x373   :  { %v4262_v55 = vpop.eup %4261  ;;  %v2846_v44 = vmul.f32 %v4260_v0, %v2814_v48  ;;  %v2755_v46 = vadd.f32 %v2723_v15, %v6309_v17  ;;  %4285 = vtanh.f32 %v2753_v34  ;;  %v2283_v45 = vadd.f32 %v2084_v14, %v5722_v53  ;;  %v2089_v14 = vpop.f32.mrf.mxu1 }
 0x374   :  { %v6077_v21 = vpop.eup %4263  ;;  %v2943_v39 = vmax.f32 %v2911_v40, 0.0  ;;  %v2629_v16 = vadd.f32 1.0, %v4258_v33  ;;  %2973 = vst [vmem:[#allocation11 + $0x80] sm:$0xff] %v2941_v49  ;;  %v2407_v54 = vadd.f32 1.0, %v4262_v55  ;;  %4287 = vpow2.f32 %v3371_v38  ;;  %v6312_v33 = vld [vmem:[#allocation30_spill] sm:$0xff]  ;;  %v4373_v55 = vld [vmem:[#allocation6 + $0xa0] sm:$0xff] }
 0x375   :  { %v4266_v9 = vpop.eup %4265  ;;  %v2910_v29 = vadd.f32 %v2878_v61, %v2846_v44  ;;  %4289 = vtanh.f32 %v2755_v46  ;;  %v2506_v32 = vadd.f32 %v2080_v37, %v6310_v2  ;;  %v2088_v18 = vadd.f32 %v2087_v1, %v5299_v10 }
 0x376   :  { %v4268_v13 = vpop.eup %4267  ;;  %v2880_v34 = vmul.f32 %v4372_v4, %v6052_v27  ;;  %2975 = vst [vmem:[#allocation11 + $0x90] sm:$0xff] %v2943_v39  ;;  %v2848_v53 = vmul.f32 %v4266_v9, %v2816_v36  ;;  %4291 = vrcp.f32 %v2407_v54  ;;  %v2223_v56 = vadd.f32 %v2222_v41, %v5444_v7 }
 0x377   :  { %v4270_v6 = vpop.eup %4269  ;;  %v2942_v47 = vmax.f32 %v2910_v29, 0.0  ;;  %4293 = vpow2.f32 %v3341_v30  ;;  %v3342_v48 = vmul.f32 -1.442695, %v2283_v45  ;;  %v2086_v61 = vadd.f32 %v2085_v43, %v5301_v59  ;;  %v6313_v30 = vld [vmem:[#allocation70_spill] sm:$0xff]  ;;  %v6101_v29 = vpop.f32.mrf.mxu1 }
 0x378   :  { %v4272_v19 = vpop.eup %4271  ;;  %4295 = vrcp.f32 %v2629_v16  ;;  %v2912_v57 = vadd.f32 %v2880_v34, %v2848_v53  ;;  %v2724_v10 = vmul.f32 %v4270_v6, %v6037_v25  ;;  %v2226_v62 = vadd.f32 %v2225_v50, %v5444_v7 }
 0x379   :  { %v4274_v3 = vpop.eup %4273  ;;  %2974 = vst [vmem:[#allocation11 + $0x88] sm:$0xff] %v2942_v47  ;;  %v3483_v27 = vpack.c.bf16 %v2942_v47, %v2941_v49  ;;  %4297 = vpow2.f32 %v3372_v8  ;;  %v3373_v51 = vmul.f32 -1.442695, %v2506_v32  ;;  %v2284_v41 = vadd.f32 %v2088_v18, %v5867_v63 }
 0x37a   :  { %v4276_v11 = vpop.eup %4275  ;;  %v2944_v20 = vmax.f32 %v2912_v57, 0.0  ;;  %v2630_v22 = vadd.f32 1.0, %v4268_v13  ;;  %v2756_v58 = vadd.f32 %v2724_v10, %v6311_v26  ;;  %4299 = vtanh.f32 %v6063_v24  ;;  %v2238_v57 = vpop.f32.mrf.mxu1  ;;  %v4376_v26 = vld [vmem:[#allocation6 + $0xb8] sm:$0xff] }
 0x37b   :  { %v4278_v43 = vpop.eup %4277  ;;  %3527 = vst [vmem:[#allocation12 + $0x40] sm:$0xff] %v3483_v27   ;;  %v2408_v23 = vadd.f32 1.0, %v4276_v11  ;;  %4301 = vpow2.f32 %v3342_v48  ;;  %v2507_v25 = vadd.f32 %v2086_v61, %v5733_v12  ;;  %v2725_v52 = vmul.f32 %v4274_v3, %v2223_v56  ;;  %v6315_v48 = vld [vmem:[#allocation29_spill] sm:$0xff]  ;;  %v4375_v27 = vld [vmem:[#allocation6 + $0xa8] sm:$0xff] }
 0x37c   :  { %v6090_v31 = vpop.eup %4279  ;;  %2976 = vst [vmem:[#allocation11 + $0x98] sm:$0xff] %v2944_v20  ;;  %v3488_v28 = vpack.c.bf16 %v2944_v20, %v2943_v39  ;;  %4303 = vtanh.f32 %v2756_v58  ;;  %v3343_v38 = vmul.f32 -1.442695, %v2284_v41  ;;  %v2631_v24 = vadd.f32 1.0, %v4278_v43 }
 0x37d   :  { %v4282_v63 = vpop.eup %4281  ;;  %4305 = vrcp.f32 %v2408_v23  ;;  %v2757_v36 = vadd.f32 %v2725_v52, %v6312_v33  ;;  %v2090_v0 = vadd.f32 %v2089_v14, %v5301_v59  ;;  %v2817_v12 = vsub.f32 1.0, %v6056_v5  ;;  %v6314_v59 = vld [vmem:[#allocation32_spill] sm:$0xff] }
 0x37e   :  { %v4284_v15 = vpop.eup %4283  ;;  %3528 = vst [vmem:[#allocation12 + $0x48] sm:$0xff] %v3488_v28   ;;  %4307 = vrcp.f32 %v2630_v22  ;;  %v2409_v37 = vadd.f32 1.0, %v4282_v63  ;;  %v3374_v40 = vmul.f32 -1.442695, %v2507_v25  ;;  %v1543_v1 = vadd.f32 %v6313_v30, %v5282_v60  ;;  %v4374_v60 = vld [vmem:[#allocation6 + $0xb0] sm:$0xff]  ;;  %v6113_v28 = vpop.f32.mrf.mxu1 }
 0x37f   :  { %4309 = vpow2.f32 %v3373_v51  ;;  %v2726_v49 = vmul.f32 %v4284_v15, %v2226_v62  ;;  %v2881_v44 = vmul.f32 %v4373_v55, %v6056_v5  ;;  %v2231_v17 = vadd.f32 %v6047_v35, %v5444_v7  ;;  %v6316_v15 = vld [vmem:[#allocation31_spill] sm:$0xff] }
 0x380   :  { %v4286_v8 = vpop.eup %4285  ;;  %4311 = vrcp.f32 %v2409_v37  ;;  %v2819_v45 = vsub.f32 1.0, %v4272_v19  ;;  %v2508_v9 = vadd.f32 %v2090_v0, %v1543_v1  ;;  %v2883_v32 = vmul.f32 %v4374_v60, %v4272_v19 }
 0x381   :  { %v4288_v46 = vpop.eup %4287  ;;  %v2849_v39 = vmul.f32 %v4286_v8, %v2817_v12  ;;  %4313 = vpow2.f32 %v3343_v38  ;;  %v2758_v16 = vadd.f32 %v2726_v49, %v6314_v59  ;;  %v2818_v6 = vsub.f32 1.0, %v6077_v21  ;;  %v2241_v49 = vpop.f32.mrf.mxu1 }
 0x382   :  { %v4290_v54 = vpop.eup %4289  ;;  %4315 = vrcp.f32 %v2631_v24  ;;  %v3375_v47 = vmul.f32 -1.442695, %v2508_v9  ;;  %v2234_v62 = vadd.f32 %v6073_v42, %v5444_v7  ;;  %v2882_v51 = vmul.f32 %v4375_v27, %v6077_v21  ;;  %v4377_v9 = vld [vmem:[#allocation6 + $0xc0] sm:$0xff] }
 0x383   :  { %v4292_v2 = vpop.eup %4291  ;;  %v2851_v18 = vmul.f32 %v4290_v54, %v2819_v45  ;;  %v2913_v5 = vadd.f32 %v2881_v44, %v2849_v39  ;;  %4317 = vpow2.f32 %v3374_v40  ;;  %v2632_v41 = vadd.f32 1.0, %v4288_v46 }
 0x384   :  { %v4294_v50 = vpop.eup %4293  ;;  %v2727_v13 = vmul.f32 %v4292_v2, %v2231_v17  ;;  %4319 = vtanh.f32 %v2757_v36  ;;  %v2820_v11 = vsub.f32 1.0, %v6090_v31  ;;  %v2884_v58 = vmul.f32 %v4376_v26, %v6090_v31  ;;  %v6317_v17 = vld [vmem:[#allocation34_spill] sm:$0xff] }
 0x385   :  { %v6103_v35 = vpop.eup %4295  ;;  %v2915_v4 = vadd.f32 %v2883_v32, %v2851_v18  ;;  %v2945_v34 = vmax.f32 %v2913_v5, 0.0  ;;  %v2410_v53 = vadd.f32 1.0, %v4294_v50  ;;  %4321 = vtanh.f32 %v2758_v16  ;;  %v4378_v32 = vld [vmem:[#allocation6 + $0xc8] sm:$0xff] }
 0x386   :  { %v4298_v56 = vpop.eup %4297  ;;  %v2759_v61 = vadd.f32 %v2727_v13, %v6315_v48  ;;  %v2239_v23 = vadd.f32 %v2238_v57, %v5444_v7  ;;  %v2821_v44 = vsub.f32 1.0, %v6103_v35  ;;  %v2242_v16 = vadd.f32 %v2241_v49, %v5444_v7 }
 0x387   :  { %v4300_v19 = vpop.eup %4299  ;;  %v2947_v10 = vmax.f32 %v2915_v4, 0.0  ;;  %2977 = vst [vmem:[#allocation11 + $0xa0] sm:$0xff] %v2945_v34  ;;  %4323 = vrcp.f32 %v2410_v53  ;;  %v2633_v14 = vadd.f32 1.0, %v4298_v56  ;;  %v2885_v2 = vmul.f32 %v4377_v9, %v6103_v35  ;;  %v4379_v35 = vld [vmem:[#allocation6 + $0xd0] sm:$0xff] }
 0x388   :  { %v4302_v3 = vpop.eup %4301  ;;  %v2850_v20 = vmul.f32 %v4300_v19, %v2818_v6  ;;  %4325 = vtanh.f32 %v2759_v61  ;;  %v2247_v48 = vadd.f32 %v6101_v29, %v5444_v7  ;;  %v6319_v29 = vld [vmem:[#allocation33_spill] sm:$0xff] }
 0x389   :  { %v4304_v22 = vpop.eup %4303  ;;  %2979 = vst [vmem:[#allocation11 + $0xb0] sm:$0xff] %v2947_v10  ;;  %v2411_v43 = vadd.f32 1.0, %v4302_v3  ;;  %4327 = vpow2.f32 %v3375_v47 }
 0x38a   :  { %v4306_v25 = vpop.eup %4305  ;;  %v2852_v42 = vmul.f32 %v4304_v22, %v2820_v11  ;;  %v2914_v52 = vadd.f32 %v2882_v51, %v2850_v20 }
 0x38b   :  { %v4308_v21 = vpop.eup %4307  ;;  %4329 = vrcp.f32 %v2411_v43  ;;  %v2728_v63 = vmul.f32 %v4306_v25, %v2234_v62  ;;  %v6318_v62 = vld [vmem:[#allocation36_spill] sm:$0xff] }
 0x38c   :  { %v4310_v38 = vpop.eup %4309  ;;  %4331 = vrcp.f32 %v2632_v41  ;;  %v2916_v33 = vadd.f32 %v2884_v58, %v2852_v42  ;;  %v2946_v36 = vmax.f32 %v2914_v52, 0.0  ;;  %v2822_v59 = vsub.f32 1.0, %v4308_v21  ;;  %v4380_v52 = vld [vmem:[#allocation6 + $0xd8] sm:$0xff] }
 0x38d   :  { %v4312_v31 = vpop.eup %4311  ;;  %v2760_v24 = vadd.f32 %v2728_v63, %v6316_v15  ;;  %4333 = vrcp.f32 %v2633_v14  ;;  %v2634_v39 = vadd.f32 1.0, %v4310_v38  ;;  %v2886_v18 = vmul.f32 %v4378_v32, %v4308_v21 }
 0x38e   :  { %v4314_v37 = vpop.eup %4313  ;;  %v2948_v0 = vmax.f32 %v2916_v33, 0.0  ;;  %2978 = vst [vmem:[#allocation11 + $0xa8] sm:$0xff] %v2946_v36  ;;  %v3493_v12 = vpack.c.bf16 %v2946_v36, %v2945_v34  ;;  %v2729_v40 = vmul.f32 %v4312_v31, %v2239_v23  ;;  %v2250_v14 = vadd.f32 %v6113_v28, %v5444_v7  ;;  %v4381_v31 = vld [vmem:[#allocation6 + $0xe0] sm:$0xff] }
 0x38f   :  { %v4316_v8 = vpop.eup %4315  ;;  %v2412_v30 = vadd.f32 1.0, %v4314_v37  ;;  %4335 = vtanh.f32 %v2760_v24 }
 0x390   :  { %v4318_v1 = vpop.eup %4317  ;;  %2980 = vst [vmem:[#allocation11 + $0xb8] sm:$0xff] %v2948_v0  ;;  %v3498_v55 = vpack.c.bf16 %v2948_v0, %v2947_v10  ;;  %3529 = vst [vmem:[#allocation12 + $0x50] sm:$0xff] %v3493_v12   ;;  %v2761_v46 = vadd.f32 %v2729_v40, %v6317_v17  ;;  %v2823_v34 = vsub.f32 1.0, %v4316_v8  ;;  %v2887_v57 = vmul.f32 %v4379_v35, %v4316_v8  ;;  %v6320_v0 = vld [vmem:[#allocation35_spill] sm:$0xff] }
 0x391   :  { %v4320_v45 = vpop.eup %4319  ;;  %4337 = vrcp.f32 %v2412_v30  ;;  %v2635_v13 = vadd.f32 1.0, %v4318_v1 }
 0x392   :  { %v4322_v54 = vpop.eup %4321  ;;  %3530 = vst [vmem:[#allocation12 + $0x58] sm:$0xff] %v3498_v55   ;;  %v2853_v60 = vmul.f32 %v4320_v45, %v2821_v44  ;;  %4339 = vtanh.f32 %v2761_v46  ;;  %v4382_v44 = vld [vmem:[#allocation6 + $0xe8] sm:$0xff] }
 0x393   :  { %v2854_v5 = vmul.f32 %v4322_v54, %v2822_v59  ;;  %4341 = vrcp.f32 %v2634_v39 }
 0x394   :  { %v4324_v50 = vpop.eup %4323  ;;  %v2917_v4 = vadd.f32 %v2885_v2, %v2853_v60  ;;  %4343 = vrcp.f32 %v2635_v13 }
 0x395   :  { %v2918_v53 = vadd.f32 %v2886_v18, %v2854_v5  ;;  %v2730_v56 = vmul.f32 %v4324_v50, %v2242_v16  ;;  %v4326_v6 = vpop.eup %4325  ;;  %v4383_v16 = vld [vmem:[#allocation6 + $0xf0] sm:$0xff] }
 0x396   :  { %v2949_v47 = vmax.f32 %v2917_v4, 0.0  ;;  %v4328_v61 = vpop.eup %4327  ;;  %v2855_v19 = vmul.f32 %v4326_v6, %v2823_v34  ;;  %v4384_v4 = vld [vmem:[#allocation6 + $0xf8] sm:$0xff] }
 0x397   :  { %v2950_v10 = vmax.f32 %v2918_v53, 0.0  ;;  %v2762_v3 = vadd.f32 %v2730_v56, %v6318_v62  ;;  %v2636_v26 = vadd.f32 1.0, %v4328_v61 }
 0x398   :  { %v4330_v27 = vpop.eup %4329  ;;  %2981 = vst [vmem:[#allocation11 + $0xc0] sm:$0xff] %v2949_v47  ;;  %v2919_v41 = vadd.f32 %v2887_v57, %v2855_v19 }
 0x399   :  { %v4332_v51 = vpop.eup %4331  ;;  %2982 = vst [vmem:[#allocation11 + $0xc8] sm:$0xff] %v2950_v10  ;;  %v3503_v11 = vpack.c.bf16 %v2950_v10, %v2949_v47  ;;  %v2731_v20 = vmul.f32 %v4330_v27, %v2247_v48  ;;  %4345 = vtanh.f32 %v2762_v3 }
 0x39a   :  { %v4334_v22 = vpop.eup %4333  ;;  %v2951_v58 = vmax.f32 %v2919_v41, 0.0  ;;  %v2824_v23 = vsub.f32 1.0, %v4332_v51  ;;  %v2888_v21 = vmul.f32 %v4380_v52, %v4332_v51 }
 0x39b   :  { %3531 = vst [vmem:[#allocation12 + $0x60] sm:$0xff] %v3503_v11   ;;  %v2763_v43 = vadd.f32 %v2731_v20, %v6319_v29  ;;  %v2825_v38 = vsub.f32 1.0, %v4334_v22  ;;  %v2889_v15 = vmul.f32 %v4381_v31, %v4334_v22 }
 0x39c   :  { %v4336_v25 = vpop.eup %4335  ;;  %2983 = vst [vmem:[#allocation11 + $0xd0] sm:$0xff] %v2951_v58 }
 0x39d   :  { %4347 = vtanh.f32 %v2763_v43  ;;  %v2856_v63 = vmul.f32 %v4336_v25, %v2824_v23 }
 0x39e   :  { %v4338_v42 = vpop.eup %4337  ;;  %4349 = vrcp.f32 %v2636_v26 }
 0x39f   :  { %v4340_v33 = vpop.eup %4339  ;;  %v2732_v36 = vmul.f32 %v4338_v42, %v2250_v14  ;;  %v2920_v24 = vadd.f32 %v2888_v21, %v2856_v63 }
 0x3a0   :  { %v2857_v37 = vmul.f32 %v4340_v33, %v2825_v38  ;;  %v4342_v40 = vpop.eup %4341 }
 0x3a1   :  { %v2764_v12 = vadd.f32 %v2732_v36, %v6320_v0  ;;  %v2952_v49 = vmax.f32 %v2920_v24, 0.0  ;;  %v4344_v30 = vpop.eup %4343  ;;  %v2826_v1 = vsub.f32 1.0, %v4342_v40  ;;  %v2890_v17 = vmul.f32 %v4382_v44, %v4342_v40 }
 0x3a2   :  { %v2921_v8 = vadd.f32 %v2889_v15, %v2857_v37  ;;  %v2827_v45 = vsub.f32 1.0, %v4344_v30  ;;  %v2891_v54 = vmul.f32 %v4383_v16, %v4344_v30 }
 0x3a3   :  { %4351 = vtanh.f32 %v2764_v12  ;;  %2984 = vst [vmem:[#allocation11 + $0xd8] sm:$0xff] %v2952_v49  ;;  %v3508_v7 = vpack.c.bf16 %v2952_v49, %v2951_v58 }
 0x3a4   :  { %v2953_v28 = vmax.f32 %v2921_v8, 0.0 }
 0x3a5   :  { %3532 = vst [vmem:[#allocation12 + $0x68] sm:$0xff] %v3508_v7  }
 0x3a6   :  { %v4346_v55 = vpop.eup %4345  ;;  %2985 = vst [vmem:[#allocation11 + $0xe0] sm:$0xff] %v2953_v28 }
 0x3a7   :  { %v2858_v46 = vmul.f32 %v4346_v55, %v2826_v1 }
 0x3a9   :  { %v2922_v39 = vadd.f32 %v2890_v17, %v2858_v46 }
 0x3aa   :  { %v4348_v59 = vpop.eup %4347 }
 0x3ab   :  { %v2859_v9 = vmul.f32 %v4348_v59, %v2827_v45  ;;  %v2954_v2 = vmax.f32 %v2922_v39, 0.0  ;;  %v4350_v60 = vpop.eup %4349 }
 0x3ac   :  { %v2828_v50 = vsub.f32 1.0, %v4350_v60  ;;  %v2892_v34 = vmul.f32 %v4384_v4, %v4350_v60 }
 0x3ad   :  { %v2923_v32 = vadd.f32 %v2891_v54, %v2859_v9  ;;  %2986 = vst [vmem:[#allocation11 + $0xe8] sm:$0xff] %v2954_v2  ;;  %v3513_v18 = vpack.c.bf16 %v2954_v2, %v2953_v28 }
 0x3af   :  { %v2955_v5 = vmax.f32 %v2923_v32, 0.0  ;;  %3533 = vst [vmem:[#allocation12 + $0x70] sm:$0xff] %v3513_v18  }
 0x3b0   :  { %v4352_v13 = vpop.eup %4351 }
 0x3b1   :  { %2987 = vst [vmem:[#allocation11 + $0xf0] sm:$0xff] %v2955_v5  ;;  %v2860_v53 = vmul.f32 %v4352_v13, %v2828_v50 }
 0x3b3   :  { %v2924_v56 = vadd.f32 %v2892_v34, %v2860_v53 }
 0x3b5   :  { %v2956_v6 = vmax.f32 %v2924_v56, 0.0 }
 0x3b7   :  { %2988 = vst [vmem:[#allocation11 + $0xf8] sm:$0xff] %v2956_v6  ;;  %v3518_v47 = vpack.c.bf16 %v2956_v6, %v2955_v5 }
 0x3b8   :  { %4476 = shalt.err (!%p4473_p10)
}
 0x3b9   :  { %3160 = dma.vmem_to_hbm [thread:$0]  %s3155_s21, 4096, %s6148_s9, [#allocation5], %s4516_s16, %s4516_s16, %s4517_s17   ;;  %3534 = vst [vmem:[#allocation12 + $0x78] sm:$0xff] %v3518_v47  }
 0x3ba   :  { %s4485_s27 = scalar_lea.vmem %s3167_s4, 2048  ;;  %p4490_p12 = scmp.lt.s32.totalorder %s3167_s4, %s3167_s4 }
 0x3bb   :  { %p4486_p11 = scmp.ne.s32.totalorder %s3167_s4, %s4485_s27  ;;  %p4491_p13 = scmp.lt.s32.totalorder %s4485_s27, %s4485_s27 }
 0x3bd   :  { %p4492_p0 = por %p4491_p13, %p4490_p12 }
 0x3bf   :  { %p4493_p1 = pnand %p4492_p0, %p4486_p11 }
 0x3c1   :  { %4496 = shalt.err (!%p4493_p1)
}
 0x3c2   :  { %3172 = dma.vmem_to_hbm [thread:$0]  %s3167_s4, 2048, %s6149_s10, [#allocation13], %s4519_s23, %s4519_s23, %s4520_s24  }
 0x3c3   :  { %4511 = dma.done.wait [#allocation5], 4096  }
 0x3c4   :  { %4512 = vsyncadd [#allocation5], 4294963200 }
 0x3c5   :  { %4513 = dma.done.wait [#allocation13], 2048  }
 0x3c6   :  { %4514 = vsyncadd [#allocation13], 4294965248 }
 0x3c7   :  { %3179 = vsyncpa [#allocation4], 1 }
 0x3c8   :  { %3180 = vsyncpa [#allocation7], 1 }
 0x3c9   :  { %3181 = vsyncpa [#allocation10], 1 }
 0x3ca   :  { %3182 = vsyncpa [#allocation5], 1 }
 0x3cb   :  { %3183 = vsyncpa [#allocation13], 1 }

</bundles_post_ra>
